<compile_context>
chip_gen: v7x
topology: tpu7x:2x2x1
jax: 0.10.0
libtpu: 0.0.40
codegen_flags: <defaults>
</compile_context>

<pallas_src>
import functools
import math

import jax
import jax.numpy as jnp
from jax.experimental import pallas as pl
from jax.experimental.pallas import tpu as pltpu


def _pick_vmem_limit():
    # ~3/4 of physical VMEM where discoverable; 48 MiB is safe on every
    # generation (v7x: 64 MiB physical, v5e/v6e: 128 MiB physical).
    try:
        cap = pltpu.get_tpu_info().vmem_capacity_bytes
        return int(min(96 * 1024 * 1024, max(48 * 1024 * 1024, (cap * 3) // 4)))
    except Exception:
        return 48 * 1024 * 1024


_VMEM_LIMIT = _pick_vmem_limit()


# --------------------- fused linear: LN prologue + matmul + epilogue ---------------------

def _fused_linear_kernel(*refs, have_bias, have_ln, have_res, activation):
    it = iter(refs)
    x_ref = next(it)
    w_ref = next(it)
    b_ref = next(it) if have_bias else None
    if have_ln:
        g_ref = next(it)
        beta_ref = next(it)
    res_ref = next(it) if have_res else None
    o_ref = next(it)
    xln_ref = next(it) if have_ln else None          # VMEM scratch (tm, K) bf16

    if have_ln:
        # LayerNorm prologue (f32 stats, eps=1e-5), computed once per row tile
        # (only when the inner N-tile index is 0) and cached in VMEM as bf16.
        @pl.when(pl.program_id(1) == 0)
        def _():
            x = x_ref[...].astype(jnp.float32)
            mu = jnp.mean(x, axis=-1, keepdims=True)
            xc = x - mu
            var = jnp.mean(xc * xc, axis=-1, keepdims=True)
            xn = xc * jax.lax.rsqrt(var + 1e-5) * g_ref[...] + beta_ref[...]
            xln_ref[...] = xn.astype(jnp.bfloat16)
        xb = xln_ref[...]
    else:
        xb = x_ref[...]                              # already bf16

    # bf16 MXU operands, f32 accumulation.
    y = jnp.dot(xb, w_ref[...], preferred_element_type=jnp.float32)
    if have_bias:
        y = y + b_ref[...]
    if activation == 'quickgelu':
        y = y * jax.nn.sigmoid(1.702 * y)
    if have_res:
        y = y + res_ref[...]                         # bf16 residual, promoted to f32
    o_ref[...] = y.astype(o_ref.dtype)


def fused_linear(x, w, bias=None, gamma=None, beta=None, residual=None,
                 activation=None, tm=512, tn=512, out_dtype=jnp.bfloat16):
    """epilogue(LayerNorm(x) @ w + bias [+ residual]); tiled over (M, N), K whole."""
    M, K = x.shape
    Kw, N = w.shape
    assert K == Kw

    # Single full-extent block for small dims (always layout-legal, no padding);
    # otherwise 512-wide aligned tiles with a cdiv grid (edge blocks masked).
    tm = min(tm, M)
    tn = min(tn, N)
    grid = (pl.cdiv(M, tm), pl.cdiv(N, tn))

    have_bias = bias is not None
    have_ln = gamma is not None
    have_res = residual is not None

    inputs = [x.astype(jnp.bfloat16), w.astype(jnp.bfloat16)]
    in_specs = [pl.BlockSpec((tm, K), lambda i, j: (i, 0)),
                pl.BlockSpec((K, tn), lambda i, j: (0, j))]
    if have_bias:
        inputs.append(bias.reshape(1, -1).astype(jnp.float32))
        in_specs.append(pl.BlockSpec((1, tn), lambda i, j: (0, j)))
    if have_ln:
        inputs += [gamma.reshape(1, -1).astype(jnp.float32),
                   beta.reshape(1, -1).astype(jnp.float32)]
        in_specs += [pl.BlockSpec((1, K), lambda i, j: (0, 0)),
                     pl.BlockSpec((1, K), lambda i, j: (0, 0))]
    if have_res:
        inputs.append(residual.astype(jnp.bfloat16))
        in_specs.append(pl.BlockSpec((tm, tn), lambda i, j: (i, j)))

    scratch = [pltpu.VMEM((tm, K), jnp.bfloat16)] if have_ln else []
    # The LN cache requires a sequential sweep over j on each core; without LN
    # both axes can be split across the two TensorCores.
    dims = ("parallel", "arbitrary") if have_ln else ("parallel", "parallel")

    kern = functools.partial(_fused_linear_kernel, have_bias=have_bias,
                             have_ln=have_ln, have_res=have_res,
                             activation=activation)
    return pl.pallas_call(
        kern,
        out_shape=jax.ShapeDtypeStruct((M, N), out_dtype),
        grid=grid,
        in_specs=in_specs,
        out_specs=pl.BlockSpec((tm, tn), lambda i, j: (i, j)),
        scratch_shapes=scratch,
        compiler_params=pltpu.CompilerParams(
            dimension_semantics=dims,
            vmem_limit_bytes=_VMEM_LIMIT),
    )(*inputs)


# ------------------------------ standalone LayerNorm (ln_pre) ----------------------------

def _layernorm_kernel(x_ref, g_ref, b_ref, o_ref):
    x = x_ref[...].astype(jnp.float32)
    mu = jnp.mean(x, axis=-1, keepdims=True)
    xc = x - mu
    var = jnp.mean(xc * xc, axis=-1, keepdims=True)
    o_ref[...] = (xc * jax.lax.rsqrt(var + 1e-5) * g_ref[...] + b_ref[...]
                  ).astype(o_ref.dtype)


def pallas_layernorm(x, gamma, beta, tm=1024):
    # Row-tiled LayerNorm; only used where it cannot be fused into a matmul (ln_pre).
    M, D = x.shape
    tm = min(tm, M)
    return pl.pallas_call(
        _layernorm_kernel,
        out_shape=jax.ShapeDtypeStruct((M, D), jnp.bfloat16),
        grid=(pl.cdiv(M, tm),),
        in_specs=[pl.BlockSpec((tm, D), lambda i: (i, 0)),
                  pl.BlockSpec((1, D), lambda i: (0, 0)),
                  pl.BlockSpec((1, D), lambda i: (0, 0))],
        out_specs=pl.BlockSpec((tm, D), lambda i: (i, 0)),
        compiler_params=pltpu.CompilerParams(
            dimension_semantics=("parallel",),
            vmem_limit_bytes=_VMEM_LIMIT),
    )(x.astype(jnp.bfloat16), gamma.astype(jnp.float32), beta.astype(jnp.float32))


# ------------------------------------ attention core -------------------------------------

def _attention_kernel(q_ref, k_ref, v_ref, o_ref, *, scale, causal):
    # q/k/v refs: (1, Hg, S, Dh) bf16 ; o ref: (1, S, Hg*Dh) bf16
    q = q_ref[0] * scale                                   # fold 1/sqrt(Dh) into q
    k = k_ref[0]
    v = v_ref[0]
    # Batched (over the Hg heads of this group) MXU matmuls, f32 accumulation.
    s = jax.lax.dot_general(q, k, (((2,), (2,)), ((0,), (0,))),
                            preferred_element_type=jnp.float32)   # (Hg, S, S)
    if causal:                                             # in-kernel mask, no DMA
        row = jax.lax.broadcasted_iota(jnp.int32, s.shape, 1)
        col = jax.lax.broadcasted_iota(jnp.int32, s.shape, 2)
        s = jnp.where(col > row, -jnp.inf, s)
    m = jnp.max(s, axis=-1, keepdims=True)
    e = jnp.exp(s - m)
    p = e * pl.reciprocal(jnp.sum(e, axis=-1, keepdims=True), approx=True)
    out = jax.lax.dot_general(p.astype(jnp.bfloat16), v,
                              (((2,), (1,)), ((0,), (0,))),
                              preferred_element_type=jnp.float32)  # (Hg, S, Dh)
    hg = out.shape[0]
    # One lane-dense (S, Hg*Dh) store per grid step (Hg is 1-2, tiny concat).
    o_ref[0] = jnp.concatenate([out[i] for i in range(hg)],
                               axis=-1).astype(o_ref.dtype)


def pallas_attention(qkv, n_head, causal):
    # qkv: (B, S, 3D) bf16 fused in-projection output; returns (B, S, D) bf16.
    # TODO(synk): flash-style KV tiling (online softmax) for very long sequences.
    B, S, D3 = qkv.shape
    D = D3 // 3
    dh = D // n_head
    # Smallest head group whose output slab is a multiple of 128 lanes (or all
    # heads -> full-D block), so grid=(B, n_groups) keeps both TCs busy while
    # stores stay unmasked and layout-legal.
    hg = n_head
    for cand in range(1, n_head + 1):
        if n_head % cand == 0 and (cand * dh) % 128 == 0:
            hg = cand
            break
    ng = n_head // hg

    # (B, S, 3D) -> (B, 3*H, S, Dh): head axis becomes a blockable leading dim.
    qkv4 = qkv.reshape(B, S, 3 * n_head, dh).transpose(0, 2, 1, 3)

    def head_spec(off):
        return pl.BlockSpec((1, hg, S, dh),
                            lambda b, g, off=off: (b, off + g, 0, 0))

    kern = functools.partial(_attention_kernel, scale=dh ** -0.5, causal=causal)
    return pl.pallas_call(
        kern,
        out_shape=jax.ShapeDtypeStruct((B, S, D), jnp.bfloat16),
        grid=(B, ng),
        in_specs=[head_spec(0), head_spec(ng), head_spec(2 * ng)],
        out_specs=pl.BlockSpec((1, S, hg * dh), lambda b, g: (b, 0, g)),
        compiler_params=pltpu.CompilerParams(
            dimension_semantics=("parallel", "parallel"),
            vmem_limit_bytes=_VMEM_LIMIT),
    )(qkv4, qkv4, qkv4)


# ------------------------------------- CLIP head ------------------------------------------

def _clip_logits_kernel(img_ref, txt_ref, scale_ref, logits_ref, imgf_ref):
    img = img_ref[...].astype(jnp.float32)
    txt = txt_ref[...].astype(jnp.float32)
    img_n = img * jax.lax.rsqrt(jnp.sum(img * img, axis=-1, keepdims=True))
    txt_n = txt * jax.lax.rsqrt(jnp.sum(txt * txt, axis=-1, keepdims=True))
    s = scale_ref[0, 0]
    logits_ref[...] = s * jax.lax.dot_general(
        img_n, txt_n, (((1,), (1,)), ((), ())), preferred_element_type=jnp.float32)

    @pl.when(pl.program_id(1) == 0)
    def _():
        imgf_ref[...] = img_n


def pallas_clip_logits(image_features, text_features, logit_scale_exp, tb=256):
    # Tiled over (Bi, Bt) so contrastive-training batch sizes don't blow VMEM.
    Bi, D = image_features.shape
    Bt, _ = text_features.shape
    tbi = min(tb, Bi)
    tbt = min(tb, Bt)
    return pl.pallas_call(
        _clip_logits_kernel,
        out_shape=(jax.ShapeDtypeStruct((Bi, Bt), jnp.float32),
                   jax.ShapeDtypeStruct((Bi, D), jnp.float32)),
        grid=(pl.cdiv(Bi, tbi), pl.cdiv(Bt, tbt)),
        in_specs=[pl.BlockSpec((tbi, D), lambda i, j: (i, 0)),
                  pl.BlockSpec((tbt, D), lambda i, j: (j, 0)),
                  pl.BlockSpec((1, 1), lambda i, j: (0, 0),
                               memory_space=pltpu.MemorySpace.SMEM)],
        out_specs=(pl.BlockSpec((tbi, tbt), lambda i, j: (i, j)),
                   pl.BlockSpec((tbi, D), lambda i, j: (i, 0))),
        compiler_params=pltpu.CompilerParams(
            dimension_semantics=("parallel", "arbitrary"),
            vmem_limit_bytes=_VMEM_LIMIT),
    )(image_features, text_features,
      logit_scale_exp.reshape(1, 1).astype(jnp.float32))


# ------------------------------------ model pieces ----------------------------------------

def residual_attention_block(x, p, n_head, causal):
    B, S, D = x.shape
    xf = x.reshape(B * S, D)

    # LN(ln_1) fused into the QKV projection.
    qkv = fused_linear(xf, p['in_proj_w'], bias=p['in_proj_b'],
                       gamma=p['ln_1_g'], beta=p['ln_1_b'])                 # (B*S, 3D)
    attn = pallas_attention(qkv.reshape(B, S, 3 * D), n_head, causal)       # (B, S, D)
    # out_proj + bias + residual add fused.
    x1 = fused_linear(attn.reshape(B * S, D), p['out_proj_w'],
                      bias=p['out_proj_b'], residual=xf)

    # LN(ln_2) + c_fc + bias + QuickGELU fused.
    h = fused_linear(x1, p['c_fc_w'], bias=p['c_fc_b'],
                     gamma=p['ln_2_g'], beta=p['ln_2_b'], activation='quickgelu')
    # c_proj + bias + residual add fused.
    x2 = fused_linear(h, p['c_proj_w'], bias=p['c_proj_b'], residual=x1)
    return x2.reshape(B, S, D)


def encode_image(params, image, cfg):
    # VisionTransformer branch of CLIP (vision_layers is an int).
    # TODO(synk): ModifiedResNet branch (vision_layers as tuple) not implemented.
    vp = params['visual']
    N, C, H, W = image.shape
    ps = cfg['vision_patch_size']
    width = cfg['vision_width']
    gh, gw = H // ps, W // ps

    # conv1 with kernel=stride=patch_size  ==  patch extraction + matmul.
    patches = image.reshape(N, C, gh, ps, gw, ps)
    patches = patches.transpose(0, 2, 4, 1, 3, 5).reshape(N * gh * gw, C * ps * ps)
    x = fused_linear(patches, vp['conv1_w']).reshape(N, gh * gw, width)

    cls = jnp.broadcast_to(vp['class_embedding'].astype(jnp.bfloat16)[None, None, :],
                           (N, 1, width))
    x = jnp.concatenate([cls, x], axis=1)
    # pos_embedding=False (CLIP.forward default) => positional embedding NOT added,
    # matching the reference VisionTransformer.forward with its default argument.
    # TODO(synk): pos_embedding=True bicubic-resize path not implemented.

    S = x.shape[1]
    x = pallas_layernorm(x.reshape(N * S, width),
                         vp['ln_pre_g'], vp['ln_pre_b']).reshape(N, S, width)
    for blk in vp['blocks']:
        x = residual_attention_block(x, blk, cfg['vision_heads'], causal=False)

    # ln_post + @proj fused in one kernel.
    return fused_linear(x[:, 0, :], vp['proj'],
                        gamma=vp['ln_post_g'], beta=vp['ln_post_b'],
                        out_dtype=jnp.float32)


def encode_text(params, text, cfg):
    B, L = text.shape
    x = jnp.take(params['token_embedding'], text, axis=0)        # (B, L, tw)
    x = (x + params['positional_embedding'][None]).astype(jnp.bfloat16)

    for blk in params['text_blocks']:
        # causal mask built inside the attention kernel (CLIP.build_attention_mask).
        x = residual_attention_block(x, blk, cfg['transformer_heads'], causal=True)

    # LayerNorm is row-wise, so gather the EOT token first, then fuse ln_final + projection.
    eot = jnp.argmax(text, axis=-1)
    x_eot = x[jnp.arange(B), eot]                                # (B, tw)
    return fused_linear(x_eot, params['text_projection'],
                        gamma=params['ln_final_g'], beta=params['ln_final_b'],
                        out_dtype=jnp.float32)


def clip_forward(params, image, text, cfg):
    image_features = encode_image(params, image, cfg)
    text_features = encode_text(params, text, cfg)
    scale = jnp.exp(params['logit_scale'])
    logits_per_image, image_features_n = pallas_clip_logits(
        image_features, text_features, scale)
    # (matches torch return: (logits_per_image, normalized image_features))
    return logits_per_image, image_features_n


# ---------------------------------- parameter builders ------------------------------------

def make_block_params(key, d_model, attn_std, proj_std, fc_std):
    ks = jax.random.split(key, 4)
    f32, bf16 = jnp.float32, jnp.bfloat16
    # Linear weights stored pre-transposed in (in_features, out_features) layout and in
    # bf16 (MXU-native); LayerNorm params and biases stay f32.
    # TODO(synk): optional fp8 weight storage for the v7x fp8 MXU path.
    return dict(
        ln_1_g=jnp.ones((1, d_model), f32), ln_1_b=jnp.zeros((1, d_model), f32),
        in_proj_w=(attn_std * jax.random.normal(ks[0], (d_model, 3 * d_model), f32)
                   ).astype(bf16),
        in_proj_b=jnp.zeros((1, 3 * d_model), f32),
        out_proj_w=(proj_std * jax.random.normal(ks[1], (d_model, d_model), f32)
                    ).astype(bf16),
        out_proj_b=jnp.zeros((1, d_model), f32),
        ln_2_g=jnp.ones((1, d_model), f32), ln_2_b=jnp.zeros((1, d_model), f32),
        c_fc_w=(fc_std * jax.random.normal(ks[2], (d_model, 4 * d_model), f32)
                ).astype(bf16),
        c_fc_b=jnp.zeros((1, 4 * d_model), f32),
        c_proj_w=(proj_std * jax.random.normal(ks[3], (4 * d_model, d_model), f32)
                  ).astype(bf16),
        c_proj_b=jnp.zeros((1, d_model), f32),
    )


def init_params(key, cfg):
    f32, bf16 = jnp.float32, jnp.bfloat16
    keys = jax.random.split(key, 10)
    w = cfg['vision_width']
    ps = cfg['vision_patch_size']
    res = cfg['image_resolution']
    ed = cfg['embed_dim']
    tw = cfg['transformer_width']
    vlayers = cfg['vision_layers']
    tlayers = cfg['transformer_layers']
    scale = w ** -0.5

    v_proj_std = w ** -0.5 * (2 * vlayers) ** -0.5
    v_attn_std = w ** -0.5
    v_fc_std = (2 * w) ** -0.5
    vkeys = jax.random.split(keys[0], vlayers)
    conv1 = scale * jax.random.normal(keys[1], (w, 3, ps, ps), f32)
    visual = dict(
        # conv1 pre-flattened once to the (C*ps*ps, width) matmul layout.
        conv1_w=conv1.reshape(w, 3 * ps * ps).T.astype(bf16),
        class_embedding=scale * jax.random.normal(keys[2], (w,), f32),
        positional_embedding=scale * jax.random.normal(
            keys[3], ((res // ps) ** 2 + 1, w), f32),
        ln_pre_g=jnp.ones((1, w), f32), ln_pre_b=jnp.zeros((1, w), f32),
        blocks=[make_block_params(vkeys[i], w, v_attn_std, v_proj_std, v_fc_std)
                for i in range(vlayers)],
        ln_post_g=jnp.ones((1, w), f32), ln_post_b=jnp.zeros((1, w), f32),
        proj=(scale * jax.random.normal(keys[4], (w, ed), f32)).astype(bf16),
    )

    t_proj_std = tw ** -0.5 * (2 * tlayers) ** -0.5
    t_attn_std = tw ** -0.5
    t_fc_std = (2 * tw) ** -0.5
    tkeys = jax.random.split(keys[5], tlayers)
    return dict(
        visual=visual,
        token_embedding=0.02 * jax.random.normal(keys[6], (cfg['vocab_size'], tw), f32),
        positional_embedding=0.01 * jax.random.normal(
            keys[7], (cfg['context_length'], tw), f32),
        text_blocks=[make_block_params(tkeys[i], tw, t_attn_std, t_proj_std, t_fc_std)
                     for i in range(tlayers)],
        ln_final_g=jnp.ones((1, tw), f32), ln_final_b=jnp.zeros((1, tw), f32),
        text_projection=((tw ** -0.5) * jax.random.normal(keys[8], (tw, ed), f32)
                         ).astype(bf16),
        logit_scale=jnp.array(math.log(1 / 0.07), f32),
    )


# ---------------------------------------- main --------------------------------------------

if __name__ == "__main__":
    cfg = dict(
        embed_dim=32,
        image_resolution=16,
        vision_layers=2,          # int -> VisionTransformer branch
        vision_width=64,
        vision_patch_size=4,
        context_length=8,
        vocab_size=50,
        transformer_width=32,
        transformer_heads=2,
        transformer_layers=2,
    )
    cfg['vision_heads'] = cfg['vision_width'] // 64   # = 1

    key = jax.random.PRNGKey(0)
    pkey, ikey, tkey = jax.random.split(key, 3)
    params = init_params(pkey, cfg)

    image = jax.random.normal(ikey, (2, 3, 16, 16), jnp.float32)      # NCHW
    text = jax.random.randint(tkey, (2, cfg['context_length']), 0,
                              cfg['vocab_size'], jnp.int32)

    forward = jax.jit(lambda p, im, tx: clip_forward(p, im, tx, cfg))
    logits_per_image, image_features = forward(params, image, text)
    jax.block_until_ready((logits_per_image, image_features))
    assert logits_per_image.shape == (2, 2)
    assert image_features.shape == (2, cfg['embed_dim'])
    assert bool(jnp.all(jnp.isfinite(logits_per_image)))
    print("KERNEL_OK")
</pallas_src>

<mosaic_0001>
module attributes {stable_mosaic.version = 11 : i64} {
  func.func @_fused_linear_kernel(%arg0: i32, %arg1: i32, %arg2: memref<32x48xbf16, #tpu.memory_space<vmem>>, %arg3: memref<48x64xbf16, #tpu.memory_space<vmem>>, %arg4: memref<32x64xbf16, #tpu.memory_space<vmem>>) attributes {dimension_semantics = [#tpu.dimension_semantics<parallel>, #tpu.dimension_semantics<parallel>], iteration_bounds = array<i64: 1, 1>, scalar_prefetch = 0 : i64, scratch_operands = 0 : i64, tpu.core_type = #tpu.core_type<tc>, window_params = [{transform_indices = @transform_0, window_bounds = array<i64: 32, 48>}, {transform_indices = @transform_1, window_bounds = array<i64: 48, 64>}, {transform_indices = @transform_2, window_bounds = array<i64: 32, 64>}]} {
    %c0 = arith.constant 0 : index
    %c0_0 = arith.constant 0 : index
    %0 = vector.load %arg2[%c0, %c0_0] : memref<32x48xbf16, #tpu.memory_space<vmem>>, vector<32x48xbf16>
    %c0_1 = arith.constant 0 : index
    %c0_2 = arith.constant 0 : index
    %1 = vector.load %arg3[%c0_1, %c0_2] : memref<48x64xbf16, #tpu.memory_space<vmem>>, vector<48x64xbf16>
    %cst = arith.constant dense<0.000000e+00> : vector<32x64xf32>
    %2 = tpu.matmul %0, %1, %cst {dimension_numbers = #tpu.dot_dimension_numbers<[1], [0], [0], [1], [0, 0, 1, 1], [], []>} : vector<32x48xbf16>, vector<48x64xbf16>, vector<32x64xf32> -> vector<32x64xf32>
    %3 = arith.truncf %2 : vector<32x64xf32> to vector<32x64xbf16>
    %c0_3 = arith.constant 0 : index
    %c0_4 = arith.constant 0 : index
    %4 = vector.load %arg4[%c0_3, %c0_4] : memref<32x64xbf16, #tpu.memory_space<vmem>>, vector<32x64xbf16>
    tpu.vector_store %arg4[%c0_3, %c0_4], %3 {strides = array<i32>} : memref<32x64xbf16, #tpu.memory_space<vmem>>, vector<32x64xbf16>,
    return
  }
  func.func @transform_0(%arg0: i32, %arg1: i32) -> (i32, i32) {
    %c0_i32 = arith.constant 0 : i32
    %c0_i32_0 = arith.constant 0 : i32
    return %arg0, %c0_i32 : i32, i32
  }
  func.func @transform_1(%arg0: i32, %arg1: i32) -> (i32, i32) {
    %c0_i32 = arith.constant 0 : i32
    %c0_i32_0 = arith.constant 0 : i32
    return %c0_i32, %arg1 : i32, i32
  }
  func.func @transform_2(%arg0: i32, %arg1: i32) -> (i32, i32) {
    %c0_i32 = arith.constant 0 : i32
    return %arg0, %arg1 : i32, i32
  }
}

module attributes {stable_mosaic.version = 11 : i64} {
  func.func @_layernorm_kernel(%arg0: i32, %arg1: memref<34x64xbf16, #tpu.memory_space<vmem>>, %arg2: memref<1x64xf32, #tpu.memory_space<vmem>>, %arg3: memref<1x64xf32, #tpu.memory_space<vmem>>, %arg4: memref<34x64xbf16, #tpu.memory_space<vmem>>) attributes {dimension_semantics = [#tpu.dimension_semantics<parallel>], iteration_bounds = array<i64: 1>, scalar_prefetch = 0 : i64, scratch_operands = 0 : i64, tpu.core_type = #tpu.core_type<tc>, window_params = [{transform_indices = @transform_0, window_bounds = array<i64: 34, 64>}, {pipeline_mode = #tpu.pipeline_mode<synchronous>, transform_indices = @transform_1, window_bounds = array<i64: 1, 64>}, {pipeline_mode = #tpu.pipeline_mode<synchronous>, transform_indices = @transform_2, window_bounds = array<i64: 1, 64>}, {transform_indices = @transform_3, window_bounds = array<i64: 34, 64>}]} {
    %c0 = arith.constant 0 : index
    %c0_0 = arith.constant 0 : index
    %0 = vector.load %arg1[%c0, %c0_0] : memref<34x64xbf16, #tpu.memory_space<vmem>>, vector<34x64xbf16>
    %1 = arith.extf %0 : vector<34x64xbf16> to vector<34x64xf32>
    %cst = arith.constant dense<0.000000e+00> : vector<34xf32>
    %2 = vector.multi_reduction <add>, %1, %cst [1] : vector<34x64xf32> to vector<34xf32>
    %3 = vector.shape_cast %2 : vector<34xf32> to vector<34x1xf32>
    %cst_1 = arith.constant 6.400000e+01 : f32
    %4 = vector.broadcast %cst_1 : f32 to vector<34x1xf32>
    %5 = arith.divf %3, %4 : vector<34x1xf32>
    %6 = vector.broadcast %5 : vector<34x1xf32> to vector<34x64xf32>
    %7 = arith.subf %1, %6 : vector<34x64xf32>
    %8 = arith.mulf %7, %7 : vector<34x64xf32>
    %cst_2 = arith.constant dense<0.000000e+00> : vector<34xf32>
    %9 = vector.multi_reduction <add>, %8, %cst_2 [1] : vector<34x64xf32> to vector<34xf32>
    %10 = vector.shape_cast %9 : vector<34xf32> to vector<34x1xf32>
    %cst_3 = arith.constant 6.400000e+01 : f32
    %11 = vector.broadcast %cst_3 : f32 to vector<34x1xf32>
    %12 = arith.divf %10, %11 : vector<34x1xf32>
    %cst_4 = arith.constant 9.99999974E-6 : f32
    %13 = vector.broadcast %cst_4 : f32 to vector<34x1xf32>
    %14 = arith.addf %12, %13 : vector<34x1xf32>
    %15 = math.rsqrt %14 : vector<34x1xf32>
    %16 = vector.broadcast %15 : vector<34x1xf32> to vector<34x64xf32>
    %17 = arith.mulf %7, %16 : vector<34x64xf32>
    %c0_5 = arith.constant 0 : index
    %c0_6 = arith.constant 0 : index
    %18 = vector.load %arg2[%c0_5, %c0_6] : memref<1x64xf32, #tpu.memory_space<vmem>>, vector<1x64xf32>
    %19 = vector.broadcast %18 : vector<1x64xf32> to vector<34x64xf32>
    %20 = arith.mulf %17, %19 : vector<34x64xf32>
    %c0_7 = arith.constant 0 : index
    %c0_8 = arith.constant 0 : index
    %21 = vector.load %arg3[%c0_7, %c0_8] : memref<1x64xf32, #tpu.memory_space<vmem>>, vector<1x64xf32>
    %22 = vector.broadcast %21 : vector<1x64xf32> to vector<34x64xf32>
    %23 = arith.addf %20, %22 : vector<34x64xf32>
    %24 = arith.truncf %23 : vector<34x64xf32> to vector<34x64xbf16>
    %c0_9 = arith.constant 0 : index
    %c0_10 = arith.constant 0 : index
    %25 = vector.load %arg4[%c0_9, %c0_10] : memref<34x64xbf16, #tpu.memory_space<vmem>>, vector<34x64xbf16>
    tpu.vector_store %arg4[%c0_9, %c0_10], %24 {strides = array<i32>} : memref<34x64xbf16, #tpu.memory_space<vmem>>, vector<34x64xbf16>,
    return
  }
  func.func @transform_0(%arg0: i32) -> (i32, i32) {
    %c0_i32 = arith.constant 0 : i32
    %c0_i32_0 = arith.constant 0 : i32
    return %arg0, %c0_i32 : i32, i32
  }
  func.func @transform_1(%arg0: i32) -> (i32, i32) {
    %c0_i32 = arith.constant 0 : i32
    %c0_i32_0 = arith.constant 0 : i32
    %c0_i32_1 = arith.constant 0 : i32
    return %c0_i32, %c0_i32_0 : i32, i32
  }
  func.func @transform_2(%arg0: i32) -> (i32, i32) {
    %c0_i32 = arith.constant 0 : i32
    %c0_i32_0 = arith.constant 0 : i32
    %c0_i32_1 = arith.constant 0 : i32
    return %c0_i32, %c0_i32_0 : i32, i32
  }
  func.func @transform_3(%arg0: i32) -> (i32, i32) {
    %c0_i32 = arith.constant 0 : i32
    %c0_i32_0 = arith.constant 0 : i32
    return %arg0, %c0_i32 : i32, i32
  }
}

module attributes {stable_mosaic.version = 11 : i64} {
  func.func @_fused_linear_kernel(%arg0: i32, %arg1: i32, %arg2: memref<34x64xbf16, #tpu.memory_space<vmem>>, %arg3: memref<64x192xbf16, #tpu.memory_space<vmem>>, %arg4: memref<1x192xf32, #tpu.memory_space<vmem>>, %arg5: memref<1x64xf32, #tpu.memory_space<vmem>>, %arg6: memref<1x64xf32, #tpu.memory_space<vmem>>, %arg7: memref<34x192xbf16, #tpu.memory_space<vmem>>, %arg8: memref<34x64xbf16, #tpu.memory_space<vmem>>) attributes {dimension_semantics = [#tpu.dimension_semantics<parallel>, #tpu.dimension_semantics<arbitrary>], iteration_bounds = array<i64: 1, 1>, scalar_prefetch = 0 : i64, scratch_operands = 1 : i64, tpu.core_type = #tpu.core_type<tc>, window_params = [{transform_indices = @transform_0, window_bounds = array<i64: 34, 64>}, {transform_indices = @transform_1, window_bounds = array<i64: 64, 192>}, {transform_indices = @transform_2, window_bounds = array<i64: 1, 192>}, {pipeline_mode = #tpu.pipeline_mode<synchronous>, transform_indices = @transform_3, window_bounds = array<i64: 1, 64>}, {pipeline_mode = #tpu.pipeline_mode<synchronous>, transform_indices = @transform_4, window_bounds = array<i64: 1, 64>}, {transform_indices = @transform_5, window_bounds = array<i64: 34, 192>}]} {
    %c0_i32 = arith.constant 0 : i32
    %0 = arith.cmpi eq, %arg1, %c0_i32 : i32
    %1 = arith.extui %0 : i1 to i32
    %c0_i32_0 = arith.constant 0 : i32
    %2 = arith.cmpi ne, %1, %c0_i32_0 : i32
    scf.if %2 {
      %c0_8 = arith.constant 0 : index
      %c0_9 = arith.constant 0 : index
      %11 = vector.load %arg2[%c0_8, %c0_9] : memref<34x64xbf16, #tpu.memory_space<vmem>>, vector<34x64xbf16>
      %12 = arith.extf %11 : vector<34x64xbf16> to vector<34x64xf32>
      %cst_10 = arith.constant dense<0.000000e+00> : vector<34xf32>
      %13 = vector.multi_reduction <add>, %12, %cst_10 [1] : vector<34x64xf32> to vector<34xf32>
      %14 = vector.shape_cast %13 : vector<34xf32> to vector<34x1xf32>
      %cst_11 = arith.constant 6.400000e+01 : f32
      %15 = vector.broadcast %cst_11 : f32 to vector<34x1xf32>
      %16 = arith.divf %14, %15 : vector<34x1xf32>
      %17 = vector.broadcast %16 : vector<34x1xf32> to vector<34x64xf32>
      %18 = arith.subf %12, %17 : vector<34x64xf32>
      %19 = arith.mulf %18, %18 : vector<34x64xf32>
      %cst_12 = arith.constant dense<0.000000e+00> : vector<34xf32>
      %20 = vector.multi_reduction <add>, %19, %cst_12 [1] : vector<34x64xf32> to vector<34xf32>
      %21 = vector.shape_cast %20 : vector<34xf32> to vector<34x1xf32>
      %cst_13 = arith.constant 6.400000e+01 : f32
      %22 = vector.broadcast %cst_13 : f32 to vector<34x1xf32>
      %23 = arith.divf %21, %22 : vector<34x1xf32>
      %cst_14 = arith.constant 9.99999974E-6 : f32
      %24 = vector.broadcast %cst_14 : f32 to vector<34x1xf32>
      %25 = arith.addf %23, %24 : vector<34x1xf32>
      %26 = math.rsqrt %25 : vector<34x1xf32>
      %27 = vector.broadcast %26 : vector<34x1xf32> to vector<34x64xf32>
      %28 = arith.mulf %18, %27 : vector<34x64xf32>
      %c0_15 = arith.constant 0 : index
      %c0_16 = arith.constant 0 : index
      %29 = vector.load %arg5[%c0_15, %c0_16] : memref<1x64xf32, #tpu.memory_space<vmem>>, vector<1x64xf32>
      %30 = vector.broadcast %29 : vector<1x64xf32> to vector<34x64xf32>
      %31 = arith.mulf %28, %30 : vector<34x64xf32>
      %c0_17 = arith.constant 0 : index
      %c0_18 = arith.constant 0 : index
      %32 = vector.load %arg6[%c0_17, %c0_18] : memref<1x64xf32, #tpu.memory_space<vmem>>, vector<1x64xf32>
      %33 = vector.broadcast %32 : vector<1x64xf32> to vector<34x64xf32>
      %34 = arith.addf %31, %33 : vector<34x64xf32>
      %35 = arith.truncf %34 : vector<34x64xf32> to vector<34x64xbf16>
      %c0_19 = arith.constant 0 : index
      %c0_20 = arith.constant 0 : index
      %36 = vector.load %arg8[%c0_19, %c0_20] : memref<34x64xbf16, #tpu.memory_space<vmem>>, vector<34x64xbf16>
      tpu.vector_store %arg8[%c0_19, %c0_20], %35 {strides = array<i32>} : memref<34x64xbf16, #tpu.memory_space<vmem>>, vector<34x64xbf16>,
    } else {
    }
    %c0 = arith.constant 0 : index
    %c0_1 = arith.constant 0 : index
    %3 = vector.load %arg8[%c0, %c0_1] : memref<34x64xbf16, #tpu.memory_space<vmem>>, vector<34x64xbf16>
    %c0_2 = arith.constant 0 : index
    %c0_3 = arith.constant 0 : index
    %4 = vector.load %arg3[%c0_2, %c0_3] : memref<64x192xbf16, #tpu.memory_space<vmem>>, vector<64x192xbf16>
    %cst = arith.constant dense<0.000000e+00> : vector<34x192xf32>
    %5 = tpu.matmul %3, %4, %cst {dimension_numbers = #tpu.dot_dimension_numbers<[1], [0], [0], [1], [0, 0, 1, 1], [], []>} : vector<34x64xbf16>, vector<64x192xbf16>, vector<34x192xf32> -> vector<34x192xf32>
    %c0_4 = arith.constant 0 : index
    %c0_5 = arith.constant 0 : index
    %6 = vector.load %arg4[%c0_4, %c0_5] : memref<1x192xf32, #tpu.memory_space<vmem>>, vector<1x192xf32>
    %7 = vector.broadcast %6 : vector<1x192xf32> to vector<34x192xf32>
    %8 = arith.addf %5, %7 : vector<34x192xf32>
    %9 = arith.truncf %8 : vector<34x192xf32> to vector<34x192xbf16>
    %c0_6 = arith.constant 0 : index
    %c0_7 = arith.constant 0 : index
    %10 = vector.load %arg7[%c0_6, %c0_7] : memref<34x192xbf16, #tpu.memory_space<vmem>>, vector<34x192xbf16>
    tpu.vector_store %arg7[%c0_6, %c0_7], %9 {strides = array<i32>} : memref<34x192xbf16, #tpu.memory_space<vmem>>, vector<34x192xbf16>,
    return
  }
  func.func @transform_0(%arg0: i32, %arg1: i32) -> (i32, i32) {
    %c0_i32 = arith.constant 0 : i32
    %c0_i32_0 = arith.constant 0 : i32
    return %arg0, %c0_i32 : i32, i32
  }
  func.func @transform_1(%arg0: i32, %arg1: i32) -> (i32, i32) {
    %c0_i32 = arith.constant 0 : i32
    %c0_i32_0 = arith.constant 0 : i32
    return %c0_i32, %arg1 : i32, i32
  }
  func.func @transform_2(%arg0: i32, %arg1: i32) -> (i32, i32) {
    %c0_i32 = arith.constant 0 : i32
    %c0_i32_0 = arith.constant 0 : i32
    return %c0_i32, %arg1 : i32, i32
  }
  func.func @transform_3(%arg0: i32, %arg1: i32) -> (i32, i32) {
    %c0_i32 = arith.constant 0 : i32
    %c0_i32_0 = arith.constant 0 : i32
    %c0_i32_1 = arith.constant 0 : i32
    return %c0_i32, %c0_i32_0 : i32, i32
  }
  func.func @transform_4(%arg0: i32, %arg1: i32) -> (i32, i32) {
    %c0_i32 = arith.constant 0 : i32
    %c0_i32_0 = arith.constant 0 : i32
    %c0_i32_1 = arith.constant 0 : i32
    return %c0_i32, %c0_i32_0 : i32, i32
  }
  func.func @transform_5(%arg0: i32, %arg1: i32) -> (i32, i32) {
    %c0_i32 = arith.constant 0 : i32
    return %arg0, %arg1 : i32, i32
  }
}

module attributes {stable_mosaic.version = 11 : i64} {
  func.func @_attention_kernel(%arg0: i32, %arg1: i32, %arg2: memref<1x1x17x64xbf16, #tpu.memory_space<vmem>>, %arg3: memref<1x1x17x64xbf16, #tpu.memory_space<vmem>>, %arg4: memref<1x1x17x64xbf16, #tpu.memory_space<vmem>>, %arg5: memref<1x17x64xbf16, #tpu.memory_space<vmem>>) attributes {dimension_semantics = [#tpu.dimension_semantics<parallel>, #tpu.dimension_semantics<parallel>], iteration_bounds = array<i64: 2, 1>, scalar_prefetch = 0 : i64, scratch_operands = 0 : i64, tpu.core_type = #tpu.core_type<tc>, window_params = [{transform_indices = @transform_0, window_bounds = array<i64: 1, 1, 17, 64>}, {transform_indices = @transform_1, window_bounds = array<i64: 1, 1, 17, 64>}, {transform_indices = @transform_2, window_bounds = array<i64: 1, 1, 17, 64>}, {transform_indices = @transform_3, window_bounds = array<i64: 1, 17, 64>}]} {
    %c0 = arith.constant 0 : index
    %c0_0 = arith.constant 0 : index
    %c0_1 = arith.constant 0 : index
    %c0_2 = arith.constant 0 : index
    %0 = vector.load %arg2[%c0, %c0_0, %c0_1, %c0_2] : memref<1x1x17x64xbf16, #tpu.memory_space<vmem>>, vector<1x1x17x64xbf16>
    %1 = vector.shape_cast %0 : vector<1x1x17x64xbf16> to vector<1x17x64xbf16>
    %cst = arith.constant 1.250000e-01 : bf16
    %2 = vector.broadcast %cst : bf16 to vector<1x17x64xbf16>
    %3 = arith.mulf %1, %2 : vector<1x17x64xbf16>
    %c0_3 = arith.constant 0 : index
    %c0_4 = arith.constant 0 : index
    %c0_5 = arith.constant 0 : index
    %c0_6 = arith.constant 0 : index
    %4 = vector.load %arg3[%c0_3, %c0_4, %c0_5, %c0_6] : memref<1x1x17x64xbf16, #tpu.memory_space<vmem>>, vector<1x1x17x64xbf16>
    %5 = vector.shape_cast %4 : vector<1x1x17x64xbf16> to vector<1x17x64xbf16>
    %c0_7 = arith.constant 0 : index
    %c0_8 = arith.constant 0 : index
    %c0_9 = arith.constant 0 : index
    %c0_10 = arith.constant 0 : index
    %6 = vector.load %arg4[%c0_7, %c0_8, %c0_9, %c0_10] : memref<1x1x17x64xbf16, #tpu.memory_space<vmem>>, vector<1x1x17x64xbf16>
    %7 = vector.shape_cast %6 : vector<1x1x17x64xbf16> to vector<1x17x64xbf16>
    %cst_11 = arith.constant dense<0.000000e+00> : vector<1x17x17xf32>
    %8 = tpu.matmul %3, %5, %cst_11 {dimension_numbers = #tpu.dot_dimension_numbers<[2], [2], [1], [1], [0, 0, 0, 1, 1, 1], [0], [0]>} : vector<1x17x64xbf16>, vector<1x17x64xbf16>, vector<1x17x17xf32> -> vector<1x17x17xf32>
    %cst_12 = arith.constant dense<0xFF800000> : vector<1x17xf32>
    %9 = vector.multi_reduction <maximumf>, %8, %cst_12 [2] : vector<1x17x17xf32> to vector<1x17xf32>
    %10 = vector.shape_cast %9 : vector<1x17xf32> to vector<1x17x1xf32>
    %11 = vector.broadcast %10 : vector<1x17x1xf32> to vector<1x17x17xf32>
    %12 = arith.subf %8, %11 : vector<1x17x17xf32>
    %13 = math.exp %12 : vector<1x17x17xf32>
    %cst_13 = arith.constant dense<0.000000e+00> : vector<1x17xf32>
    %14 = vector.multi_reduction <add>, %13, %cst_13 [2] : vector<1x17x17xf32> to vector<1x17xf32>
    %15 = vector.shape_cast %14 : vector<1x17xf32> to vector<1x17x1xf32>
    %16 = tpu.reciprocal %15 {approx = true} : vector<1x17x1xf32> -> vector<1x17x1xf32>
    %17 = vector.broadcast %16 : vector<1x17x1xf32> to vector<1x17x17xf32>
    %18 = arith.mulf %13, %17 : vector<1x17x17xf32>
    %19 = arith.truncf %18 : vector<1x17x17xf32> to vector<1x17x17xbf16>
    %cst_14 = arith.constant dense<0.000000e+00> : vector<1x17x64xf32>
    %20 = tpu.matmul %19, %7, %cst_14 {dimension_numbers = #tpu.dot_dimension_numbers<[2], [1], [1], [2], [0, 0, 0, 1, 1, 2], [0], [0]>} : vector<1x17x17xbf16>, vector<1x17x64xbf16>, vector<1x17x64xf32> -> vector<1x17x64xf32>
    %21 = vector.shape_cast %20 : vector<1x17x64xf32> to vector<17x64xf32>
    %22 = arith.truncf %21 : vector<17x64xf32> to vector<17x64xbf16>
    %c0_15 = arith.constant 0 : index
    %c0_16 = arith.constant 0 : index
    %c0_17 = arith.constant 0 : index
    %23 = vector.load %arg5[%c0_15, %c0_16, %c0_17] : memref<1x17x64xbf16, #tpu.memory_space<vmem>>, vector<1x17x64xbf16>
    %24 = vector.shape_cast %23 : vector<1x17x64xbf16> to vector<17x64xbf16>
    %25 = vector.shape_cast %22 : vector<17x64xbf16> to vector<1x17x64xbf16>
    tpu.vector_store %arg5[%c0_15, %c0_16, %c0_17], %25 {strides = array<i32>} : memref<1x17x64xbf16, #tpu.memory_space<vmem>>, vector<1x17x64xbf16>,
    return
  }
  func.func @transform_0(%arg0: i32, %arg1: i32) -> (i32, i32, i32, i32) {
    %c0_i32 = arith.constant 0 : i32
    %0 = arith.addi %c0_i32, %arg1 : i32
    %c0_i32_0 = arith.constant 0 : i32
    %c0_i32_1 = arith.constant 0 : i32
    %c0_i32_2 = arith.constant 0 : i32
    return %arg0, %0, %c0_i32_0, %c0_i32_1 : i32, i32, i32, i32
  }
  func.func @transform_1(%arg0: i32, %arg1: i32) -> (i32, i32, i32, i32) {
    %c1_i32 = arith.constant 1 : i32
    %0 = arith.addi %c1_i32, %arg1 : i32
    %c0_i32 = arith.constant 0 : i32
    %c0_i32_0 = arith.constant 0 : i32
    %c0_i32_1 = arith.constant 0 : i32
    return %arg0, %0, %c0_i32, %c0_i32_0 : i32, i32, i32, i32
  }
  func.func @transform_2(%arg0: i32, %arg1: i32) -> (i32, i32, i32, i32) {
    %c2_i32 = arith.constant 2 : i32
    %0 = arith.addi %c2_i32, %arg1 : i32
    %c0_i32 = arith.constant 0 : i32
    %c0_i32_0 = arith.constant 0 : i32
    %c0_i32_1 = arith.constant 0 : i32
    return %arg0, %0, %c0_i32, %c0_i32_0 : i32, i32, i32, i32
  }
  func.func @transform_3(%arg0: i32, %arg1: i32) -> (i32, i32, i32) {
    %c0_i32 = arith.constant 0 : i32
    %c0_i32_0 = arith.constant 0 : i32
    return %arg0, %c0_i32, %arg1 : i32, i32, i32
  }
}

module attributes {stable_mosaic.version = 11 : i64} {
  func.func @_fused_linear_kernel(%arg0: i32, %arg1: i32, %arg2: memref<34x64xbf16, #tpu.memory_space<vmem>>, %arg3: memref<64x256xbf16, #tpu.memory_space<vmem>>, %arg4: memref<1x256xf32, #tpu.memory_space<vmem>>, %arg5: memref<1x64xf32, #tpu.memory_space<vmem>>, %arg6: memref<1x64xf32, #tpu.memory_space<vmem>>, %arg7: memref<34x256xbf16, #tpu.memory_space<vmem>>, %arg8: memref<34x64xbf16, #tpu.memory_space<vmem>>) attributes {dimension_semantics = [#tpu.dimension_semantics<parallel>, #tpu.dimension_semantics<arbitrary>], iteration_bounds = array<i64: 1, 1>, scalar_prefetch = 0 : i64, scratch_operands = 1 : i64, tpu.core_type = #tpu.core_type<tc>, window_params = [{transform_indices = @transform_0, window_bounds = array<i64: 34, 64>}, {transform_indices = @transform_1, window_bounds = array<i64: 64, 256>}, {transform_indices = @transform_2, window_bounds = array<i64: 1, 256>}, {pipeline_mode = #tpu.pipeline_mode<synchronous>, transform_indices = @transform_3, window_bounds = array<i64: 1, 64>}, {pipeline_mode = #tpu.pipeline_mode<synchronous>, transform_indices = @transform_4, window_bounds = array<i64: 1, 64>}, {transform_indices = @transform_5, window_bounds = array<i64: 34, 256>}]} {
    %c0_i32 = arith.constant 0 : i32
    %0 = arith.cmpi eq, %arg1, %c0_i32 : i32
    %1 = arith.extui %0 : i1 to i32
    %c0_i32_0 = arith.constant 0 : i32
    %2 = arith.cmpi ne, %1, %c0_i32_0 : i32
    scf.if %2 {
      %c0_10 = arith.constant 0 : index
      %c0_11 = arith.constant 0 : index
      %19 = vector.load %arg2[%c0_10, %c0_11] : memref<34x64xbf16, #tpu.memory_space<vmem>>, vector<34x64xbf16>
      %20 = arith.extf %19 : vector<34x64xbf16> to vector<34x64xf32>
      %cst_12 = arith.constant dense<0.000000e+00> : vector<34xf32>
      %21 = vector.multi_reduction <add>, %20, %cst_12 [1] : vector<34x64xf32> to vector<34xf32>
      %22 = vector.shape_cast %21 : vector<34xf32> to vector<34x1xf32>
      %cst_13 = arith.constant 6.400000e+01 : f32
      %23 = vector.broadcast %cst_13 : f32 to vector<34x1xf32>
      %24 = arith.divf %22, %23 : vector<34x1xf32>
      %25 = vector.broadcast %24 : vector<34x1xf32> to vector<34x64xf32>
      %26 = arith.subf %20, %25 : vector<34x64xf32>
      %27 = arith.mulf %26, %26 : vector<34x64xf32>
      %cst_14 = arith.constant dense<0.000000e+00> : vector<34xf32>
      %28 = vector.multi_reduction <add>, %27, %cst_14 [1] : vector<34x64xf32> to vector<34xf32>
      %29 = vector.shape_cast %28 : vector<34xf32> to vector<34x1xf32>
      %cst_15 = arith.constant 6.400000e+01 : f32
      %30 = vector.broadcast %cst_15 : f32 to vector<34x1xf32>
      %31 = arith.divf %29, %30 : vector<34x1xf32>
      %cst_16 = arith.constant 9.99999974E-6 : f32
      %32 = vector.broadcast %cst_16 : f32 to vector<34x1xf32>
      %33 = arith.addf %31, %32 : vector<34x1xf32>
      %34 = math.rsqrt %33 : vector<34x1xf32>
      %35 = vector.broadcast %34 : vector<34x1xf32> to vector<34x64xf32>
      %36 = arith.mulf %26, %35 : vector<34x64xf32>
      %c0_17 = arith.constant 0 : index
      %c0_18 = arith.constant 0 : index
      %37 = vector.load %arg5[%c0_17, %c0_18] : memref<1x64xf32, #tpu.memory_space<vmem>>, vector<1x64xf32>
      %38 = vector.broadcast %37 : vector<1x64xf32> to vector<34x64xf32>
      %39 = arith.mulf %36, %38 : vector<34x64xf32>
      %c0_19 = arith.constant 0 : index
      %c0_20 = arith.constant 0 : index
      %40 = vector.load %arg6[%c0_19, %c0_20] : memref<1x64xf32, #tpu.memory_space<vmem>>, vector<1x64xf32>
      %41 = vector.broadcast %40 : vector<1x64xf32> to vector<34x64xf32>
      %42 = arith.addf %39, %41 : vector<34x64xf32>
      %43 = arith.truncf %42 : vector<34x64xf32> to vector<34x64xbf16>
      %c0_21 = arith.constant 0 : index
      %c0_22 = arith.constant 0 : index
      %44 = vector.load %arg8[%c0_21, %c0_22] : memref<34x64xbf16, #tpu.memory_space<vmem>>, vector<34x64xbf16>
      tpu.vector_store %arg8[%c0_21, %c0_22], %43 {strides = array<i32>} : memref<34x64xbf16, #tpu.memory_space<vmem>>, vector<34x64xbf16>,
    } else {
    }
    %c0 = arith.constant 0 : index
    %c0_1 = arith.constant 0 : index
    %3 = vector.load %arg8[%c0, %c0_1] : memref<34x64xbf16, #tpu.memory_space<vmem>>, vector<34x64xbf16>
    %c0_2 = arith.constant 0 : index
    %c0_3 = arith.constant 0 : index
    %4 = vector.load %arg3[%c0_2, %c0_3] : memref<64x256xbf16, #tpu.memory_space<vmem>>, vector<64x256xbf16>
    %cst = arith.constant dense<0.000000e+00> : vector<34x256xf32>
    %5 = tpu.matmul %3, %4, %cst {dimension_numbers = #tpu.dot_dimension_numbers<[1], [0], [0], [1], [0, 0, 1, 1], [], []>} : vector<34x64xbf16>, vector<64x256xbf16>, vector<34x256xf32> -> vector<34x256xf32>
    %c0_4 = arith.constant 0 : index
    %c0_5 = arith.constant 0 : index
    %6 = vector.load %arg4[%c0_4, %c0_5] : memref<1x256xf32, #tpu.memory_space<vmem>>, vector<1x256xf32>
    %7 = vector.broadcast %6 : vector<1x256xf32> to vector<34x256xf32>
    %8 = arith.addf %5, %7 : vector<34x256xf32>
    %cst_6 = arith.constant 1.702000e+00 : f32
    %9 = vector.broadcast %cst_6 : f32 to vector<34x256xf32>
    %10 = arith.mulf %9, %8 : vector<34x256xf32>
    %11 = arith.negf %10 : vector<34x256xf32>
    %12 = math.exp %11 : vector<34x256xf32>
    %cst_7 = arith.constant 1.000000e+00 : f32
    %13 = vector.broadcast %cst_7 : f32 to vector<34x256xf32>
    %14 = arith.addf %13, %12 : vector<34x256xf32>
    %15 = arith.divf %13, %14 : vector<34x256xf32>
    %16 = arith.mulf %8, %15 : vector<34x256xf32>
    %17 = arith.truncf %16 : vector<34x256xf32> to vector<34x256xbf16>
    %c0_8 = arith.constant 0 : index
    %c0_9 = arith.constant 0 : index
    %18 = vector.load %arg7[%c0_8, %c0_9] : memref<34x256xbf16, #tpu.memory_space<vmem>>, vector<34x256xbf16>
    tpu.vector_store %arg7[%c0_8, %c0_9], %17 {strides = array<i32>} : memref<34x256xbf16, #tpu.memory_space<vmem>>, vector<34x256xbf16>,
    return
  }
  func.func @transform_0(%arg0: i32, %arg1: i32) -> (i32, i32) {
    %c0_i32 = arith.constant 0 : i32
    %c0_i32_0 = arith.constant 0 : i32
    return %arg0, %c0_i32 : i32, i32
  }
  func.func @transform_1(%arg0: i32, %arg1: i32) -> (i32, i32) {
    %c0_i32 = arith.constant 0 : i32
    %c0_i32_0 = arith.constant 0 : i32
    return %c0_i32, %arg1 : i32, i32
  }
  func.func @transform_2(%arg0: i32, %arg1: i32) -> (i32, i32) {
    %c0_i32 = arith.constant 0 : i32
    %c0_i32_0 = arith.constant 0 : i32
    return %c0_i32, %arg1 : i32, i32
  }
  func.func @transform_3(%arg0: i32, %arg1: i32) -> (i32, i32) {
    %c0_i32 = arith.constant 0 : i32
    %c0_i32_0 = arith.constant 0 : i32
    %c0_i32_1 = arith.constant 0 : i32
    return %c0_i32, %c0_i32_0 : i32, i32
  }
  func.func @transform_4(%arg0: i32, %arg1: i32) -> (i32, i32) {
    %c0_i32 = arith.constant 0 : i32
    %c0_i32_0 = arith.constant 0 : i32
    %c0_i32_1 = arith.constant 0 : i32
    return %c0_i32, %c0_i32_0 : i32, i32
  }
  func.func @transform_5(%arg0: i32, %arg1: i32) -> (i32, i32) {
    %c0_i32 = arith.constant 0 : i32
    return %arg0, %arg1 : i32, i32
  }
}

module attributes {stable_mosaic.version = 11 : i64} {
  func.func @_fused_linear_kernel(%arg0: i32, %arg1: i32, %arg2: memref<34x256xbf16, #tpu.memory_space<vmem>>, %arg3: memref<256x64xbf16, #tpu.memory_space<vmem>>, %arg4: memref<1x64xf32, #tpu.memory_space<vmem>>, %arg5: memref<34x64xbf16, #tpu.memory_space<vmem>>, %arg6: memref<34x64xbf16, #tpu.memory_space<vmem>>) attributes {dimension_semantics = [#tpu.dimension_semantics<parallel>, #tpu.dimension_semantics<parallel>], iteration_bounds = array<i64: 1, 1>, scalar_prefetch = 0 : i64, scratch_operands = 0 : i64, tpu.core_type = #tpu.core_type<tc>, window_params = [{transform_indices = @transform_0, window_bounds = array<i64: 34, 256>}, {transform_indices = @transform_1, window_bounds = array<i64: 256, 64>}, {transform_indices = @transform_2, window_bounds = array<i64: 1, 64>}, {transform_indices = @transform_3, window_bounds = array<i64: 34, 64>}, {transform_indices = @transform_4, window_bounds = array<i64: 34, 64>}]} {
    %c0 = arith.constant 0 : index
    %c0_0 = arith.constant 0 : index
    %0 = vector.load %arg2[%c0, %c0_0] : memref<34x256xbf16, #tpu.memory_space<vmem>>, vector<34x256xbf16>
    %c0_1 = arith.constant 0 : index
    %c0_2 = arith.constant 0 : index
    %1 = vector.load %arg3[%c0_1, %c0_2] : memref<256x64xbf16, #tpu.memory_space<vmem>>, vector<256x64xbf16>
    %cst = arith.constant dense<0.000000e+00> : vector<34x64xf32>
    %2 = tpu.matmul %0, %1, %cst {dimension_numbers = #tpu.dot_dimension_numbers<[1], [0], [0], [1], [0, 0, 1, 1], [], []>} : vector<34x256xbf16>, vector<256x64xbf16>, vector<34x64xf32> -> vector<34x64xf32>
    %c0_3 = arith.constant 0 : index
    %c0_4 = arith.constant 0 : index
    %3 = vector.load %arg4[%c0_3, %c0_4] : memref<1x64xf32, #tpu.memory_space<vmem>>, vector<1x64xf32>
    %4 = vector.broadcast %3 : vector<1x64xf32> to vector<34x64xf32>
    %5 = arith.addf %2, %4 : vector<34x64xf32>
    %c0_5 = arith.constant 0 : index
    %c0_6 = arith.constant 0 : index
    %6 = vector.load %arg5[%c0_5, %c0_6] : memref<34x64xbf16, #tpu.memory_space<vmem>>, vector<34x64xbf16>
    %7 = arith.extf %6 : vector<34x64xbf16> to vector<34x64xf32>
    %8 = arith.addf %5, %7 : vector<34x64xf32>
    %9 = arith.truncf %8 : vector<34x64xf32> to vector<34x64xbf16>
    %c0_7 = arith.constant 0 : index
    %c0_8 = arith.constant 0 : index
    %10 = vector.load %arg6[%c0_7, %c0_8] : memref<34x64xbf16, #tpu.memory_space<vmem>>, vector<34x64xbf16>
    tpu.vector_store %arg6[%c0_7, %c0_8], %9 {strides = array<i32>} : memref<34x64xbf16, #tpu.memory_space<vmem>>, vector<34x64xbf16>,
    return
  }
  func.func @transform_0(%arg0: i32, %arg1: i32) -> (i32, i32) {
    %c0_i32 = arith.constant 0 : i32
    %c0_i32_0 = arith.constant 0 : i32
    return %arg0, %c0_i32 : i32, i32
  }
  func.func @transform_1(%arg0: i32, %arg1: i32) -> (i32, i32) {
    %c0_i32 = arith.constant 0 : i32
    %c0_i32_0 = arith.constant 0 : i32
    return %c0_i32, %arg1 : i32, i32
  }
  func.func @transform_2(%arg0: i32, %arg1: i32) -> (i32, i32) {
    %c0_i32 = arith.constant 0 : i32
    %c0_i32_0 = arith.constant 0 : i32
    return %c0_i32, %arg1 : i32, i32
  }
  func.func @transform_3(%arg0: i32, %arg1: i32) -> (i32, i32) {
    %c0_i32 = arith.constant 0 : i32
    return %arg0, %arg1 : i32, i32
  }
  func.func @transform_4(%arg0: i32, %arg1: i32) -> (i32, i32) {
    %c0_i32 = arith.constant 0 : i32
    return %arg0, %arg1 : i32, i32
  }
}

module attributes {stable_mosaic.version = 11 : i64} {
  func.func @_fused_linear_kernel(%arg0: i32, %arg1: i32, %arg2: memref<34x64xbf16, #tpu.memory_space<vmem>>, %arg3: memref<64x64xbf16, #tpu.memory_space<vmem>>, %arg4: memref<1x64xf32, #tpu.memory_space<vmem>>, %arg5: memref<34x64xbf16, #tpu.memory_space<vmem>>, %arg6: memref<34x64xbf16, #tpu.memory_space<vmem>>) attributes {dimension_semantics = [#tpu.dimension_semantics<parallel>, #tpu.dimension_semantics<parallel>], iteration_bounds = array<i64: 1, 1>, scalar_prefetch = 0 : i64, scratch_operands = 0 : i64, tpu.core_type = #tpu.core_type<tc>, window_params = [{transform_indices = @transform_0, window_bounds = array<i64: 34, 64>}, {transform_indices = @transform_1, window_bounds = array<i64: 64, 64>}, {transform_indices = @transform_2, window_bounds = array<i64: 1, 64>}, {transform_indices = @transform_3, window_bounds = array<i64: 34, 64>}, {transform_indices = @transform_4, window_bounds = array<i64: 34, 64>}]} {
    %c0 = arith.constant 0 : index
    %c0_0 = arith.constant 0 : index
    %0 = vector.load %arg2[%c0, %c0_0] : memref<34x64xbf16, #tpu.memory_space<vmem>>, vector<34x64xbf16>
    %c0_1 = arith.constant 0 : index
    %c0_2 = arith.constant 0 : index
    %1 = vector.load %arg3[%c0_1, %c0_2] : memref<64x64xbf16, #tpu.memory_space<vmem>>, vector<64x64xbf16>
    %cst = arith.constant dense<0.000000e+00> : vector<34x64xf32>
    %2 = tpu.matmul %0, %1, %cst {dimension_numbers = #tpu.dot_dimension_numbers<[1], [0], [0], [1], [0, 0, 1, 1], [], []>} : vector<34x64xbf16>, vector<64x64xbf16>, vector<34x64xf32> -> vector<34x64xf32>
    %c0_3 = arith.constant 0 : index
    %c0_4 = arith.constant 0 : index
    %3 = vector.load %arg4[%c0_3, %c0_4] : memref<1x64xf32, #tpu.memory_space<vmem>>, vector<1x64xf32>
    %4 = vector.broadcast %3 : vector<1x64xf32> to vector<34x64xf32>
    %5 = arith.addf %2, %4 : vector<34x64xf32>
    %c0_5 = arith.constant 0 : index
    %c0_6 = arith.constant 0 : index
    %6 = vector.load %arg5[%c0_5, %c0_6] : memref<34x64xbf16, #tpu.memory_space<vmem>>, vector<34x64xbf16>
    %7 = arith.extf %6 : vector<34x64xbf16> to vector<34x64xf32>
    %8 = arith.addf %5, %7 : vector<34x64xf32>
    %9 = arith.truncf %8 : vector<34x64xf32> to vector<34x64xbf16>
    %c0_7 = arith.constant 0 : index
    %c0_8 = arith.constant 0 : index
    %10 = vector.load %arg6[%c0_7, %c0_8] : memref<34x64xbf16, #tpu.memory_space<vmem>>, vector<34x64xbf16>
    tpu.vector_store %arg6[%c0_7, %c0_8], %9 {strides = array<i32>} : memref<34x64xbf16, #tpu.memory_space<vmem>>, vector<34x64xbf16>,
    return
  }
  func.func @transform_0(%arg0: i32, %arg1: i32) -> (i32, i32) {
    %c0_i32 = arith.constant 0 : i32
    %c0_i32_0 = arith.constant 0 : i32
    return %arg0, %c0_i32 : i32, i32
  }
  func.func @transform_1(%arg0: i32, %arg1: i32) -> (i32, i32) {
    %c0_i32 = arith.constant 0 : i32
    %c0_i32_0 = arith.constant 0 : i32
    return %c0_i32, %arg1 : i32, i32
  }
  func.func @transform_2(%arg0: i32, %arg1: i32) -> (i32, i32) {
    %c0_i32 = arith.constant 0 : i32
    %c0_i32_0 = arith.constant 0 : i32
    return %c0_i32, %arg1 : i32, i32
  }
  func.func @transform_3(%arg0: i32, %arg1: i32) -> (i32, i32) {
    %c0_i32 = arith.constant 0 : i32
    return %arg0, %arg1 : i32, i32
  }
  func.func @transform_4(%arg0: i32, %arg1: i32) -> (i32, i32) {
    %c0_i32 = arith.constant 0 : i32
    return %arg0, %arg1 : i32, i32
  }
}

module attributes {stable_mosaic.version = 11 : i64} {
  func.func @_fused_linear_kernel(%arg0: i32, %arg1: i32, %arg2: memref<2x64xbf16, #tpu.memory_space<vmem>>, %arg3: memref<64x32xbf16, #tpu.memory_space<vmem>>, %arg4: memref<1x64xf32, #tpu.memory_space<vmem>>, %arg5: memref<1x64xf32, #tpu.memory_space<vmem>>, %arg6: memref<2x32xf32, #tpu.memory_space<vmem>>, %arg7: memref<2x64xbf16, #tpu.memory_space<vmem>>) attributes {dimension_semantics = [#tpu.dimension_semantics<parallel>, #tpu.dimension_semantics<arbitrary>], iteration_bounds = array<i64: 1, 1>, scalar_prefetch = 0 : i64, scratch_operands = 1 : i64, tpu.core_type = #tpu.core_type<tc>, window_params = [{transform_indices = @transform_0, window_bounds = array<i64: 2, 64>}, {transform_indices = @transform_1, window_bounds = array<i64: 64, 32>}, {pipeline_mode = #tpu.pipeline_mode<synchronous>, transform_indices = @transform_2, window_bounds = array<i64: 1, 64>}, {pipeline_mode = #tpu.pipeline_mode<synchronous>, transform_indices = @transform_3, window_bounds = array<i64: 1, 64>}, {transform_indices = @transform_4, window_bounds = array<i64: 2, 32>}]} {
    %c0_i32 = arith.constant 0 : i32
    %0 = arith.cmpi eq, %arg1, %c0_i32 : i32
    %1 = arith.extui %0 : i1 to i32
    %c0_i32_0 = arith.constant 0 : i32
    %2 = arith.cmpi ne, %1, %c0_i32_0 : i32
    scf.if %2 {
      %c0_6 = arith.constant 0 : index
      %c0_7 = arith.constant 0 : index
      %7 = vector.load %arg2[%c0_6, %c0_7] : memref<2x64xbf16, #tpu.memory_space<vmem>>, vector<2x64xbf16>
      %8 = arith.extf %7 : vector<2x64xbf16> to vector<2x64xf32>
      %cst_8 = arith.constant dense<0.000000e+00> : vector<2xf32>
      %9 = vector.multi_reduction <add>, %8, %cst_8 [1] : vector<2x64xf32> to vector<2xf32>
      %10 = vector.shape_cast %9 : vector<2xf32> to vector<2x1xf32>
      %cst_9 = arith.constant 6.400000e+01 : f32
      %11 = vector.broadcast %cst_9 : f32 to vector<2x1xf32>
      %12 = arith.divf %10, %11 : vector<2x1xf32>
      %13 = vector.broadcast %12 : vector<2x1xf32> to vector<2x64xf32>
      %14 = arith.subf %8, %13 : vector<2x64xf32>
      %15 = arith.mulf %14, %14 : vector<2x64xf32>
      %cst_10 = arith.constant dense<0.000000e+00> : vector<2xf32>
      %16 = vector.multi_reduction <add>, %15, %cst_10 [1] : vector<2x64xf32> to vector<2xf32>
      %17 = vector.shape_cast %16 : vector<2xf32> to vector<2x1xf32>
      %cst_11 = arith.constant 6.400000e+01 : f32
      %18 = vector.broadcast %cst_11 : f32 to vector<2x1xf32>
      %19 = arith.divf %17, %18 : vector<2x1xf32>
      %cst_12 = arith.constant 9.99999974E-6 : f32
      %20 = vector.broadcast %cst_12 : f32 to vector<2x1xf32>
      %21 = arith.addf %19, %20 : vector<2x1xf32>
      %22 = math.rsqrt %21 : vector<2x1xf32>
      %23 = vector.broadcast %22 : vector<2x1xf32> to vector<2x64xf32>
      %24 = arith.mulf %14, %23 : vector<2x64xf32>
      %c0_13 = arith.constant 0 : index
      %c0_14 = arith.constant 0 : index
      %25 = vector.load %arg4[%c0_13, %c0_14] : memref<1x64xf32, #tpu.memory_space<vmem>>, vector<1x64xf32>
      %26 = vector.broadcast %25 : vector<1x64xf32> to vector<2x64xf32>
      %27 = arith.mulf %24, %26 : vector<2x64xf32>
      %c0_15 = arith.constant 0 : index
      %c0_16 = arith.constant 0 : index
      %28 = vector.load %arg5[%c0_15, %c0_16] : memref<1x64xf32, #tpu.memory_space<vmem>>, vector<1x64xf32>
      %29 = vector.broadcast %28 : vector<1x64xf32> to vector<2x64xf32>
      %30 = arith.addf %27, %29 : vector<2x64xf32>
      %31 = arith.truncf %30 : vector<2x64xf32> to vector<2x64xbf16>
      %c0_17 = arith.constant 0 : index
      %c0_18 = arith.constant 0 : index
      %32 = vector.load %arg7[%c0_17, %c0_18] : memref<2x64xbf16, #tpu.memory_space<vmem>>, vector<2x64xbf16>
      tpu.vector_store %arg7[%c0_17, %c0_18], %31 {strides = array<i32>} : memref<2x64xbf16, #tpu.memory_space<vmem>>, vector<2x64xbf16>,
    } else {
    }
    %c0 = arith.constant 0 : index
    %c0_1 = arith.constant 0 : index
    %3 = vector.load %arg7[%c0, %c0_1] : memref<2x64xbf16, #tpu.memory_space<vmem>>, vector<2x64xbf16>
    %c0_2 = arith.constant 0 : index
    %c0_3 = arith.constant 0 : index
    %4 = vector.load %arg3[%c0_2, %c0_3] : memref<64x32xbf16, #tpu.memory_space<vmem>>, vector<64x32xbf16>
    %cst = arith.constant dense<0.000000e+00> : vector<2x32xf32>
    %5 = tpu.matmul %3, %4, %cst {dimension_numbers = #tpu.dot_dimension_numbers<[1], [0], [0], [1], [0, 0, 1, 1], [], []>} : vector<2x64xbf16>, vector<64x32xbf16>, vector<2x32xf32> -> vector<2x32xf32>
    %c0_4 = arith.constant 0 : index
    %c0_5 = arith.constant 0 : index
    %6 = vector.load %arg6[%c0_4, %c0_5] : memref<2x32xf32, #tpu.memory_space<vmem>>, vector<2x32xf32>
    tpu.vector_store %arg6[%c0_4, %c0_5], %5 {strides = array<i32>} : memref<2x32xf32, #tpu.memory_space<vmem>>, vector<2x32xf32>,
    return
  }
  func.func @transform_0(%arg0: i32, %arg1: i32) -> (i32, i32) {
    %c0_i32 = arith.constant 0 : i32
    %c0_i32_0 = arith.constant 0 : i32
    return %arg0, %c0_i32 : i32, i32
  }
  func.func @transform_1(%arg0: i32, %arg1: i32) -> (i32, i32) {
    %c0_i32 = arith.constant 0 : i32
    %c0_i32_0 = arith.constant 0 : i32
    return %c0_i32, %arg1 : i32, i32
  }
  func.func @transform_2(%arg0: i32, %arg1: i32) -> (i32, i32) {
    %c0_i32 = arith.constant 0 : i32
    %c0_i32_0 = arith.constant 0 : i32
    %c0_i32_1 = arith.constant 0 : i32
    return %c0_i32, %c0_i32_0 : i32, i32
  }
  func.func @transform_3(%arg0: i32, %arg1: i32) -> (i32, i32) {
    %c0_i32 = arith.constant 0 : i32
    %c0_i32_0 = arith.constant 0 : i32
    %c0_i32_1 = arith.constant 0 : i32
    return %c0_i32, %c0_i32_0 : i32, i32
  }
  func.func @transform_4(%arg0: i32, %arg1: i32) -> (i32, i32) {
    %c0_i32 = arith.constant 0 : i32
    return %arg0, %arg1 : i32, i32
  }
}

module attributes {stable_mosaic.version = 11 : i64} {
  func.func @_fused_linear_kernel(%arg0: i32, %arg1: i32, %arg2: memref<16x32xbf16, #tpu.memory_space<vmem>>, %arg3: memref<32x96xbf16, #tpu.memory_space<vmem>>, %arg4: memref<1x96xf32, #tpu.memory_space<vmem>>, %arg5: memref<1x32xf32, #tpu.memory_space<vmem>>, %arg6: memref<1x32xf32, #tpu.memory_space<vmem>>, %arg7: memref<16x96xbf16, #tpu.memory_space<vmem>>, %arg8: memref<16x32xbf16, #tpu.memory_space<vmem>>) attributes {dimension_semantics = [#tpu.dimension_semantics<parallel>, #tpu.dimension_semantics<arbitrary>], iteration_bounds = array<i64: 1, 1>, scalar_prefetch = 0 : i64, scratch_operands = 1 : i64, tpu.core_type = #tpu.core_type<tc>, window_params = [{transform_indices = @transform_0, window_bounds = array<i64: 16, 32>}, {transform_indices = @transform_1, window_bounds = array<i64: 32, 96>}, {transform_indices = @transform_2, window_bounds = array<i64: 1, 96>}, {pipeline_mode = #tpu.pipeline_mode<synchronous>, transform_indices = @transform_3, window_bounds = array<i64: 1, 32>}, {pipeline_mode = #tpu.pipeline_mode<synchronous>, transform_indices = @transform_4, window_bounds = array<i64: 1, 32>}, {transform_indices = @transform_5, window_bounds = array<i64: 16, 96>}]} {
    %c0_i32 = arith.constant 0 : i32
    %0 = arith.cmpi eq, %arg1, %c0_i32 : i32
    %1 = arith.extui %0 : i1 to i32
    %c0_i32_0 = arith.constant 0 : i32
    %2 = arith.cmpi ne, %1, %c0_i32_0 : i32
    scf.if %2 {
      %c0_8 = arith.constant 0 : index
      %c0_9 = arith.constant 0 : index
      %11 = vector.load %arg2[%c0_8, %c0_9] : memref<16x32xbf16, #tpu.memory_space<vmem>>, vector<16x32xbf16>
      %12 = arith.extf %11 : vector<16x32xbf16> to vector<16x32xf32>
      %cst_10 = arith.constant dense<0.000000e+00> : vector<16xf32>
      %13 = vector.multi_reduction <add>, %12, %cst_10 [1] : vector<16x32xf32> to vector<16xf32>
      %14 = vector.shape_cast %13 : vector<16xf32> to vector<16x1xf32>
      %cst_11 = arith.constant 3.200000e+01 : f32
      %15 = vector.broadcast %cst_11 : f32 to vector<16x1xf32>
      %16 = arith.divf %14, %15 : vector<16x1xf32>
      %17 = vector.broadcast %16 : vector<16x1xf32> to vector<16x32xf32>
      %18 = arith.subf %12, %17 : vector<16x32xf32>
      %19 = arith.mulf %18, %18 : vector<16x32xf32>
      %cst_12 = arith.constant dense<0.000000e+00> : vector<16xf32>
      %20 = vector.multi_reduction <add>, %19, %cst_12 [1] : vector<16x32xf32> to vector<16xf32>
      %21 = vector.shape_cast %20 : vector<16xf32> to vector<16x1xf32>
      %cst_13 = arith.constant 3.200000e+01 : f32
      %22 = vector.broadcast %cst_13 : f32 to vector<16x1xf32>
      %23 = arith.divf %21, %22 : vector<16x1xf32>
      %cst_14 = arith.constant 9.99999974E-6 : f32
      %24 = vector.broadcast %cst_14 : f32 to vector<16x1xf32>
      %25 = arith.addf %23, %24 : vector<16x1xf32>
      %26 = math.rsqrt %25 : vector<16x1xf32>
      %27 = vector.broadcast %26 : vector<16x1xf32> to vector<16x32xf32>
      %28 = arith.mulf %18, %27 : vector<16x32xf32>
      %c0_15 = arith.constant 0 : index
      %c0_16 = arith.constant 0 : index
      %29 = vector.load %arg5[%c0_15, %c0_16] : memref<1x32xf32, #tpu.memory_space<vmem>>, vector<1x32xf32>
      %30 = vector.broadcast %29 : vector<1x32xf32> to vector<16x32xf32>
      %31 = arith.mulf %28, %30 : vector<16x32xf32>
      %c0_17 = arith.constant 0 : index
      %c0_18 = arith.constant 0 : index
      %32 = vector.load %arg6[%c0_17, %c0_18] : memref<1x32xf32, #tpu.memory_space<vmem>>, vector<1x32xf32>
      %33 = vector.broadcast %32 : vector<1x32xf32> to vector<16x32xf32>
      %34 = arith.addf %31, %33 : vector<16x32xf32>
      %35 = arith.truncf %34 : vector<16x32xf32> to vector<16x32xbf16>
      %c0_19 = arith.constant 0 : index
      %c0_20 = arith.constant 0 : index
      %36 = vector.load %arg8[%c0_19, %c0_20] : memref<16x32xbf16, #tpu.memory_space<vmem>>, vector<16x32xbf16>
      tpu.vector_store %arg8[%c0_19, %c0_20], %35 {strides = array<i32>} : memref<16x32xbf16, #tpu.memory_space<vmem>>, vector<16x32xbf16>,
    } else {
    }
    %c0 = arith.constant 0 : index
    %c0_1 = arith.constant 0 : index
    %3 = vector.load %arg8[%c0, %c0_1] : memref<16x32xbf16, #tpu.memory_space<vmem>>, vector<16x32xbf16>
    %c0_2 = arith.constant 0 : index
    %c0_3 = arith.constant 0 : index
    %4 = vector.load %arg3[%c0_2, %c0_3] : memref<32x96xbf16, #tpu.memory_space<vmem>>, vector<32x96xbf16>
    %cst = arith.constant dense<0.000000e+00> : vector<16x96xf32>
    %5 = tpu.matmul %3, %4, %cst {dimension_numbers = #tpu.dot_dimension_numbers<[1], [0], [0], [1], [0, 0, 1, 1], [], []>} : vector<16x32xbf16>, vector<32x96xbf16>, vector<16x96xf32> -> vector<16x96xf32>
    %c0_4 = arith.constant 0 : index
    %c0_5 = arith.constant 0 : index
    %6 = vector.load %arg4[%c0_4, %c0_5] : memref<1x96xf32, #tpu.memory_space<vmem>>, vector<1x96xf32>
    %7 = vector.broadcast %6 : vector<1x96xf32> to vector<16x96xf32>
    %8 = arith.addf %5, %7 : vector<16x96xf32>
    %9 = arith.truncf %8 : vector<16x96xf32> to vector<16x96xbf16>
    %c0_6 = arith.constant 0 : index
    %c0_7 = arith.constant 0 : index
    %10 = vector.load %arg7[%c0_6, %c0_7] : memref<16x96xbf16, #tpu.memory_space<vmem>>, vector<16x96xbf16>
    tpu.vector_store %arg7[%c0_6, %c0_7], %9 {strides = array<i32>} : memref<16x96xbf16, #tpu.memory_space<vmem>>, vector<16x96xbf16>,
    return
  }
  func.func @transform_0(%arg0: i32, %arg1: i32) -> (i32, i32) {
    %c0_i32 = arith.constant 0 : i32
    %c0_i32_0 = arith.constant 0 : i32
    return %arg0, %c0_i32 : i32, i32
  }
  func.func @transform_1(%arg0: i32, %arg1: i32) -> (i32, i32) {
    %c0_i32 = arith.constant 0 : i32
    %c0_i32_0 = arith.constant 0 : i32
    return %c0_i32, %arg1 : i32, i32
  }
  func.func @transform_2(%arg0: i32, %arg1: i32) -> (i32, i32) {
    %c0_i32 = arith.constant 0 : i32
    %c0_i32_0 = arith.constant 0 : i32
    return %c0_i32, %arg1 : i32, i32
  }
  func.func @transform_3(%arg0: i32, %arg1: i32) -> (i32, i32) {
    %c0_i32 = arith.constant 0 : i32
    %c0_i32_0 = arith.constant 0 : i32
    %c0_i32_1 = arith.constant 0 : i32
    return %c0_i32, %c0_i32_0 : i32, i32
  }
  func.func @transform_4(%arg0: i32, %arg1: i32) -> (i32, i32) {
    %c0_i32 = arith.constant 0 : i32
    %c0_i32_0 = arith.constant 0 : i32
    %c0_i32_1 = arith.constant 0 : i32
    return %c0_i32, %c0_i32_0 : i32, i32
  }
  func.func @transform_5(%arg0: i32, %arg1: i32) -> (i32, i32) {
    %c0_i32 = arith.constant 0 : i32
    return %arg0, %arg1 : i32, i32
  }
}

module attributes {stable_mosaic.version = 11 : i64} {
  func.func @_fused_linear_kernel(%arg0: i32, %arg1: i32, %arg2: memref<16x32xbf16, #tpu.memory_space<vmem>>, %arg3: memref<32x32xbf16, #tpu.memory_space<vmem>>, %arg4: memref<1x32xf32, #tpu.memory_space<vmem>>, %arg5: memref<16x32xbf16, #tpu.memory_space<vmem>>, %arg6: memref<16x32xbf16, #tpu.memory_space<vmem>>) attributes {dimension_semantics = [#tpu.dimension_semantics<parallel>, #tpu.dimension_semantics<parallel>], iteration_bounds = array<i64: 1, 1>, scalar_prefetch = 0 : i64, scratch_operands = 0 : i64, tpu.core_type = #tpu.core_type<tc>, window_params = [{transform_indices = @transform_0, window_bounds = array<i64: 16, 32>}, {transform_indices = @transform_1, window_bounds = array<i64: 32, 32>}, {transform_indices = @transform_2, window_bounds = array<i64: 1, 32>}, {transform_indices = @transform_3, window_bounds = array<i64: 16, 32>}, {transform_indices = @transform_4, window_bounds = array<i64: 16, 32>}]} {
    %c0 = arith.constant 0 : index
    %c0_0 = arith.constant 0 : index
    %0 = vector.load %arg2[%c0, %c0_0] : memref<16x32xbf16, #tpu.memory_space<vmem>>, vector<16x32xbf16>
    %c0_1 = arith.constant 0 : index
    %c0_2 = arith.constant 0 : index
    %1 = vector.load %arg3[%c0_1, %c0_2] : memref<32x32xbf16, #tpu.memory_space<vmem>>, vector<32x32xbf16>
    %cst = arith.constant dense<0.000000e+00> : vector<16x32xf32>
    %2 = tpu.matmul %0, %1, %cst {dimension_numbers = #tpu.dot_dimension_numbers<[1], [0], [0], [1], [0, 0, 1, 1], [], []>} : vector<16x32xbf16>, vector<32x32xbf16>, vector<16x32xf32> -> vector<16x32xf32>
    %c0_3 = arith.constant 0 : index
    %c0_4 = arith.constant 0 : index
    %3 = vector.load %arg4[%c0_3, %c0_4] : memref<1x32xf32, #tpu.memory_space<vmem>>, vector<1x32xf32>
    %4 = vector.broadcast %3 : vector<1x32xf32> to vector<16x32xf32>
    %5 = arith.addf %2, %4 : vector<16x32xf32>
    %c0_5 = arith.constant 0 : index
    %c0_6 = arith.constant 0 : index
    %6 = vector.load %arg5[%c0_5, %c0_6] : memref<16x32xbf16, #tpu.memory_space<vmem>>, vector<16x32xbf16>
    %7 = arith.extf %6 : vector<16x32xbf16> to vector<16x32xf32>
    %8 = arith.addf %5, %7 : vector<16x32xf32>
    %9 = arith.truncf %8 : vector<16x32xf32> to vector<16x32xbf16>
    %c0_7 = arith.constant 0 : index
    %c0_8 = arith.constant 0 : index
    %10 = vector.load %arg6[%c0_7, %c0_8] : memref<16x32xbf16, #tpu.memory_space<vmem>>, vector<16x32xbf16>
    tpu.vector_store %arg6[%c0_7, %c0_8], %9 {strides = array<i32>} : memref<16x32xbf16, #tpu.memory_space<vmem>>, vector<16x32xbf16>,
    return
  }
  func.func @transform_0(%arg0: i32, %arg1: i32) -> (i32, i32) {
    %c0_i32 = arith.constant 0 : i32
    %c0_i32_0 = arith.constant 0 : i32
    return %arg0, %c0_i32 : i32, i32
  }
  func.func @transform_1(%arg0: i32, %arg1: i32) -> (i32, i32) {
    %c0_i32 = arith.constant 0 : i32
    %c0_i32_0 = arith.constant 0 : i32
    return %c0_i32, %arg1 : i32, i32
  }
  func.func @transform_2(%arg0: i32, %arg1: i32) -> (i32, i32) {
    %c0_i32 = arith.constant 0 : i32
    %c0_i32_0 = arith.constant 0 : i32
    return %c0_i32, %arg1 : i32, i32
  }
  func.func @transform_3(%arg0: i32, %arg1: i32) -> (i32, i32) {
    %c0_i32 = arith.constant 0 : i32
    return %arg0, %arg1 : i32, i32
  }
  func.func @transform_4(%arg0: i32, %arg1: i32) -> (i32, i32) {
    %c0_i32 = arith.constant 0 : i32
    return %arg0, %arg1 : i32, i32
  }
}

module attributes {stable_mosaic.version = 11 : i64} {
  func.func @_attention_kernel(%arg0: i32, %arg1: i32, %arg2: memref<1x2x8x16xbf16, #tpu.memory_space<vmem>>, %arg3: memref<1x2x8x16xbf16, #tpu.memory_space<vmem>>, %arg4: memref<1x2x8x16xbf16, #tpu.memory_space<vmem>>, %arg5: memref<1x8x32xbf16, #tpu.memory_space<vmem>>) attributes {dimension_semantics = [#tpu.dimension_semantics<parallel>, #tpu.dimension_semantics<parallel>], iteration_bounds = array<i64: 2, 1>, scalar_prefetch = 0 : i64, scratch_operands = 0 : i64, tpu.core_type = #tpu.core_type<tc>, window_params = [{transform_indices = @transform_0, window_bounds = array<i64: 1, 2, 8, 16>}, {transform_indices = @transform_1, window_bounds = array<i64: 1, 2, 8, 16>}, {transform_indices = @transform_2, window_bounds = array<i64: 1, 2, 8, 16>}, {transform_indices = @transform_3, window_bounds = array<i64: 1, 8, 32>}]} {
    %c0 = arith.constant 0 : index
    %c0_0 = arith.constant 0 : index
    %c0_1 = arith.constant 0 : index
    %c0_2 = arith.constant 0 : index
    %0 = vector.load %arg2[%c0, %c0_0, %c0_1, %c0_2] : memref<1x2x8x16xbf16, #tpu.memory_space<vmem>>, vector<1x2x8x16xbf16>
    %1 = vector.shape_cast %0 : vector<1x2x8x16xbf16> to vector<2x8x16xbf16>
    %cst = arith.constant 2.500000e-01 : bf16
    %2 = vector.broadcast %cst : bf16 to vector<2x8x16xbf16>
    %3 = arith.mulf %1, %2 : vector<2x8x16xbf16>
    %c0_3 = arith.constant 0 : index
    %c0_4 = arith.constant 0 : index
    %c0_5 = arith.constant 0 : index
    %c0_6 = arith.constant 0 : index
    %4 = vector.load %arg3[%c0_3, %c0_4, %c0_5, %c0_6] : memref<1x2x8x16xbf16, #tpu.memory_space<vmem>>, vector<1x2x8x16xbf16>
    %5 = vector.shape_cast %4 : vector<1x2x8x16xbf16> to vector<2x8x16xbf16>
    %c0_7 = arith.constant 0 : index
    %c0_8 = arith.constant 0 : index
    %c0_9 = arith.constant 0 : index
    %c0_10 = arith.constant 0 : index
    %6 = vector.load %arg4[%c0_7, %c0_8, %c0_9, %c0_10] : memref<1x2x8x16xbf16, #tpu.memory_space<vmem>>, vector<1x2x8x16xbf16>
    %7 = vector.shape_cast %6 : vector<1x2x8x16xbf16> to vector<2x8x16xbf16>
    %cst_11 = arith.constant dense<0.000000e+00> : vector<2x8x8xf32>
    %8 = tpu.matmul %3, %5, %cst_11 {dimension_numbers = #tpu.dot_dimension_numbers<[2], [2], [1], [1], [0, 0, 0, 1, 1, 1], [0], [0]>} : vector<2x8x16xbf16>, vector<2x8x16xbf16>, vector<2x8x8xf32> -> vector<2x8x8xf32>
    %9 = tpu.iota {dimensions = array<i32: 1>} : vector<2x8x8xi32>
    %10 = tpu.iota {dimensions = array<i32: 2>} : vector<2x8x8xi32>
    %11 = arith.cmpi sgt, %10, %9 : vector<2x8x8xi32>
    %cst_12 = arith.constant 0xFF800000 : f32
    %12 = vector.broadcast %cst_12 : f32 to vector<2x8x8xf32>
    %13 = arith.select %11, %12, %8 : vector<2x8x8xi1>, vector<2x8x8xf32>
    %cst_13 = arith.constant dense<0xFF800000> : vector<2x8xf32>
    %14 = vector.multi_reduction <maximumf>, %13, %cst_13 [2] : vector<2x8x8xf32> to vector<2x8xf32>
    %15 = vector.shape_cast %14 : vector<2x8xf32> to vector<2x8x1xf32>
    %16 = vector.broadcast %15 : vector<2x8x1xf32> to vector<2x8x8xf32>
    %17 = arith.subf %13, %16 : vector<2x8x8xf32>
    %18 = math.exp %17 : vector<2x8x8xf32>
    %cst_14 = arith.constant dense<0.000000e+00> : vector<2x8xf32>
    %19 = vector.multi_reduction <add>, %18, %cst_14 [2] : vector<2x8x8xf32> to vector<2x8xf32>
    %20 = vector.shape_cast %19 : vector<2x8xf32> to vector<2x8x1xf32>
    %21 = tpu.reciprocal %20 {approx = true} : vector<2x8x1xf32> -> vector<2x8x1xf32>
    %22 = vector.broadcast %21 : vector<2x8x1xf32> to vector<2x8x8xf32>
    %23 = arith.mulf %18, %22 : vector<2x8x8xf32>
    %24 = arith.truncf %23 : vector<2x8x8xf32> to vector<2x8x8xbf16>
    %cst_15 = arith.constant dense<0.000000e+00> : vector<2x8x16xf32>
    %25 = tpu.matmul %24, %7, %cst_15 {dimension_numbers = #tpu.dot_dimension_numbers<[2], [1], [1], [2], [0, 0, 0, 1, 1, 2], [0], [0]>} : vector<2x8x8xbf16>, vector<2x8x16xbf16>, vector<2x8x16xf32> -> vector<2x8x16xf32>
    %26 = vector.extract_strided_slice %25 {offsets = [0, 0, 0], sizes = [1, 8, 16], strides = [1, 1, 1]} : vector<2x8x16xf32> to vector<1x8x16xf32>
    %27 = vector.shape_cast %26 : vector<1x8x16xf32> to vector<8x16xf32>
    %28 = vector.extract_strided_slice %25 {offsets = [1, 0, 0], sizes = [1, 8, 16], strides = [1, 1, 1]} : vector<2x8x16xf32> to vector<1x8x16xf32>
    %29 = vector.shape_cast %28 : vector<1x8x16xf32> to vector<8x16xf32>
    %30 = tpu.concatenate %27, %29 in 1 : vector<8x16xf32>, vector<8x16xf32> -> vector<8x32xf32>
    %31 = arith.truncf %30 : vector<8x32xf32> to vector<8x32xbf16>
    %c0_16 = arith.constant 0 : index
    %c0_17 = arith.constant 0 : index
    %c0_18 = arith.constant 0 : index
    %32 = vector.load %arg5[%c0_16, %c0_17, %c0_18] : memref<1x8x32xbf16, #tpu.memory_space<vmem>>, vector<1x8x32xbf16>
    %33 = vector.shape_cast %32 : vector<1x8x32xbf16> to vector<8x32xbf16>
    %34 = vector.shape_cast %31 : vector<8x32xbf16> to vector<1x8x32xbf16>
    tpu.vector_store %arg5[%c0_16, %c0_17, %c0_18], %34 {strides = array<i32>} : memref<1x8x32xbf16, #tpu.memory_space<vmem>>, vector<1x8x32xbf16>,
    return
  }
  func.func @transform_0(%arg0: i32, %arg1: i32) -> (i32, i32, i32, i32) {
    %c0_i32 = arith.constant 0 : i32
    %0 = arith.addi %c0_i32, %arg1 : i32
    %c0_i32_0 = arith.constant 0 : i32
    %c0_i32_1 = arith.constant 0 : i32
    %c0_i32_2 = arith.constant 0 : i32
    return %arg0, %0, %c0_i32_0, %c0_i32_1 : i32, i32, i32, i32
  }
  func.func @transform_1(%arg0: i32, %arg1: i32) -> (i32, i32, i32, i32) {
    %c1_i32 = arith.constant 1 : i32
    %0 = arith.addi %c1_i32, %arg1 : i32
    %c0_i32 = arith.constant 0 : i32
    %c0_i32_0 = arith.constant 0 : i32
    %c0_i32_1 = arith.constant 0 : i32
    return %arg0, %0, %c0_i32, %c0_i32_0 : i32, i32, i32, i32
  }
  func.func @transform_2(%arg0: i32, %arg1: i32) -> (i32, i32, i32, i32) {
    %c2_i32 = arith.constant 2 : i32
    %0 = arith.addi %c2_i32, %arg1 : i32
    %c0_i32 = arith.constant 0 : i32
    %c0_i32_0 = arith.constant 0 : i32
    %c0_i32_1 = arith.constant 0 : i32
    return %arg0, %0, %c0_i32, %c0_i32_0 : i32, i32, i32, i32
  }
  func.func @transform_3(%arg0: i32, %arg1: i32) -> (i32, i32, i32) {
    %c0_i32 = arith.constant 0 : i32
    %c0_i32_0 = arith.constant 0 : i32
    return %arg0, %c0_i32, %arg1 : i32, i32, i32
  }
}

module attributes {stable_mosaic.version = 11 : i64} {
  func.func @_fused_linear_kernel(%arg0: i32, %arg1: i32, %arg2: memref<16x32xbf16, #tpu.memory_space<vmem>>, %arg3: memref<32x128xbf16, #tpu.memory_space<vmem>>, %arg4: memref<1x128xf32, #tpu.memory_space<vmem>>, %arg5: memref<1x32xf32, #tpu.memory_space<vmem>>, %arg6: memref<1x32xf32, #tpu.memory_space<vmem>>, %arg7: memref<16x128xbf16, #tpu.memory_space<vmem>>, %arg8: memref<16x32xbf16, #tpu.memory_space<vmem>>) attributes {dimension_semantics = [#tpu.dimension_semantics<parallel>, #tpu.dimension_semantics<arbitrary>], iteration_bounds = array<i64: 1, 1>, scalar_prefetch = 0 : i64, scratch_operands = 1 : i64, tpu.core_type = #tpu.core_type<tc>, window_params = [{transform_indices = @transform_0, window_bounds = array<i64: 16, 32>}, {transform_indices = @transform_1, window_bounds = array<i64: 32, 128>}, {transform_indices = @transform_2, window_bounds = array<i64: 1, 128>}, {pipeline_mode = #tpu.pipeline_mode<synchronous>, transform_indices = @transform_3, window_bounds = array<i64: 1, 32>}, {pipeline_mode = #tpu.pipeline_mode<synchronous>, transform_indices = @transform_4, window_bounds = array<i64: 1, 32>}, {transform_indices = @transform_5, window_bounds = array<i64: 16, 128>}]} {
    %c0_i32 = arith.constant 0 : i32
    %0 = arith.cmpi eq, %arg1, %c0_i32 : i32
    %1 = arith.extui %0 : i1 to i32
    %c0_i32_0 = arith.constant 0 : i32
    %2 = arith.cmpi ne, %1, %c0_i32_0 : i32
    scf.if %2 {
      %c0_10 = arith.constant 0 : index
      %c0_11 = arith.constant 0 : index
      %19 = vector.load %arg2[%c0_10, %c0_11] : memref<16x32xbf16, #tpu.memory_space<vmem>>, vector<16x32xbf16>
      %20 = arith.extf %19 : vector<16x32xbf16> to vector<16x32xf32>
      %cst_12 = arith.constant dense<0.000000e+00> : vector<16xf32>
      %21 = vector.multi_reduction <add>, %20, %cst_12 [1] : vector<16x32xf32> to vector<16xf32>
      %22 = vector.shape_cast %21 : vector<16xf32> to vector<16x1xf32>
      %cst_13 = arith.constant 3.200000e+01 : f32
      %23 = vector.broadcast %cst_13 : f32 to vector<16x1xf32>
      %24 = arith.divf %22, %23 : vector<16x1xf32>
      %25 = vector.broadcast %24 : vector<16x1xf32> to vector<16x32xf32>
      %26 = arith.subf %20, %25 : vector<16x32xf32>
      %27 = arith.mulf %26, %26 : vector<16x32xf32>
      %cst_14 = arith.constant dense<0.000000e+00> : vector<16xf32>
      %28 = vector.multi_reduction <add>, %27, %cst_14 [1] : vector<16x32xf32> to vector<16xf32>
      %29 = vector.shape_cast %28 : vector<16xf32> to vector<16x1xf32>
      %cst_15 = arith.constant 3.200000e+01 : f32
      %30 = vector.broadcast %cst_15 : f32 to vector<16x1xf32>
      %31 = arith.divf %29, %30 : vector<16x1xf32>
      %cst_16 = arith.constant 9.99999974E-6 : f32
      %32 = vector.broadcast %cst_16 : f32 to vector<16x1xf32>
      %33 = arith.addf %31, %32 : vector<16x1xf32>
      %34 = math.rsqrt %33 : vector<16x1xf32>
      %35 = vector.broadcast %34 : vector<16x1xf32> to vector<16x32xf32>
      %36 = arith.mulf %26, %35 : vector<16x32xf32>
      %c0_17 = arith.constant 0 : index
      %c0_18 = arith.constant 0 : index
      %37 = vector.load %arg5[%c0_17, %c0_18] : memref<1x32xf32, #tpu.memory_space<vmem>>, vector<1x32xf32>
      %38 = vector.broadcast %37 : vector<1x32xf32> to vector<16x32xf32>
      %39 = arith.mulf %36, %38 : vector<16x32xf32>
      %c0_19 = arith.constant 0 : index
      %c0_20 = arith.constant 0 : index
      %40 = vector.load %arg6[%c0_19, %c0_20] : memref<1x32xf32, #tpu.memory_space<vmem>>, vector<1x32xf32>
      %41 = vector.broadcast %40 : vector<1x32xf32> to vector<16x32xf32>
      %42 = arith.addf %39, %41 : vector<16x32xf32>
      %43 = arith.truncf %42 : vector<16x32xf32> to vector<16x32xbf16>
      %c0_21 = arith.constant 0 : index
      %c0_22 = arith.constant 0 : index
      %44 = vector.load %arg8[%c0_21, %c0_22] : memref<16x32xbf16, #tpu.memory_space<vmem>>, vector<16x32xbf16>
      tpu.vector_store %arg8[%c0_21, %c0_22], %43 {strides = array<i32>} : memref<16x32xbf16, #tpu.memory_space<vmem>>, vector<16x32xbf16>,
    } else {
    }
    %c0 = arith.constant 0 : index
    %c0_1 = arith.constant 0 : index
    %3 = vector.load %arg8[%c0, %c0_1] : memref<16x32xbf16, #tpu.memory_space<vmem>>, vector<16x32xbf16>
    %c0_2 = arith.constant 0 : index
    %c0_3 = arith.constant 0 : index
    %4 = vector.load %arg3[%c0_2, %c0_3] : memref<32x128xbf16, #tpu.memory_space<vmem>>, vector<32x128xbf16>
    %cst = arith.constant dense<0.000000e+00> : vector<16x128xf32>
    %5 = tpu.matmul %3, %4, %cst {dimension_numbers = #tpu.dot_dimension_numbers<[1], [0], [0], [1], [0, 0, 1, 1], [], []>} : vector<16x32xbf16>, vector<32x128xbf16>, vector<16x128xf32> -> vector<16x128xf32>
    %c0_4 = arith.constant 0 : index
    %c0_5 = arith.constant 0 : index
    %6 = vector.load %arg4[%c0_4, %c0_5] : memref<1x128xf32, #tpu.memory_space<vmem>>, vector<1x128xf32>
    %7 = vector.broadcast %6 : vector<1x128xf32> to vector<16x128xf32>
    %8 = arith.addf %5, %7 : vector<16x128xf32>
    %cst_6 = arith.constant 1.702000e+00 : f32
    %9 = vector.broadcast %cst_6 : f32 to vector<16x128xf32>
    %10 = arith.mulf %9, %8 : vector<16x128xf32>
    %11 = arith.negf %10 : vector<16x128xf32>
    %12 = math.exp %11 : vector<16x128xf32>
    %cst_7 = arith.constant 1.000000e+00 : f32
    %13 = vector.broadcast %cst_7 : f32 to vector<16x128xf32>
    %14 = arith.addf %13, %12 : vector<16x128xf32>
    %15 = arith.divf %13, %14 : vector<16x128xf32>
    %16 = arith.mulf %8, %15 : vector<16x128xf32>
    %17 = arith.truncf %16 : vector<16x128xf32> to vector<16x128xbf16>
    %c0_8 = arith.constant 0 : index
    %c0_9 = arith.constant 0 : index
    %18 = vector.load %arg7[%c0_8, %c0_9] : memref<16x128xbf16, #tpu.memory_space<vmem>>, vector<16x128xbf16>
    tpu.vector_store %arg7[%c0_8, %c0_9], %17 {strides = array<i32>} : memref<16x128xbf16, #tpu.memory_space<vmem>>, vector<16x128xbf16>,
    return
  }
  func.func @transform_0(%arg0: i32, %arg1: i32) -> (i32, i32) {
    %c0_i32 = arith.constant 0 : i32
    %c0_i32_0 = arith.constant 0 : i32
    return %arg0, %c0_i32 : i32, i32
  }
  func.func @transform_1(%arg0: i32, %arg1: i32) -> (i32, i32) {
    %c0_i32 = arith.constant 0 : i32
    %c0_i32_0 = arith.constant 0 : i32
    return %c0_i32, %arg1 : i32, i32
  }
  func.func @transform_2(%arg0: i32, %arg1: i32) -> (i32, i32) {
    %c0_i32 = arith.constant 0 : i32
    %c0_i32_0 = arith.constant 0 : i32
    return %c0_i32, %arg1 : i32, i32
  }
  func.func @transform_3(%arg0: i32, %arg1: i32) -> (i32, i32) {
    %c0_i32 = arith.constant 0 : i32
    %c0_i32_0 = arith.constant 0 : i32
    %c0_i32_1 = arith.constant 0 : i32
    return %c0_i32, %c0_i32_0 : i32, i32
  }
  func.func @transform_4(%arg0: i32, %arg1: i32) -> (i32, i32) {
    %c0_i32 = arith.constant 0 : i32
    %c0_i32_0 = arith.constant 0 : i32
    %c0_i32_1 = arith.constant 0 : i32
    return %c0_i32, %c0_i32_0 : i32, i32
  }
  func.func @transform_5(%arg0: i32, %arg1: i32) -> (i32, i32) {
    %c0_i32 = arith.constant 0 : i32
    return %arg0, %arg1 : i32, i32
  }
}

module attributes {stable_mosaic.version = 11 : i64} {
  func.func @_fused_linear_kernel(%arg0: i32, %arg1: i32, %arg2: memref<16x128xbf16, #tpu.memory_space<vmem>>, %arg3: memref<128x32xbf16, #tpu.memory_space<vmem>>, %arg4: memref<1x32xf32, #tpu.memory_space<vmem>>, %arg5: memref<16x32xbf16, #tpu.memory_space<vmem>>, %arg6: memref<16x32xbf16, #tpu.memory_space<vmem>>) attributes {dimension_semantics = [#tpu.dimension_semantics<parallel>, #tpu.dimension_semantics<parallel>], iteration_bounds = array<i64: 1, 1>, scalar_prefetch = 0 : i64, scratch_operands = 0 : i64, tpu.core_type = #tpu.core_type<tc>, window_params = [{transform_indices = @transform_0, window_bounds = array<i64: 16, 128>}, {transform_indices = @transform_1, window_bounds = array<i64: 128, 32>}, {transform_indices = @transform_2, window_bounds = array<i64: 1, 32>}, {transform_indices = @transform_3, window_bounds = array<i64: 16, 32>}, {transform_indices = @transform_4, window_bounds = array<i64: 16, 32>}]} {
    %c0 = arith.constant 0 : index
    %c0_0 = arith.constant 0 : index
    %0 = vector.load %arg2[%c0, %c0_0] : memref<16x128xbf16, #tpu.memory_space<vmem>>, vector<16x128xbf16>
    %c0_1 = arith.constant 0 : index
    %c0_2 = arith.constant 0 : index
    %1 = vector.load %arg3[%c0_1, %c0_2] : memref<128x32xbf16, #tpu.memory_space<vmem>>, vector<128x32xbf16>
    %cst = arith.constant dense<0.000000e+00> : vector<16x32xf32>
    %2 = tpu.matmul %0, %1, %cst {dimension_numbers = #tpu.dot_dimension_numbers<[1], [0], [0], [1], [0, 0, 1, 1], [], []>} : vector<16x128xbf16>, vector<128x32xbf16>, vector<16x32xf32> -> vector<16x32xf32>
    %c0_3 = arith.constant 0 : index
    %c0_4 = arith.constant 0 : index
    %3 = vector.load %arg4[%c0_3, %c0_4] : memref<1x32xf32, #tpu.memory_space<vmem>>, vector<1x32xf32>
    %4 = vector.broadcast %3 : vector<1x32xf32> to vector<16x32xf32>
    %5 = arith.addf %2, %4 : vector<16x32xf32>
    %c0_5 = arith.constant 0 : index
    %c0_6 = arith.constant 0 : index
    %6 = vector.load %arg5[%c0_5, %c0_6] : memref<16x32xbf16, #tpu.memory_space<vmem>>, vector<16x32xbf16>
    %7 = arith.extf %6 : vector<16x32xbf16> to vector<16x32xf32>
    %8 = arith.addf %5, %7 : vector<16x32xf32>
    %9 = arith.truncf %8 : vector<16x32xf32> to vector<16x32xbf16>
    %c0_7 = arith.constant 0 : index
    %c0_8 = arith.constant 0 : index
    %10 = vector.load %arg6[%c0_7, %c0_8] : memref<16x32xbf16, #tpu.memory_space<vmem>>, vector<16x32xbf16>
    tpu.vector_store %arg6[%c0_7, %c0_8], %9 {strides = array<i32>} : memref<16x32xbf16, #tpu.memory_space<vmem>>, vector<16x32xbf16>,
    return
  }
  func.func @transform_0(%arg0: i32, %arg1: i32) -> (i32, i32) {
    %c0_i32 = arith.constant 0 : i32
    %c0_i32_0 = arith.constant 0 : i32
    return %arg0, %c0_i32 : i32, i32
  }
  func.func @transform_1(%arg0: i32, %arg1: i32) -> (i32, i32) {
    %c0_i32 = arith.constant 0 : i32
    %c0_i32_0 = arith.constant 0 : i32
    return %c0_i32, %arg1 : i32, i32
  }
  func.func @transform_2(%arg0: i32, %arg1: i32) -> (i32, i32) {
    %c0_i32 = arith.constant 0 : i32
    %c0_i32_0 = arith.constant 0 : i32
    return %c0_i32, %arg1 : i32, i32
  }
  func.func @transform_3(%arg0: i32, %arg1: i32) -> (i32, i32) {
    %c0_i32 = arith.constant 0 : i32
    return %arg0, %arg1 : i32, i32
  }
  func.func @transform_4(%arg0: i32, %arg1: i32) -> (i32, i32) {
    %c0_i32 = arith.constant 0 : i32
    return %arg0, %arg1 : i32, i32
  }
}

module attributes {stable_mosaic.version = 11 : i64} {
  func.func @_fused_linear_kernel(%arg0: i32, %arg1: i32, %arg2: memref<2x32xbf16, #tpu.memory_space<vmem>>, %arg3: memref<32x32xbf16, #tpu.memory_space<vmem>>, %arg4: memref<1x32xf32, #tpu.memory_space<vmem>>, %arg5: memref<1x32xf32, #tpu.memory_space<vmem>>, %arg6: memref<2x32xf32, #tpu.memory_space<vmem>>, %arg7: memref<2x32xbf16, #tpu.memory_space<vmem>>) attributes {dimension_semantics = [#tpu.dimension_semantics<parallel>, #tpu.dimension_semantics<arbitrary>], iteration_bounds = array<i64: 1, 1>, scalar_prefetch = 0 : i64, scratch_operands = 1 : i64, tpu.core_type = #tpu.core_type<tc>, window_params = [{transform_indices = @transform_0, window_bounds = array<i64: 2, 32>}, {transform_indices = @transform_1, window_bounds = array<i64: 32, 32>}, {pipeline_mode = #tpu.pipeline_mode<synchronous>, transform_indices = @transform_2, window_bounds = array<i64: 1, 32>}, {pipeline_mode = #tpu.pipeline_mode<synchronous>, transform_indices = @transform_3, window_bounds = array<i64: 1, 32>}, {transform_indices = @transform_4, window_bounds = array<i64: 2, 32>}]} {
    %c0_i32 = arith.constant 0 : i32
    %0 = arith.cmpi eq, %arg1, %c0_i32 : i32
    %1 = arith.extui %0 : i1 to i32
    %c0_i32_0 = arith.constant 0 : i32
    %2 = arith.cmpi ne, %1, %c0_i32_0 : i32
    scf.if %2 {
      %c0_6 = arith.constant 0 : index
      %c0_7 = arith.constant 0 : index
      %7 = vector.load %arg2[%c0_6, %c0_7] : memref<2x32xbf16, #tpu.memory_space<vmem>>, vector<2x32xbf16>
      %8 = arith.extf %7 : vector<2x32xbf16> to vector<2x32xf32>
      %cst_8 = arith.constant dense<0.000000e+00> : vector<2xf32>
      %9 = vector.multi_reduction <add>, %8, %cst_8 [1] : vector<2x32xf32> to vector<2xf32>
      %10 = vector.shape_cast %9 : vector<2xf32> to vector<2x1xf32>
      %cst_9 = arith.constant 3.200000e+01 : f32
      %11 = vector.broadcast %cst_9 : f32 to vector<2x1xf32>
      %12 = arith.divf %10, %11 : vector<2x1xf32>
      %13 = vector.broadcast %12 : vector<2x1xf32> to vector<2x32xf32>
      %14 = arith.subf %8, %13 : vector<2x32xf32>
      %15 = arith.mulf %14, %14 : vector<2x32xf32>
      %cst_10 = arith.constant dense<0.000000e+00> : vector<2xf32>
      %16 = vector.multi_reduction <add>, %15, %cst_10 [1] : vector<2x32xf32> to vector<2xf32>
      %17 = vector.shape_cast %16 : vector<2xf32> to vector<2x1xf32>
      %cst_11 = arith.constant 3.200000e+01 : f32
      %18 = vector.broadcast %cst_11 : f32 to vector<2x1xf32>
      %19 = arith.divf %17, %18 : vector<2x1xf32>
      %cst_12 = arith.constant 9.99999974E-6 : f32
      %20 = vector.broadcast %cst_12 : f32 to vector<2x1xf32>
      %21 = arith.addf %19, %20 : vector<2x1xf32>
      %22 = math.rsqrt %21 : vector<2x1xf32>
      %23 = vector.broadcast %22 : vector<2x1xf32> to vector<2x32xf32>
      %24 = arith.mulf %14, %23 : vector<2x32xf32>
      %c0_13 = arith.constant 0 : index
      %c0_14 = arith.constant 0 : index
      %25 = vector.load %arg4[%c0_13, %c0_14] : memref<1x32xf32, #tpu.memory_space<vmem>>, vector<1x32xf32>
      %26 = vector.broadcast %25 : vector<1x32xf32> to vector<2x32xf32>
      %27 = arith.mulf %24, %26 : vector<2x32xf32>
      %c0_15 = arith.constant 0 : index
      %c0_16 = arith.constant 0 : index
      %28 = vector.load %arg5[%c0_15, %c0_16] : memref<1x32xf32, #tpu.memory_space<vmem>>, vector<1x32xf32>
      %29 = vector.broadcast %28 : vector<1x32xf32> to vector<2x32xf32>
      %30 = arith.addf %27, %29 : vector<2x32xf32>
      %31 = arith.truncf %30 : vector<2x32xf32> to vector<2x32xbf16>
      %c0_17 = arith.constant 0 : index
      %c0_18 = arith.constant 0 : index
      %32 = vector.load %arg7[%c0_17, %c0_18] : memref<2x32xbf16, #tpu.memory_space<vmem>>, vector<2x32xbf16>
      tpu.vector_store %arg7[%c0_17, %c0_18], %31 {strides = array<i32>} : memref<2x32xbf16, #tpu.memory_space<vmem>>, vector<2x32xbf16>,
    } else {
    }
    %c0 = arith.constant 0 : index
    %c0_1 = arith.constant 0 : index
    %3 = vector.load %arg7[%c0, %c0_1] : memref<2x32xbf16, #tpu.memory_space<vmem>>, vector<2x32xbf16>
    %c0_2 = arith.constant 0 : index
    %c0_3 = arith.constant 0 : index
    %4 = vector.load %arg3[%c0_2, %c0_3] : memref<32x32xbf16, #tpu.memory_space<vmem>>, vector<32x32xbf16>
    %cst = arith.constant dense<0.000000e+00> : vector<2x32xf32>
    %5 = tpu.matmul %3, %4, %cst {dimension_numbers = #tpu.dot_dimension_numbers<[1], [0], [0], [1], [0, 0, 1, 1], [], []>} : vector<2x32xbf16>, vector<32x32xbf16>, vector<2x32xf32> -> vector<2x32xf32>
    %c0_4 = arith.constant 0 : index
    %c0_5 = arith.constant 0 : index
    %6 = vector.load %arg6[%c0_4, %c0_5] : memref<2x32xf32, #tpu.memory_space<vmem>>, vector<2x32xf32>
    tpu.vector_store %arg6[%c0_4, %c0_5], %5 {strides = array<i32>} : memref<2x32xf32, #tpu.memory_space<vmem>>, vector<2x32xf32>,
    return
  }
  func.func @transform_0(%arg0: i32, %arg1: i32) -> (i32, i32) {
    %c0_i32 = arith.constant 0 : i32
    %c0_i32_0 = arith.constant 0 : i32
    return %arg0, %c0_i32 : i32, i32
  }
  func.func @transform_1(%arg0: i32, %arg1: i32) -> (i32, i32) {
    %c0_i32 = arith.constant 0 : i32
    %c0_i32_0 = arith.constant 0 : i32
    return %c0_i32, %arg1 : i32, i32
  }
  func.func @transform_2(%arg0: i32, %arg1: i32) -> (i32, i32) {
    %c0_i32 = arith.constant 0 : i32
    %c0_i32_0 = arith.constant 0 : i32
    %c0_i32_1 = arith.constant 0 : i32
    return %c0_i32, %c0_i32_0 : i32, i32
  }
  func.func @transform_3(%arg0: i32, %arg1: i32) -> (i32, i32) {
    %c0_i32 = arith.constant 0 : i32
    %c0_i32_0 = arith.constant 0 : i32
    %c0_i32_1 = arith.constant 0 : i32
    return %c0_i32, %c0_i32_0 : i32, i32
  }
  func.func @transform_4(%arg0: i32, %arg1: i32) -> (i32, i32) {
    %c0_i32 = arith.constant 0 : i32
    return %arg0, %arg1 : i32, i32
  }
}

module attributes {stable_mosaic.version = 11 : i64} {
  func.func @_clip_logits_kernel(%arg0: i32, %arg1: i32, %arg2: memref<2x32xf32, #tpu.memory_space<vmem>>, %arg3: memref<2x32xf32, #tpu.memory_space<vmem>>, %arg4: memref<1x1xf32, #tpu.memory_space<smem>>, %arg5: memref<2x2xf32, #tpu.memory_space<vmem>>, %arg6: memref<2x32xf32, #tpu.memory_space<vmem>>) attributes {dimension_semantics = [#tpu.dimension_semantics<parallel>, #tpu.dimension_semantics<arbitrary>], iteration_bounds = array<i64: 1, 1>, scalar_prefetch = 0 : i64, scratch_operands = 0 : i64, tpu.core_type = #tpu.core_type<tc>, window_params = [{transform_indices = @transform_0, window_bounds = array<i64: 2, 32>}, {transform_indices = @transform_1, window_bounds = array<i64: 2, 32>}, {transform_indices = @transform_2, window_bounds = array<i64: 1, 1>}, {transform_indices = @transform_3, window_bounds = array<i64: 2, 2>}, {transform_indices = @transform_4, window_bounds = array<i64: 2, 32>}]} {
    %c0 = arith.constant 0 : index
    %c0_0 = arith.constant 0 : index
    %0 = vector.load %arg2[%c0, %c0_0] : memref<2x32xf32, #tpu.memory_space<vmem>>, vector<2x32xf32>
    %c0_1 = arith.constant 0 : index
    %c0_2 = arith.constant 0 : index
    %1 = vector.load %arg3[%c0_1, %c0_2] : memref<2x32xf32, #tpu.memory_space<vmem>>, vector<2x32xf32>
    %2 = arith.mulf %0, %0 : vector<2x32xf32>
    %cst = arith.constant dense<0.000000e+00> : vector<2xf32>
    %3 = vector.multi_reduction <add>, %2, %cst [1] : vector<2x32xf32> to vector<2xf32>
    %4 = vector.shape_cast %3 : vector<2xf32> to vector<2x1xf32>
    %5 = math.rsqrt %4 : vector<2x1xf32>
    %6 = vector.broadcast %5 : vector<2x1xf32> to vector<2x32xf32>
    %7 = arith.mulf %0, %6 : vector<2x32xf32>
    %8 = arith.mulf %1, %1 : vector<2x32xf32>
    %cst_3 = arith.constant dense<0.000000e+00> : vector<2xf32>
    %9 = vector.multi_reduction <add>, %8, %cst_3 [1] : vector<2x32xf32> to vector<2xf32>
    %10 = vector.shape_cast %9 : vector<2xf32> to vector<2x1xf32>
    %11 = math.rsqrt %10 : vector<2x1xf32>
    %12 = vector.broadcast %11 : vector<2x1xf32> to vector<2x32xf32>
    %13 = arith.mulf %1, %12 : vector<2x32xf32>
    %c0_4 = arith.constant 0 : index
    %c0_5 = arith.constant 0 : index
    %14 = memref.load %arg4[%c0_4, %c0_5] : memref<1x1xf32, #tpu.memory_space<smem>>
    %cst_6 = arith.constant dense<0.000000e+00> : vector<2x2xf32>
    %15 = tpu.matmul %7, %13, %cst_6 {dimension_numbers = #tpu.dot_dimension_numbers<[1], [1], [0], [0], [0, 0, 1, 0], [], []>} : vector<2x32xf32>, vector<2x32xf32>, vector<2x2xf32> -> vector<2x2xf32>
    %16 = vector.broadcast %14 : f32 to vector<2x2xf32>
    %17 = arith.mulf %16, %15 : vector<2x2xf32>
    %c0_7 = arith.constant 0 : index
    %c0_8 = arith.constant 0 : index
    %18 = vector.load %arg5[%c0_7, %c0_8] : memref<2x2xf32, #tpu.memory_space<vmem>>, vector<2x2xf32>
    tpu.vector_store %arg5[%c0_7, %c0_8], %17 {strides = array<i32>} : memref<2x2xf32, #tpu.memory_space<vmem>>, vector<2x2xf32>,
    %c0_i32 = arith.constant 0 : i32
    %19 = arith.cmpi eq, %arg1, %c0_i32 : i32
    %20 = arith.extui %19 : i1 to i32
    %c0_i32_9 = arith.constant 0 : i32
    %21 = arith.cmpi ne, %20, %c0_i32_9 : i32
    scf.if %21 {
      %c0_10 = arith.constant 0 : index
      %c0_11 = arith.constant 0 : index
      %22 = vector.load %arg6[%c0_10, %c0_11] : memref<2x32xf32, #tpu.memory_space<vmem>>, vector<2x32xf32>
      tpu.vector_store %arg6[%c0_10, %c0_11], %7 {strides = array<i32>} : memref<2x32xf32, #tpu.memory_space<vmem>>, vector<2x32xf32>,
    } else {
    }
    return
  }
  func.func @transform_0(%arg0: i32, %arg1: i32) -> (i32, i32) {
    %c0_i32 = arith.constant 0 : i32
    %c0_i32_0 = arith.constant 0 : i32
    return %arg0, %c0_i32 : i32, i32
  }
  func.func @transform_1(%arg0: i32, %arg1: i32) -> (i32, i32) {
    %c0_i32 = arith.constant 0 : i32
    %c0_i32_0 = arith.constant 0 : i32
    return %arg1, %c0_i32 : i32, i32
  }
  func.func @transform_2(%arg0: i32, %arg1: i32) -> (i32, i32) {
    %c0_i32 = arith.constant 0 : i32
    %c0_i32_0 = arith.constant 0 : i32
    %c0_i32_1 = arith.constant 0 : i32
    return %c0_i32, %c0_i32_0 : i32, i32
  }
  func.func @transform_3(%arg0: i32, %arg1: i32) -> (i32, i32) {
    %c0_i32 = arith.constant 0 : i32
    return %arg0, %arg1 : i32, i32
  }
  func.func @transform_4(%arg0: i32, %arg1: i32) -> (i32, i32) {
    %c0_i32 = arith.constant 0 : i32
    %c0_i32_0 = arith.constant 0 : i32
    return %arg0, %c0_i32 : i32, i32
  }
}

</mosaic_0001>

<bundles_post_ra>
// kernel: _lambda_.26
= control target key start
LH: loop header
LB: loop body
LE: loop exit
PB: predicated region body
PF: predicated region fallthrough
CT: control target
= control target key end

     0   :  { %vm24_vm0 = vcmask 523264   ;;  %vm37_vm1 = vcmask 517120   ;;  %vm137_vm2 = vcmask 519168   ;;  %vm142_vm3 = vcmask 516096   ;;  %s243_s0 = inlined_call_operand.vmem [shape: bf16[34,64], index: 0, kind: input, shape index: {}]   ;;  %s244_s1 = inlined_call_operand.vmem [shape: f32[1,64], index: 1, kind: input, shape index: {}]   ;;  %s245_s2 = inlined_call_operand.vmem [shape: f32[1,64], index: 2, kind: input, shape index: {}]   ;;  %s246_s3 = inlined_call_operand.vmem [shape: bf16[34,64], index: 3, kind: output, shape index: {}]  }
   0x1   :  { %v161_v0 = vld [vmem:[%s243_s0] sm:$0xff]   ;;  %v168_v1 = vld [vmem:[%s243_s0 + $0x8] sm:$0xff]   ;;  %v18_v6 = vld [vmem:[%s243_s0 + $0x10] sm:$0x1] }
   0x2   :  { %v162_v2 = vunpack.c.l.bf16 %v161_v0  ;;  %v166_v3 = vunpack.c.l.bf16 %v168_v1  ;;  %v163_v4 = vunpack.c.h.bf16 %v161_v0  ;;  %v167_v5 = vunpack.c.h.bf16 %v168_v1  ;;  %v148_v54 = vld [vmem:[%s244_s1] ss:$0 sm:$0xff] }
   0x3   :  { %v23_v11 = vunpack.c.l.bf16 %v18_v6  ;;  %v149_v56 = vld [vmem:[%s245_s2] ss:$0 sm:$0xff] }
   0x4   :  { %v25_v7 = vsel %vm24_vm0, %v162_v2, 0.0  ;;  %v31_v8 = vsel %vm24_vm0, %v166_v3, 0.0  ;;  %v28_v9 = vsel %vm24_vm0, %v163_v4, 0.0  ;;  %v34_v10 = vsel %vm24_vm0, %v167_v5, 0.0 }
   0x5   :  { %26 = vadd.xlane.f32.xlu0 %v25_v7  ;;  %32 = vadd.xlane.f32.xlu1 %v31_v8  ;;  %v38_v12 = vsel %vm37_vm1, %v23_v11, 0.0 }
   0x9   :  { %29 = vadd.xlane.f32.xlu0 %v28_v9  ;;  %35 = vadd.xlane.f32.xlu1 %v34_v10 }
   0xd   :  { %39 = vadd.xlane.f32.xlu0 %v38_v12 }
  0x92   :  { %v27_v13 = vpop.xlane.xlu0 %26  ;;  %v33_v14 = vpop.xlane.xlu1 %32 }
  0x93   :  { %v42_v15 = vmul.f32 0.015625, %v27_v13  ;;  %v44_v16 = vmul.f32 0.015625, %v33_v14 }
  0x95   :  { %v47_v17 = vsub.f32 %v162_v2, %v42_v15  ;;  %v49_v18 = vsub.f32 %v166_v3, %v44_v16 }
  0x96   :  { %v30_v19 = vpop.xlane.xlu0 %29  ;;  %v36_v20 = vpop.xlane.xlu1 %35 }
  0x97   :  { %v43_v21 = vmul.f32 0.015625, %v30_v19  ;;  %v45_v22 = vmul.f32 0.015625, %v36_v20  ;;  %v52_v23 = vmul.f32 %v47_v17, %v47_v17  ;;  %v54_v24 = vmul.f32 %v49_v18, %v49_v18 }
  0x99   :  { %v48_v25 = vsub.f32 %v163_v4, %v43_v21  ;;  %v50_v26 = vsub.f32 %v167_v5, %v45_v22  ;;  %v57_v27 = vsel %vm24_vm0, %v52_v23, 0.0  ;;  %v63_v30 = vsel %vm24_vm0, %v54_v24, 0.0 }
  0x9a   :  { %58 = vadd.xlane.f32.xlu1 %v57_v27  ;;  %v40_v28 = vpop.xlane.xlu0 %39 }
  0x9b   :  { %v46_v29 = vmul.f32 0.015625, %v40_v28  ;;  %v53_v31 = vmul.f32 %v48_v25, %v48_v25  ;;  %v55_v32 = vmul.f32 %v50_v26, %v50_v26 }
  0x9d   :  { %v51_v33 = vsub.f32 %v23_v11, %v46_v29  ;;  %v60_v34 = vsel %vm24_vm0, %v53_v31, 0.0  ;;  %v66_v35 = vsel %vm24_vm0, %v55_v32, 0.0 }
  0x9e   :  { %64 = vadd.xlane.f32.xlu1 %v63_v30  ;;  %61 = vadd.xlane.f32.xlu0 %v60_v34 }
  0x9f   :  { %v56_v36 = vmul.f32 %v51_v33, %v51_v33 }
  0xa1   :  { %v69_v37 = vsel %vm37_vm1, %v56_v36, 0.0 }
  0xa2   :  { %67 = vadd.xlane.f32.xlu0 %v66_v35  ;;  %70 = vadd.xlane.f32.xlu1 %v69_v37 }
 0x127   :  { %v59_v38 = vpop.xlane.xlu1 %58 }
 0x128   :  { %v72_v39 = vmul.f32 0.015625, %v59_v38 }
 0x12a   :  { %v77_v40 = vadd.f32 1e-05, %v72_v39 }
 0x12b   :  { %v65_v41 = vpop.xlane.xlu1 %64  ;;  %v62_v42 = vpop.xlane.xlu0 %61 }
 0x12c   :  { %169 = vrsqrt.f32 %v77_v40  ;;  %v74_v43 = vmul.f32 0.015625, %v65_v41  ;;  %v73_v44 = vmul.f32 0.015625, %v62_v42 }
 0x12e   :  { %v79_v45 = vadd.f32 1e-05, %v74_v43  ;;  %v78_v46 = vadd.f32 1e-05, %v73_v44 }
 0x12f   :  { %v71_v47 = vpop.xlane.xlu1 %70  ;;  %v68_v48 = vpop.xlane.xlu0 %67 }
 0x130   :  { %171 = vrsqrt.f32 %v79_v45  ;;  %v76_v49 = vmul.f32 0.015625, %v71_v47  ;;  %v75_v50 = vmul.f32 0.015625, %v68_v48 }
 0x131   :  { %173 = vrsqrt.f32 %v78_v46 }
 0x132   :  { %v81_v51 = vadd.f32 1e-05, %v76_v49  ;;  %v80_v52 = vadd.f32 1e-05, %v75_v50 }
 0x134   :  { %175 = vrsqrt.f32 %v81_v51 }
 0x135   :  { %177 = vrsqrt.f32 %v80_v52 }
 0x136   :  { %v170_v53 = vpop.eup %169 }
 0x137   :  { %v87_v55 = vmul.f32 %v170_v53, %v47_v17 }
 0x139   :  { %v99_v57 = vmul.f32 %v148_v54, %v87_v55 }
 0x13a   :  { %v172_v58 = vpop.eup %171 }
 0x13b   :  { %v174_v59 = vpop.eup %173  ;;  %v111_v60 = vadd.f32 %v149_v56, %v99_v57  ;;  %v89_v61 = vmul.f32 %v172_v58, %v49_v18 }
 0x13c   :  { %v88_v62 = vmul.f32 %v174_v59, %v48_v25 }
 0x13d   :  { %v155_v63 = vpack.c.bf16 %v111_v60, %v111_v60  ;;  %v101_v0 = vmul.f32 %v148_v54, %v89_v61 }
 0x13e   :  { %v176_v1 = vpop.eup %175  ;;  %v100_v2 = vmul.f32 %v148_v54, %v88_v62 }
 0x13f   :  { %v178_v3 = vpop.eup %177  ;;  %138 = vst.msk [vmem:[%s246_s3] sm:$0xf] %vm137_vm2, %v155_v63  ;;  %v113_v4 = vadd.f32 %v149_v56, %v101_v0  ;;  %v91_v5 = vmul.f32 %v176_v1, %v51_v33 }
 0x140   :  { %v112_v6 = vadd.f32 %v149_v56, %v100_v2  ;;  %v90_v7 = vmul.f32 %v178_v3, %v50_v26 }
 0x141   :  { %v157_v8 = vpack.c.bf16 %v113_v4, %v113_v4  ;;  %v103_v9 = vmul.f32 %v148_v54, %v91_v5 }
 0x142   :  { %v156_v10 = vpack.c.bf16 %v112_v6, %v112_v6  ;;  %v102_v11 = vmul.f32 %v148_v54, %v90_v7 }
 0x143   :  { %140 = vst.msk [vmem:[%s246_s3 + $0x8] sm:$0xf] %vm137_vm2, %v157_v8  ;;  %v115_v12 = vadd.f32 %v149_v56, %v103_v9 }
 0x144   :  { %139 = vst.msk [vmem:[%s246_s3 + $0x4] sm:$0xf] %vm137_vm2, %v156_v10  ;;  %v114_v13 = vadd.f32 %v149_v56, %v102_v11 }
 0x145   :  { %v159_v14 = vpack.c.bf16 %v115_v12, %v115_v12 }
 0x146   :  { %v158_v15 = vpack.c.bf16 %v114_v13, %v114_v13 }
 0x147   :  { %143 = vst.msk [vmem:[%s246_s3 + $0x10] sm:$0x1] %vm142_vm3, %v159_v14 }
 0x148   :  { %141 = vst.msk [vmem:[%s246_s3 + $0xc] sm:$0xf] %vm137_vm2, %v158_v15 }

// kernel: _lambda_.25
= control target key start
LH: loop header
LB: loop body
LE: loop exit
PB: predicated region body
PF: predicated region fallthrough
CT: control target
= control target key end

     0   :  { %vm50_vm0 = vcmask 392192   ;;  %vm122_vm1 = vcmask 519168   ;;  %s208_s1 = inlined_call_operand.vmem [shape: bf16[48,64], index: 1, kind: input, shape index: {}]   ;;  %s209_s0 = inlined_call_operand.vmem [shape: bf16[32,48], index: 0, kind: input, shape index: {}]   ;;  %s210_s2 = inlined_call_operand.vmem [shape: bf16[32,64], index: 2, kind: output, shape index: {}]  }
   0x1   :  { %v161_v0 = vld [vmem:[%s208_s1] sm:$0xff]   ;;  %v162_v1 = vld [vmem:[%s208_s1 + $0x8] sm:$0xff]   ;;  %v163_v3 = vld [vmem:[%s208_s1 + $0x10] sm:$0xff]  }
   0x2   :  { %151 = vmatprep.subr.bf16.mxu0 %v161_v0  ;;  %v164_v2 = vld [vmem:[%s209_s0] sm:$0xff]   ;;  %v165_v4 = vld [vmem:[%s209_s0 + $0x8] sm:$0xff]  }
   0x3   :  { %152 = vmatpush3.bf16.msra.mxu0 %v161_v0  ;;  %157 = vmatprep.mubr.msk.bf16.mxu0 %vm50_vm0, %v164_v2 }
   0x4   :  { %153 = vmatprep.subr.bf16.mxu0 %v162_v1 }
   0x7   :  { %154 = vmatpush3.bf16.msra.mxu0 %v162_v1 }
   0x8   :  { %155 = vmatprep.subr.bf16.mxu0 %v163_v3 }
   0xb   :  { %156 = vmatpush3.bf16.msra.mxu0 %v163_v3 }
   0xe   :  { %158 = vmatmul.mubr.msk.bf16.vlgmr.msra.gmra.mrb[0].mxu0 %vm50_vm0, %v165_v4 }
  0xe1   :  { %v159_v5 = vpop.f32.mrb[0].mxu0 }
  0xe2   :  { %v144_v6 = vpack.c.bf16 %v159_v5, %v159_v5  ;;  %v91_v7 = vpop.f32.mrb[1].mxu0 }
  0xe3   :  { %v142_v8 = vpack.c.bf16 %v91_v7, %v91_v7  ;;  %v160_v9 = vpop.f32.mrb[2].mxu0 }
  0xe4   :  { %125 = vst.msk [vmem:[%s210_s2 + $0x8] sm:$0xf] %vm122_vm1, %v144_v6  ;;  %v145_v10 = vpack.c.bf16 %v160_v9, %v160_v9  ;;  %v94_v11 = vpop.f32.mrb[3].mxu0 }
  0xe5   :  { %123 = vst.msk [vmem:[%s210_s2] sm:$0xf] %vm122_vm1, %v142_v8  ;;  %v143_v12 = vpack.c.bf16 %v94_v11, %v94_v11 }
  0xe6   :  { %126 = vst.msk [vmem:[%s210_s2 + $0xc] sm:$0xf] %vm122_vm1, %v145_v10 }
  0xe7   :  { %124 = vst.msk [vmem:[%s210_s2 + $0x4] sm:$0xf] %vm122_vm1, %v143_v12 }

// kernel: _lambda_.27
= control target key start
LH: loop header
LB: loop body
LE: loop exit
PB: predicated region body
PF: predicated region fallthrough
CT: control target
= control target key end

     0   :  { %vm35_vm0 = vcmask 523264   ;;  %vm48_vm1 = vcmask 517120   ;;  %v430_v46 = vmov 0   ;;  %vm148_vm2 = vcmask 519168   ;;  %s575_s0 = inlined_call_operand.vmem [shape: bf16[34,64], index: 0, kind: input, shape index: {}]   ;;  %s576_s1 = inlined_call_operand.vmem [shape: bf16[64,192], index: 1, kind: input, shape index: {}]   ;;  %s577_s3 = inlined_call_operand.vmem [shape: f32[1,64], index: 3, kind: input, shape index: {}]   ;;  %s578_s4 = inlined_call_operand.vmem [shape: f32[1,64], index: 4, kind: input, shape index: {}]   ;;  %s579_s2 = inlined_call_operand.vmem [shape: f32[1,192], index: 2, kind: input, shape index: {}]   ;;  %s580_s5 = inlined_call_operand.vmem [shape: bf16[34,192], index: 5, kind: output, shape index: {}]  }
   0x1   :  { %v395_v0 = vld [vmem:[%s575_s0 + $0x8] sm:$0xff]   ;;  %v388_v1 = vld [vmem:[%s575_s0] sm:$0xff]   ;;  %v29_v5 = vld [vmem:[%s575_s0 + $0x10] sm:$0x1]  ;;  %285 = vmatprep.mubr.bf16.mxu1 %v430_v46  ;;  %275 = vmatprep.mubr.bf16.mxu0 %v430_v46  ;;  %vm153_vm3 = vcmask 516096   ;;  %vm336_vm4 = vcmask 1043456  }
   0x2   :  { %v393_v2 = vunpack.c.l.bf16 %v395_v0  ;;  %v394_v3 = vunpack.c.h.bf16 %v395_v0  ;;  %v389_v4 = vunpack.c.l.bf16 %v388_v1  ;;  %v390_v6 = vunpack.c.h.bf16 %v388_v1  ;;  %v405_v38 = vld [vmem:[%s576_s1 + $0x4] ss:$8 sps:$4 sm:$0xff]   ;;  %v407_v39 = vld [vmem:[%s576_s1] ss:$8 sps:$4 sm:$0xff]   ;;  %v408_v40 = vld [vmem:[%s576_s1 + $0x14] ss:$8 sps:$4 sm:$0xff]  }
   0x3   :  { %v34_v10 = vunpack.c.l.bf16 %v29_v5  ;;  %396 = vmatprep.subr.bf16.mxu1 %v405_v38  ;;  %243 = vmatprep.subr.bf16.mxu0 %v405_v38  ;;  %v410_v41 = vld [vmem:[%s576_s1 + $0x10] ss:$8 sps:$4 sm:$0xff]   ;;  %v411_v42 = vld [vmem:[%s576_s1 + $0x24] ss:$8 sps:$4 sm:$0xff]   ;;  %v413_v43 = vld [vmem:[%s576_s1 + $0x20] ss:$8 sps:$4 sm:$0xff]  }
   0x4   :  { %v42_v7 = vsel %vm35_vm0, %v393_v2, 0.0  ;;  %v36_v8 = vsel %vm35_vm0, %v389_v4, 0.0  ;;  %v45_v9 = vsel %vm35_vm0, %v394_v3, 0.0  ;;  %v39_v11 = vsel %vm35_vm0, %v390_v6, 0.0  ;;  %400 = vmatpush1.bf16.msra.mxu1 %v407_v39  ;;  %244 = vmatpush1.bf16.msra.mxu0 %v407_v39  ;;  %v414_v44 = vld [vmem:[%s576_s1 + $0x34] ss:$8 sps:$4 sm:$0xff]  }
   0x5   :  { %43 = vadd.xlane.f32.xlu0 %v42_v7  ;;  %37 = vadd.xlane.f32.xlu1 %v36_v8  ;;  %v49_v12 = vsel %vm48_vm1, %v34_v10, 0.0  ;;  %v416_v45 = vld [vmem:[%s576_s1 + $0x30] ss:$8 sps:$4 sm:$0xff]   ;;  %v351_v63 = vld [vmem:[%s577_s3] ss:$0 sm:$0xff]  ;;  %vm337_vm5 = vcmask 523268  }
   0x6   :  { %397 = vmatprep.subr.bf16.mxu1 %v408_v40  ;;  %245 = vmatprep.subr.bf16.mxu0 %v408_v40  ;;  %v352_v1 = vld [vmem:[%s578_s4] ss:$0 sm:$0xff]  ;;  %vm548_vm6 = vmor %vm337_vm5, %vm336_vm4  ;;  %vm343_vm7 = vcmask 1040384   ;;  %vm344_vm8 = vcmask 520196  }
   0x7   :  { %vm345_vm9 = vmor %vm344_vm8, %vm343_vm7 }
   0x8   :  { %401 = vmatpush1.bf16.msra.mxu1 %v410_v41  ;;  %246 = vmatpush1.bf16.msra.mxu0 %v410_v41 }
   0x9   :  { %46 = vadd.xlane.f32.xlu0 %v45_v9  ;;  %40 = vadd.xlane.f32.xlu1 %v39_v11 }
   0xa   :  { %398 = vmatprep.subr.bf16.mxu1 %v411_v42  ;;  %247 = vmatprep.subr.bf16.mxu0 %v411_v42 }
   0xc   :  { %402 = vmatpush1.bf16.msra.mxu1 %v413_v43  ;;  %248 = vmatpush1.bf16.msra.mxu0 %v413_v43 }
   0xd   :  { %50 = vadd.xlane.f32.xlu0 %v49_v12  ;;  %399 = vmatprep.subr.bf16.mxu1 %v414_v44 }
   0xe   :  { %249 = vmatprep.subr.bf16.mxu0 %v414_v44 }
  0x10   :  { %403 = vmatpush1.bf16.msra.mxu1 %v416_v45  ;;  %250 = vmatpush1.bf16.msra.mxu0 %v416_v45 }
  0x92   :  { %v44_v13 = vpop.xlane.xlu0 %43  ;;  %v38_v14 = vpop.xlane.xlu1 %37 }
  0x93   :  { %v55_v15 = vmul.f32 0.015625, %v44_v13  ;;  %v53_v16 = vmul.f32 0.015625, %v38_v14 }
  0x95   :  { %v475_v17 = vsub.f32 %v393_v2, %v55_v15  ;;  %v477_v18 = vsub.f32 %v389_v4, %v53_v16 }
  0x96   :  { %v47_v19 = vpop.xlane.xlu0 %46  ;;  %v41_v20 = vpop.xlane.xlu1 %40 }
  0x97   :  { %v56_v21 = vmul.f32 0.015625, %v47_v19  ;;  %v65_v22 = vmul.f32 %v475_v17, %v475_v17  ;;  %v54_v23 = vmul.f32 0.015625, %v41_v20  ;;  %v63_v24 = vmul.f32 %v477_v18, %v477_v18 }
  0x99   :  { %v483_v25 = vsub.f32 %v394_v3, %v56_v21  ;;  %v74_v26 = vsel %vm35_vm0, %v65_v22, 0.0  ;;  %v486_v27 = vsub.f32 %v390_v6, %v54_v23  ;;  %v68_v31 = vsel %vm35_vm0, %v63_v24, 0.0 }
  0x9a   :  { %v51_v28 = vpop.xlane.xlu0 %50  ;;  %75 = vadd.xlane.f32.xlu1 %v74_v26 }
  0x9b   :  { %v57_v29 = vmul.f32 0.015625, %v51_v28  ;;  %v66_v30 = vmul.f32 %v483_v25, %v483_v25  ;;  %v64_v32 = vmul.f32 %v486_v27, %v486_v27  ;;  %v170_v28 = vlaneseq }
  0x9d   :  { %v493_v33 = vsub.f32 %v34_v10, %v57_v29  ;;  %v77_v34 = vsel %vm35_vm0, %v66_v30, 0.0  ;;  %v71_v36 = vsel %vm35_vm0, %v64_v32, 0.0  ;;  %v171_v29 = vshrl.u32 %v170_v28, 7 }
  0x9e   :  { %78 = vadd.xlane.f32.xlu0 %v77_v34  ;;  %69 = vadd.xlane.f32.xlu1 %v68_v31  ;;  %v168_v31 = vld [vmem:[%s579_s2] sm:$0x3] }
  0x9f   :  { %v67_v35 = vmul.f32 %v493_v33, %v493_v33  ;;  %v172_v30 = vsub.s32 0, %v171_v29  ;;  %v176_v32 = vsub.s32 1, %v171_v29 }
  0xa1   :  { %v80_v37 = vsel %vm48_vm1, %v67_v35, 0.0  ;;  %v177_v34 = vrot.slane %v168_v31, %v176_v32 }
  0xa2   :  { %81 = vadd.xlane.f32.xlu1 %v80_v37  ;;  %72 = vadd.xlane.f32.xlu0 %v71_v36 }
 0x127   :  { %v76_v47 = vpop.xlane.xlu1 %75 }
 0x128   :  { %v85_v48 = vmul.f32 0.015625, %v76_v47 }
 0x12a   :  { %v90_v49 = vadd.f32 1e-05, %v85_v48 }
 0x12b   :  { %v79_v50 = vpop.xlane.xlu0 %78  ;;  %v70_v51 = vpop.xlane.xlu1 %69 }
 0x12c   :  { %420 = vrsqrt.f32 %v90_v49  ;;  %v86_v52 = vmul.f32 0.015625, %v79_v50  ;;  %v83_v53 = vmul.f32 0.015625, %v70_v51 }
 0x12e   :  { %v91_v54 = vadd.f32 1e-05, %v86_v52  ;;  %v88_v55 = vadd.f32 1e-05, %v83_v53 }
 0x12f   :  { %v73_v56 = vpop.xlane.xlu0 %72  ;;  %v82_v57 = vpop.xlane.xlu1 %81 }
 0x130   :  { %422 = vrsqrt.f32 %v91_v54  ;;  %v84_v58 = vmul.f32 0.015625, %v73_v56  ;;  %v87_v59 = vmul.f32 0.015625, %v82_v57 }
 0x131   :  { %424 = vrsqrt.f32 %v88_v55 }
 0x132   :  { %v89_v60 = vadd.f32 1e-05, %v84_v58  ;;  %v92_v61 = vadd.f32 1e-05, %v87_v59 }
 0x134   :  { %426 = vrsqrt.f32 %v89_v60 }
 0x135   :  { %428 = vrsqrt.f32 %v92_v61 }
 0x136   :  { %v421_v62 = vpop.eup %420 }
 0x137   :  { %v100_v0 = vmul.f32 %v421_v62, %v475_v17 }
 0x139   :  { %v112_v2 = vmul.f32 %v351_v63, %v100_v0 }
 0x13a   :  { %v423_v3 = vpop.eup %422 }
 0x13b   :  { %v425_v4 = vpop.eup %424  ;;  %v124_v5 = vadd.f32 %v352_v1, %v112_v2  ;;  %v101_v6 = vmul.f32 %v423_v3, %v483_v25 }
 0x13c   :  { %v98_v7 = vmul.f32 %v425_v4, %v477_v18 }
 0x13d   :  { %v379_v8 = vpack.c.bf16 %v124_v5, %v124_v5  ;;  %v113_v9 = vmul.f32 %v351_v63, %v101_v6 }
 0x13e   :  { %v427_v10 = vpop.eup %426  ;;  %v110_v11 = vmul.f32 %v351_v63, %v98_v7 }
 0x13f   :  { %v429_v12 = vpop.eup %428  ;;  %151 = vst.msk [vmem:[#allocation2 + $0x8] sm:$0xf] %vm148_vm2, %v379_v8  ;;  %v125_v13 = vadd.f32 %v352_v1, %v113_v9  ;;  %v99_v14 = vmul.f32 %v427_v10, %v486_v27 }
 0x140   :  { %v122_v15 = vadd.f32 %v352_v1, %v110_v11  ;;  %v102_v16 = vmul.f32 %v429_v12, %v493_v33  ;;  %v173_v33 = vrot.slane %v168_v31, %v172_v30 }
 0x141   :  { %v380_v17 = vpack.c.bf16 %v125_v13, %v125_v13  ;;  %v111_v19 = vmul.f32 %v351_v63, %v99_v14 }
 0x142   :  { %v377_v20 = vpack.c.bf16 %v122_v15, %v122_v15  ;;  %v114_v21 = vmul.f32 %v351_v63, %v102_v16 }
 0x143   :  { %152 = vst.msk [vmem:[#allocation2 + $0xc] sm:$0xf] %vm148_vm2, %v380_v17  ;;  %v123_v18 = vadd.f32 %v352_v1, %v111_v19 }
 0x144   :  { %149 = vst.msk [vmem:[#allocation2] sm:$0xf] %vm148_vm2, %v377_v20  ;;  %v126_v22 = vadd.f32 %v352_v1, %v114_v21 }
 0x145   :  { %v378_v23 = vpack.c.bf16 %v123_v18, %v123_v18 }
 0x146   :  { %v381_v24 = vpack.c.bf16 %v126_v22, %v126_v22 }
 0x147   :  { %150 = vst.msk [vmem:[#allocation2 + $0x4] sm:$0xf] %vm148_vm2, %v378_v23 }
 0x148   :  { %154 = vst.msk [vmem:[#allocation2 + $0x10] sm:$0x1] %vm153_vm3, %v381_v24 }
 0x14a   :  { %v417_v25 = vld [vmem:[#allocation2 + $0x8] sm:$0xff]  }
 0x14b   :  { %370 = vmatmul.mubr.msk.bf16.vlgmr.msra.gmra.mrb[0].mxu1 %vm35_vm0, %v417_v25 }
 0x14c   :  { %295 = vmatprep.mubr.bf16.mxu1 %v430_v46 }
 0x14e   :  { %v418_v26 = vld [vmem:[#allocation2] sm:$0xff]  }
 0x14f   :  { %369 = vmatmul.mubr.msk.bf16.vlgmr.msra.gmra.mrb[0].mxu0 %vm35_vm0, %v418_v26  ;;  %v419_v27 = vld [vmem:[#allocation2 + $0x10] ss:$0 sps:$4 sm:$0x11]  }
 0x153   :  { %371 = vmatmul.mubr.msk.bf16.gmra.mrb[4].mxu1 %vm35_vm0, %v419_v27 }
 0x21e   :  { %v287_v35 = vpop.f32.mrb[0].mxu1 }
 0x21f   :  { %v288_v36 = vadd.f32 %v287_v35, %v173_v33  ;;  %v289_v37 = vpop.f32.mrb[1].mxu1 }
 0x220   :  { %v290_v38 = vadd.f32 %v289_v37, %v177_v34  ;;  %v291_v39 = vpop.f32.mrb[2].mxu1 }
 0x221   :  { %v292_v41 = vadd.f32 %v291_v39, %v173_v33  ;;  %v293_v42 = vpop.f32.mrb[3].mxu1 }
 0x222   :  { %v384_v43 = vpack.c.bf16 %v290_v38, %v288_v36  ;;  %v294_v44 = vadd.f32 %v293_v42, %v177_v34  ;;  %v277_v45 = vpop.f32.mrb[0].mxu0 }
 0x223   :  { %v278_v46 = vadd.f32 %v277_v45, %v173_v33  ;;  %v279_v47 = vpop.f32.mrb[1].mxu0 }
 0x224   :  { %341 = vst.msk [vmem:[%s580_s5 + $0x10] sm:$0xff] %vm548_vm6, %v384_v43  ;;  %v385_v48 = vpack.c.bf16 %v294_v44, %v292_v41  ;;  %v280_v49 = vadd.f32 %v279_v47, %v177_v34  ;;  %v281_v50 = vpop.f32.mrb[2].mxu0 }
 0x225   :  { %v282_v51 = vadd.f32 %v281_v50, %v173_v33  ;;  %v283_v52 = vpop.f32.mrb[3].mxu0 }
 0x226   :  { %342 = vst.msk [vmem:[%s580_s5 + $0x18] sm:$0xff] %vm548_vm6, %v385_v48  ;;  %v382_v53 = vpack.c.bf16 %v280_v49, %v278_v46  ;;  %v284_v54 = vadd.f32 %v283_v52, %v177_v34  ;;  %v297_v55 = vpop.f32.mrb[4].mxu1 }
 0x227   :  { %v298_v56 = vadd.f32 %v297_v55, %v173_v33  ;;  %v299_v57 = vpop.f32.mrb[5].mxu1 }
 0x228   :  { %339 = vst.msk [vmem:[%s580_s5] sm:$0xff] %vm548_vm6, %v382_v53  ;;  %v383_v58 = vpack.c.bf16 %v284_v54, %v282_v51  ;;  %v300_v59 = vadd.f32 %v299_v57, %v177_v34  ;;  %v301_v60 = vpop.f32.mrb[6].mxu1 }
 0x229   :  { %v302_v61 = vpop.f32.mrb[7].mxu1 }
 0x22a   :  { %340 = vst.msk [vmem:[%s580_s5 + $0x8] sm:$0xff] %vm548_vm6, %v383_v58  ;;  %v386_v62 = vpack.c.bf16 %v300_v59, %v298_v56 }
 0x22c   :  { %346 = vst.msk [vmem:[%s580_s5 + $0x20] sm:$0x11] %vm345_vm9, %v386_v62 }

// kernel: _lambda_.28
= control target key start
LH: loop header
LB: loop body
LE: loop exit
PB: predicated region body
PF: predicated region fallthrough
CT: control target
= control target key end

     0   :  { %s781_s12 = smov 0   ;;  %s783_s13 = smov 0   ;;  %s843_s0 = inlined_call_operand.vmem [shape: bf16[2,3,17,64], index: 0, kind: input, shape index: {}, may-alias: {0,1,2}]   ;;  %s844_s1 = inlined_call_operand.vmem [shape: bf16[2,3,17,64], index: 1, kind: input, shape index: {}, may-alias: {0,1,2}]   ;;  %s845_s2 = inlined_call_operand.vmem [shape: bf16[2,3,17,64], index: 2, kind: input, shape index: {}, may-alias: {0,1,2}]   ;;  %s846_s3 = inlined_call_operand.vmem [shape: bf16[2,17,64], index: 3, kind: output, shape index: {}]  }
   0x1   :  { %s785_s14 = smov 0  }
   0x2 LB: > { %s25_s15 = sadd.s32 1, %s754_s13  ;;  %p638_p0 = scmp.ge.s32.totalorder %s758_s14, 1  ;;  %s758_s14 = sphi %s785_s14, %s13_s14   ;;  %s754_s13 = sphi %s783_s13, %s848_s13   ;;  %s750_s12 = sphi %s781_s12, %s847_s12  }
   0x3   : > { %p27_p1 = scmp.ge.s32.totalorder %s25_s15, 2  ;;  %p197_p2 = scmp.lt.s32.totalorder %s758_s14, 3 }
   0x5   : > { %s850_s15 = smov (%p27_p1, %s25_s15), 0  ;;  %p198_p3 = pnand %p638_p0, %p197_p2 }
   0x6   : > { %p248_p4 = scmp.lt.s32.totalorder (!%p198_p3), %s750_s12, 1  ;;  %vm317_vm0 = vcmask (!%p198_p3), 523264   ;;  %vm385_vm1 = vcmask (!%p198_p3), 131072   ;;  %vm378_vm2 = vcmask (!%p198_p3), 138240   ;;  %vm430_vm3 = vcmask (!%p198_p3), 1040384  }
   0x7   : > { %201 = sbr.rel (%p198_p3) target bundleno = 789 (0x315), region = 32  ;;  %v760_v35 = vmov (!%p198_p3), 0   ;;  %vm500_vm4 = vcmask (!%p198_p3), 516096   ;;  %vm501_vm5 = vsmask.f32 (!%p198_p3), 256  ;;  %vm497_vm7 = vcmask (!%p198_p3), 519168  }
   0x8   : > { %v432_v36 = vsel (!%p198_p3), %vm430_vm3, 65535, %v760_v35  ;;  %vm502_vm6 = vmand (!%p198_p3), %vm500_vm4, %vm501_vm5 }
   0xe   : > { %s852_s12 = smov (!%p248_p4, %s750_s12), 1 }
   0xf   : > { %s802_s16 = smul.u32 36, %s852_s12 }
  0x10   : > { %s693_s28 = smul.u32 12, %s852_s12 }
  0x11   : > { %s659_s17 = sadd.s32 12, %s802_s16  ;;  %s256_s20 = scalar_lea.vmem %s843_s0, %s802_s16 }
  0x12   : > { %s266_s23 = scalar_lea.vmem %s844_s1, %s659_s17  ;;  %v289_v0 = vld [vmem:[%s256_s20] sm:$0xf]  ;;  %v290_v1 = vld [vmem:[%s256_s20 + $0x4] sm:$0xf]  ;;  %v291_v8 = vld [vmem:[%s256_s20 + $0x8] sm:$0x1]  ;;  %s286_s4 = scalar_lea.vmem %s846_s3, %s693_s28 }
  0x13   : > { %v720_v2 = vld [vmem:[%s266_s23] sm:$0xff]   ;;  %v721_v3 = vld [vmem:[%s266_s23 + $0x8] ss:$0 sps:$4 sm:$0x11]   ;;  %v292_v4 = vmul.bf16 1040203264, %v289_v0 }
  0x14   : > { %v293_v5 = vmul.bf16 1040203264, %v290_v1  ;;  %689 = vmatprep.subr.msk.bf16.mxu0 %vm317_vm0, %v720_v2  ;;  %v325_v6 = vsel %vm317_vm0, %v720_v2, 0  ;;  %v328_v9 = vsel %vm317_vm0, %v721_v3, 0  ;;  %v294_v10 = vmul.bf16 1040203264, %v291_v8 }
  0x15   : > { %674 = vmatpush3.bf16.xpose.msra.mxu0 %v325_v6  ;;  %s661_s24 = sadd.s32 24, %s802_s16  ;;  %v503_v51 = vld [vmem:[%s286_s4 + $0x8] sm:$0x1] }
  0x16   : > { %v643_v7 = vcombine.low %v292_v4, %v293_v5  ;;  %690 = vmatprep.subr.msk.bf16.mxu0 %vm317_vm0, %v721_v3  ;;  %v644_v11 = vcombine.low %v294_v10, %v294_v10  ;;  %s277_s27 = scalar_lea.vmem %s845_s2, %s661_s24 }
  0x17   : > { %v722_v34 = vld [vmem:[%s277_s27] sm:$0xff]   ;;  %v723_v37 = vld [vmem:[%s277_s27 + $0x8] ss:$0 sps:$4 sm:$0x11]  }
  0x18   : > { %677 = vmatprep.mubr.msk.bf16.mxu0 %vm317_vm0, %v643_v7  ;;  %681 = vmatprep.subr.bf16.mxu1 %v722_v34  ;;  %v434_v38 = vand.u32 %v723_v37, %v432_v36 }
  0x19   : > { %682 = vmatpush3.bf16.msra.mxu1 %v722_v34 }
  0x1a   : > { %683 = vmatprep.subr.bf16.mxu1 %v434_v38 }
  0x1d   : > { %676 = vmatpush3.bf16.xpose.msra.mxu0 %v328_v9  ;;  %684 = vmatpush3.bf16.msra.mxu1 %v434_v38 }
  0x24   : > { %678 = vmatmul.mubr.msk.bf16.vlgmr.msra.gmra.mrb[0].mxu0 %vm317_vm0, %v644_v11 }
  0xf7   : > { %v679_v12 = vpop.f32.mrb[0].mxu0 }
  0xf8   : > { %v364_v13 = vpop.f32.mrb[1].mxu0  ;;  %v386_v14 = vsel %vm385_vm1, %v679_v12, -inf }
  0xf9   : > { %387 = vmax.xlane.f32.xlu1 %v386_v14  ;;  %v680_v15 = vpop.f32.mrb[2].mxu0  ;;  %v379_v16 = vsel %vm378_vm2, %v364_v13, -inf }
  0xfa   : > { %380 = vmax.xlane.f32.xlu0 %v379_v16  ;;  %v367_v17 = vpop.f32.mrb[3].mxu0 }
  0xfb   : > { %v382_v18 = vsel %vm378_vm2, %v367_v17, -inf }
  0xfe   : > { %383 = vmax.xlane.f32.xlu0 %v382_v18 }
 0x186   : > { %v388_v19 = vpop.xlane.xlu1 %387 }
 0x187   : > { %v391_v20 = vsub.f32 %v679_v12, %v388_v19  ;;  %v381_v21 = vpop.xlane.xlu0 %380 }
 0x188   : > { %v389_v22 = vsub.f32 %v364_v13, %v381_v21 }
 0x189   : > { %v396_v23 = vmul.f32 1.442695, %v391_v20 }
 0x18a   : > { %v392_v24 = vmul.f32 1.442695, %v389_v22 }
 0x18b   : > { %v384_v25 = vpop.xlane.xlu0 %383 }
 0x18c   : > { %724 = vpow2.f32 %v392_v24  ;;  %v390_v26 = vsub.f32 %v367_v17, %v384_v25 }
 0x18d   : > { %726 = vpow2.f32 %v396_v23 }
 0x18e   : > { %v394_v27 = vmul.f32 1.442695, %v390_v26 }
 0x190   : > { %728 = vpow2.f32 %v394_v27 }
 0x196   : > { %v725_v28 = vpop.eup %724 }
 0x197   : > { %v398_v29 = vsel %vm378_vm2, %v725_v28, 0.0  ;;  %v727_v30 = vpop.eup %726 }
 0x198   : > { %399 = vadd.xlane.f32.xlu1 %v398_v29  ;;  %v404_v32 = vsel %vm385_vm1, %v727_v30, 0.0 }
 0x19a   : > { %v729_v31 = vpop.eup %728 }
 0x19b   : > { %v401_v33 = vsel %vm378_vm2, %v729_v31, 0.0 }
 0x19c   : > { %405 = vadd.xlane.f32.xlu1 %v404_v32  ;;  %402 = vadd.xlane.f32.xlu0 %v401_v33 }
 0x225   : > { %v400_v39 = vpop.xlane.xlu1 %399 }
 0x226   : > { %730 = vrcp.f32 %v400_v39 }
 0x229   : > { %v406_v40 = vpop.xlane.xlu1 %405  ;;  %v403_v41 = vpop.xlane.xlu0 %402 }
 0x22a   : > { %732 = vrcp.f32 %v406_v40 }
 0x22b   : > { %734 = vrcp.f32 %v403_v41 }
 0x230   : > { %v731_v42 = vpop.eup %730 }
 0x231   : > { %v410_v46 = vmul.f32 %v731_v42, %v725_v28 }
 0x234   : > { %v733_v43 = vpop.eup %732 }
 0x235   : > { %v735_v44 = vpop.eup %734  ;;  %v412_v45 = vmul.f32 %v733_v43, %v727_v30 }
 0x236   : > { %v411_v47 = vmul.f32 %v735_v44, %v729_v31 }
 0x237   : > { %v414_v48 = vpack.c.bf16 %v412_v45, %v412_v45 }
 0x238   : > { %v413_v49 = vpack.c.bf16 %v411_v47, %v410_v46 }
 0x23a   : > { %685 = vmatprep.mubr.msk.bf16.mxu1 %vm378_vm2, %v413_v49 }
 0x23b   : > { %686 = vmatmul.mubr.msk.bf16.vlgmr.msra.gmra.mrb[0].mxu1 %vm378_vm2, %v414_v48 }
 0x30e   : > { %v687_v50 = vpop.f32.mrb[0].mxu1 }
 0x30f   : > { %v664_v52 = vpack.c.bf16 %v687_v50, %v687_v50  ;;  %v470_v53 = vpop.f32.mrb[1].mxu1 }
 0x310   : > { %v662_v54 = vpack.c.bf16 %v470_v53, %v470_v53  ;;  %v688_v55 = vpop.f32.mrb[2].mxu1 }
 0x311   : > { %v504_v56 = vsel %vm502_vm6, %v664_v52, %v503_v51  ;;  %v473_v57 = vpop.f32.mrb[3].mxu1 }
 0x312   : > { %505 = vst [vmem:[%s286_s4 + $0x8] sm:$0x1] %v504_v56  ;;  %498 = vst.msk [vmem:[%s286_s4] sm:$0xf] %vm497_vm7, %v662_v54  ;;  %v663_v58 = vpack.c.bf16 %v473_v57, %v473_v57 }
 0x314   : > { %499 = vst.msk [vmem:[%s286_s4 + $0x4] sm:$0xf] %vm497_vm7, %v663_v58 }
 0x315 PF: > { %s13_s14 = sadd.s32 1, %s758_s14   ;;  %s847_s12 = smov %s754_s13 }
 0x316   : > { %p10_p5 = scmp.ge.s32.totalorder %s13_s14, 4   ;;  %s848_s13 = smov %s850_s15 }
 0x318   :  { %12 = sbr.rel (!%p10_p5) target bundleno = 2 (0x2), region = 68 }

// kernel: _lambda_.30
= control target key start
LH: loop header
LB: loop body
LE: loop exit
PB: predicated region body
PF: predicated region fallthrough
CT: control target
= control target key end

     0   :  { %vm35_vm0 = vcmask 523264   ;;  %vm48_vm1 = vcmask 517120   ;;  %v554_v46 = vmov 0   ;;  %vm148_vm2 = vcmask 519168   ;;  %s727_s0 = inlined_call_operand.vmem [shape: bf16[34,64], index: 0, kind: input, shape index: {}]   ;;  %s728_s1 = inlined_call_operand.vmem [shape: bf16[64,256], index: 1, kind: input, shape index: {}]   ;;  %s729_s3 = inlined_call_operand.vmem [shape: f32[1,64], index: 3, kind: input, shape index: {}]   ;;  %s730_s4 = inlined_call_operand.vmem [shape: f32[1,64], index: 4, kind: input, shape index: {}]   ;;  %s731_s2 = inlined_call_operand.vmem [shape: f32[1,256], index: 2, kind: input, shape index: {}]   ;;  %s732_s5 = inlined_call_operand.vmem [shape: bf16[34,256], index: 5, kind: output, shape index: {}]  }
   0x1   :  { %v479_v0 = vld [vmem:[%s727_s0 + $0x8] sm:$0xff]   ;;  %v472_v1 = vld [vmem:[%s727_s0] sm:$0xff]   ;;  %v29_v5 = vld [vmem:[%s727_s0 + $0x10] sm:$0x1]  ;;  %285 = vmatprep.mubr.bf16.mxu1 %v554_v46  ;;  %275 = vmatprep.mubr.bf16.mxu0 %v554_v46  ;;  %vm153_vm3 = vcmask 516096  }
   0x2   :  { %v477_v2 = vunpack.c.l.bf16 %v479_v0  ;;  %v478_v3 = vunpack.c.h.bf16 %v479_v0  ;;  %v473_v4 = vunpack.c.l.bf16 %v472_v1  ;;  %v474_v6 = vunpack.c.h.bf16 %v472_v1  ;;  %v489_v38 = vld [vmem:[%s728_s1 + $0x4] ss:$8 sps:$4 sm:$0xff]   ;;  %v491_v39 = vld [vmem:[%s728_s1] ss:$8 sps:$4 sm:$0xff]   ;;  %v492_v40 = vld [vmem:[%s728_s1 + $0x14] ss:$8 sps:$4 sm:$0xff]  }
   0x3   :  { %v34_v10 = vunpack.c.l.bf16 %v29_v5  ;;  %480 = vmatprep.subr.bf16.mxu1 %v489_v38  ;;  %243 = vmatprep.subr.bf16.mxu0 %v489_v38  ;;  %v494_v41 = vld [vmem:[%s728_s1 + $0x10] ss:$8 sps:$4 sm:$0xff]   ;;  %v495_v42 = vld [vmem:[%s728_s1 + $0x24] ss:$8 sps:$4 sm:$0xff]   ;;  %v497_v43 = vld [vmem:[%s728_s1 + $0x20] ss:$8 sps:$4 sm:$0xff]  }
   0x4   :  { %v42_v7 = vsel %vm35_vm0, %v477_v2, 0.0  ;;  %v36_v8 = vsel %vm35_vm0, %v473_v4, 0.0  ;;  %v45_v9 = vsel %vm35_vm0, %v478_v3, 0.0  ;;  %v39_v11 = vsel %vm35_vm0, %v474_v6, 0.0  ;;  %484 = vmatpush1.bf16.msra.mxu1 %v491_v39  ;;  %244 = vmatpush1.bf16.msra.mxu0 %v491_v39  ;;  %v498_v44 = vld [vmem:[%s728_s1 + $0x34] ss:$8 sps:$4 sm:$0xff]  }
   0x5   :  { %43 = vadd.xlane.f32.xlu0 %v42_v7  ;;  %37 = vadd.xlane.f32.xlu1 %v36_v8  ;;  %v49_v12 = vsel %vm48_vm1, %v34_v10, 0.0  ;;  %v500_v45 = vld [vmem:[%s728_s1 + $0x30] ss:$8 sps:$4 sm:$0xff]   ;;  %v425_v63 = vld [vmem:[%s729_s3] ss:$0 sm:$0xff] }
   0x6   :  { %481 = vmatprep.subr.bf16.mxu1 %v492_v40  ;;  %245 = vmatprep.subr.bf16.mxu0 %v492_v40  ;;  %v426_v1 = vld [vmem:[%s730_s4] ss:$0 sm:$0xff] }
   0x8   :  { %485 = vmatpush1.bf16.msra.mxu1 %v494_v41  ;;  %246 = vmatpush1.bf16.msra.mxu0 %v494_v41 }
   0x9   :  { %46 = vadd.xlane.f32.xlu0 %v45_v9  ;;  %40 = vadd.xlane.f32.xlu1 %v39_v11 }
   0xa   :  { %482 = vmatprep.subr.bf16.mxu1 %v495_v42  ;;  %247 = vmatprep.subr.bf16.mxu0 %v495_v42 }
   0xc   :  { %486 = vmatpush1.bf16.msra.mxu1 %v497_v43  ;;  %248 = vmatpush1.bf16.msra.mxu0 %v497_v43 }
   0xd   :  { %50 = vadd.xlane.f32.xlu0 %v49_v12  ;;  %483 = vmatprep.subr.bf16.mxu1 %v498_v44 }
   0xe   :  { %249 = vmatprep.subr.bf16.mxu0 %v498_v44 }
  0x10   :  { %487 = vmatpush1.bf16.msra.mxu1 %v500_v45  ;;  %250 = vmatpush1.bf16.msra.mxu0 %v500_v45 }
  0x92   :  { %v44_v13 = vpop.xlane.xlu0 %43  ;;  %v38_v14 = vpop.xlane.xlu1 %37 }
  0x93   :  { %v55_v15 = vmul.f32 0.015625, %v44_v13  ;;  %v53_v16 = vmul.f32 0.015625, %v38_v14 }
  0x95   :  { %v599_v17 = vsub.f32 %v477_v2, %v55_v15  ;;  %v601_v18 = vsub.f32 %v473_v4, %v53_v16 }
  0x96   :  { %v47_v19 = vpop.xlane.xlu0 %46  ;;  %v41_v20 = vpop.xlane.xlu1 %40 }
  0x97   :  { %v56_v21 = vmul.f32 0.015625, %v47_v19  ;;  %v65_v22 = vmul.f32 %v599_v17, %v599_v17  ;;  %v54_v23 = vmul.f32 0.015625, %v41_v20  ;;  %v63_v24 = vmul.f32 %v601_v18, %v601_v18 }
  0x99   :  { %v607_v25 = vsub.f32 %v478_v3, %v56_v21  ;;  %v74_v26 = vsel %vm35_vm0, %v65_v22, 0.0  ;;  %v610_v27 = vsub.f32 %v474_v6, %v54_v23  ;;  %v68_v31 = vsel %vm35_vm0, %v63_v24, 0.0 }
  0x9a   :  { %v51_v28 = vpop.xlane.xlu0 %50  ;;  %75 = vadd.xlane.f32.xlu1 %v74_v26 }
  0x9b   :  { %v57_v29 = vmul.f32 0.015625, %v51_v28  ;;  %v66_v30 = vmul.f32 %v607_v25, %v607_v25  ;;  %v64_v32 = vmul.f32 %v610_v27, %v610_v27  ;;  %v170_v28 = vlaneseq }
  0x9d   :  { %v617_v33 = vsub.f32 %v34_v10, %v57_v29  ;;  %v77_v34 = vsel %vm35_vm0, %v66_v30, 0.0  ;;  %v71_v36 = vsel %vm35_vm0, %v64_v32, 0.0  ;;  %v171_v29 = vshrl.u32 %v170_v28, 7 }
  0x9e   :  { %78 = vadd.xlane.f32.xlu0 %v77_v34  ;;  %69 = vadd.xlane.f32.xlu1 %v68_v31  ;;  %v168_v31 = vld [vmem:[%s731_s2] sm:$0x3] }
  0x9f   :  { %v67_v35 = vmul.f32 %v617_v33, %v617_v33  ;;  %v172_v30 = vsub.s32 0, %v171_v29  ;;  %v176_v32 = vsub.s32 1, %v171_v29 }
  0xa1   :  { %v80_v37 = vsel %vm48_vm1, %v67_v35, 0.0  ;;  %v177_v34 = vrot.slane %v168_v31, %v176_v32 }
  0xa2   :  { %81 = vadd.xlane.f32.xlu1 %v80_v37  ;;  %72 = vadd.xlane.f32.xlu0 %v71_v36 }
 0x127   :  { %v76_v47 = vpop.xlane.xlu1 %75 }
 0x128   :  { %v85_v48 = vmul.f32 0.015625, %v76_v47 }
 0x12a   :  { %v90_v49 = vadd.f32 1e-05, %v85_v48 }
 0x12b   :  { %v79_v50 = vpop.xlane.xlu0 %78  ;;  %v70_v51 = vpop.xlane.xlu1 %69 }
 0x12c   :  { %504 = vrsqrt.f32 %v90_v49  ;;  %v86_v52 = vmul.f32 0.015625, %v79_v50  ;;  %v83_v53 = vmul.f32 0.015625, %v70_v51 }
 0x12e   :  { %v91_v54 = vadd.f32 1e-05, %v86_v52  ;;  %v88_v55 = vadd.f32 1e-05, %v83_v53 }
 0x12f   :  { %v73_v56 = vpop.xlane.xlu0 %72  ;;  %v82_v57 = vpop.xlane.xlu1 %81 }
 0x130   :  { %506 = vrsqrt.f32 %v91_v54  ;;  %v84_v58 = vmul.f32 0.015625, %v73_v56  ;;  %v87_v59 = vmul.f32 0.015625, %v82_v57 }
 0x131   :  { %508 = vrsqrt.f32 %v88_v55 }
 0x132   :  { %v89_v60 = vadd.f32 1e-05, %v84_v58  ;;  %v92_v61 = vadd.f32 1e-05, %v87_v59 }
 0x134   :  { %510 = vrsqrt.f32 %v89_v60 }
 0x135   :  { %512 = vrsqrt.f32 %v92_v61 }
 0x136   :  { %v505_v62 = vpop.eup %504 }
 0x137   :  { %v100_v0 = vmul.f32 %v505_v62, %v599_v17 }
 0x139   :  { %v112_v2 = vmul.f32 %v425_v63, %v100_v0 }
 0x13a   :  { %v507_v3 = vpop.eup %506 }
 0x13b   :  { %v509_v4 = vpop.eup %508  ;;  %v124_v5 = vadd.f32 %v426_v1, %v112_v2  ;;  %v101_v6 = vmul.f32 %v507_v3, %v607_v25 }
 0x13c   :  { %v98_v7 = vmul.f32 %v509_v4, %v601_v18 }
 0x13d   :  { %v463_v8 = vpack.c.bf16 %v124_v5, %v124_v5  ;;  %v113_v9 = vmul.f32 %v425_v63, %v101_v6 }
 0x13e   :  { %v511_v10 = vpop.eup %510  ;;  %v110_v11 = vmul.f32 %v425_v63, %v98_v7 }
 0x13f   :  { %v513_v12 = vpop.eup %512  ;;  %151 = vst.msk [vmem:[#allocation2 + $0x8] sm:$0xf] %vm148_vm2, %v463_v8  ;;  %v125_v13 = vadd.f32 %v426_v1, %v113_v9  ;;  %v99_v14 = vmul.f32 %v511_v10, %v610_v27 }
 0x140   :  { %v122_v15 = vadd.f32 %v426_v1, %v110_v11  ;;  %v102_v16 = vmul.f32 %v513_v12, %v617_v33  ;;  %v173_v33 = vrot.slane %v168_v31, %v172_v30 }
 0x141   :  { %v464_v17 = vpack.c.bf16 %v125_v13, %v125_v13  ;;  %v111_v19 = vmul.f32 %v425_v63, %v99_v14 }
 0x142   :  { %v461_v20 = vpack.c.bf16 %v122_v15, %v122_v15  ;;  %v114_v21 = vmul.f32 %v425_v63, %v102_v16 }
 0x143   :  { %152 = vst.msk [vmem:[#allocation2 + $0xc] sm:$0xf] %vm148_vm2, %v464_v17  ;;  %v123_v18 = vadd.f32 %v426_v1, %v111_v19 }
 0x144   :  { %149 = vst.msk [vmem:[#allocation2] sm:$0xf] %vm148_vm2, %v461_v20  ;;  %v126_v22 = vadd.f32 %v426_v1, %v114_v21 }
 0x145   :  { %v462_v23 = vpack.c.bf16 %v123_v18, %v123_v18 }
 0x146   :  { %v465_v24 = vpack.c.bf16 %v126_v22, %v126_v22 }
 0x147   :  { %150 = vst.msk [vmem:[#allocation2 + $0x4] sm:$0xf] %vm148_vm2, %v462_v23 }
 0x148   :  { %154 = vst.msk [vmem:[#allocation2 + $0x10] sm:$0x1] %vm153_vm3, %v465_v24 }
 0x14a   :  { %v501_v25 = vld [vmem:[#allocation2 + $0x8] sm:$0xff]  }
 0x14b   :  { %444 = vmatmul.mubr.msk.bf16.vlgmr.msra.gmra.mrb[0].mxu1 %vm35_vm0, %v501_v25 }
 0x14c   :  { %295 = vmatprep.mubr.bf16.mxu1 %v554_v46 }
 0x14e   :  { %v502_v26 = vld [vmem:[#allocation2] sm:$0xff]  }
 0x14f   :  { %443 = vmatmul.mubr.msk.bf16.vlgmr.msra.gmra.mrb[0].mxu0 %vm35_vm0, %v502_v26  ;;  %v503_v27 = vld [vmem:[#allocation2 + $0x10] ss:$0 sps:$4 sm:$0x11]  }
 0x153   :  { %445 = vmatmul.mubr.msk.bf16.gmra.mrb[4].mxu1 %vm35_vm0, %v503_v27 }
 0x21e   :  { %v287_v35 = vpop.f32.mrb[0].mxu1 }
 0x21f   :  { %v672_v36 = vadd.f32 %v287_v35, %v173_v33  ;;  %v289_v37 = vpop.f32.mrb[1].mxu1 }
 0x220   :  { %v674_v38 = vadd.f32 %v289_v37, %v177_v34  ;;  %v291_v39 = vpop.f32.mrb[2].mxu1 }
 0x221   :  { %v450_v40 = vmul.f32 -1.702, %v672_v36  ;;  %v677_v41 = vadd.f32 %v291_v39, %v173_v33  ;;  %v293_v42 = vpop.f32.mrb[3].mxu1 }
 0x222   :  { %v451_v43 = vmul.f32 -1.702, %v674_v38  ;;  %v680_v44 = vadd.f32 %v293_v42, %v177_v34  ;;  %v277_v45 = vpop.f32.mrb[0].mxu0 }
 0x223   :  { %v332_v46 = vmul.f32 1.442695, %v450_v40  ;;  %v452_v47 = vmul.f32 -1.702, %v677_v41  ;;  %v683_v48 = vadd.f32 %v277_v45, %v173_v33  ;;  %v279_v49 = vpop.f32.mrb[1].mxu0 }
 0x224   :  { %v334_v50 = vmul.f32 1.442695, %v451_v43  ;;  %v453_v51 = vmul.f32 -1.702, %v680_v44  ;;  %v686_v52 = vadd.f32 %v279_v49, %v177_v34  ;;  %v281_v53 = vpop.f32.mrb[2].mxu0 }
 0x225   :  { %514 = vpow2.f32 %v332_v46  ;;  %v336_v54 = vmul.f32 1.442695, %v452_v47  ;;  %v446_v55 = vmul.f32 -1.702, %v683_v48  ;;  %v689_v56 = vadd.f32 %v281_v53, %v173_v33  ;;  %v283_v57 = vpop.f32.mrb[3].mxu0 }
 0x226   :  { %516 = vpow2.f32 %v334_v50  ;;  %v338_v58 = vmul.f32 1.442695, %v453_v51  ;;  %v447_v59 = vmul.f32 -1.702, %v686_v52  ;;  %v692_v60 = vadd.f32 %v283_v57, %v177_v34  ;;  %v297_v61 = vpop.f32.mrb[4].mxu1 }
 0x227   :  { %518 = vpow2.f32 %v336_v54  ;;  %v324_v62 = vmul.f32 1.442695, %v446_v55  ;;  %v448_v63 = vmul.f32 -1.702, %v689_v56  ;;  %v695_v0 = vadd.f32 %v297_v61, %v173_v33  ;;  %v299_v1 = vpop.f32.mrb[5].mxu1 }
 0x228   :  { %520 = vpow2.f32 %v338_v58  ;;  %v326_v2 = vmul.f32 1.442695, %v447_v59  ;;  %v449_v3 = vmul.f32 -1.702, %v692_v60  ;;  %v698_v4 = vadd.f32 %v299_v1, %v177_v34  ;;  %v301_v5 = vpop.f32.mrb[6].mxu1 }
 0x229   :  { %522 = vpow2.f32 %v324_v62  ;;  %v328_v6 = vmul.f32 1.442695, %v448_v63  ;;  %v454_v7 = vmul.f32 -1.702, %v695_v0  ;;  %v302_v8 = vpop.f32.mrb[7].mxu1 }
 0x22a   :  { %524 = vpow2.f32 %v326_v2  ;;  %v330_v9 = vmul.f32 1.442695, %v449_v3  ;;  %v455_v10 = vmul.f32 -1.702, %v698_v4 }
 0x22b   :  { %526 = vpow2.f32 %v328_v6  ;;  %v340_v11 = vmul.f32 1.442695, %v454_v7 }
 0x22c   :  { %528 = vpow2.f32 %v330_v9  ;;  %v342_v12 = vmul.f32 1.442695, %v455_v10 }
 0x22d   :  { %530 = vpow2.f32 %v340_v11 }
 0x22e   :  { %532 = vpow2.f32 %v342_v12 }
 0x22f   :  { %v515_v13 = vpop.eup %514 }
 0x230   :  { %v517_v14 = vpop.eup %516  ;;  %v348_v15 = vadd.f32 1.0, %v515_v13 }
 0x231   :  { %v519_v16 = vpop.eup %518  ;;  %v349_v17 = vadd.f32 1.0, %v517_v14 }
 0x232   :  { %v521_v19 = vpop.eup %520  ;;  %534 = vrcp.f32 %v348_v15  ;;  %v350_v20 = vadd.f32 1.0, %v519_v16 }
 0x233   :  { %v523_v21 = vpop.eup %522  ;;  %536 = vrcp.f32 %v349_v17  ;;  %v351_v18 = vadd.f32 1.0, %v521_v19 }
 0x234   :  { %v525_v22 = vpop.eup %524  ;;  %538 = vrcp.f32 %v350_v20  ;;  %v344_v23 = vadd.f32 1.0, %v523_v21 }
 0x235   :  { %v527_v24 = vpop.eup %526  ;;  %540 = vrcp.f32 %v351_v18  ;;  %v345_v25 = vadd.f32 1.0, %v525_v22 }
 0x236   :  { %v529_v26 = vpop.eup %528  ;;  %542 = vrcp.f32 %v344_v23  ;;  %v346_v27 = vadd.f32 1.0, %v527_v24 }
 0x237   :  { %v531_v28 = vpop.eup %530  ;;  %544 = vrcp.f32 %v345_v25  ;;  %v347_v29 = vadd.f32 1.0, %v529_v26 }
 0x238   :  { %v533_v30 = vpop.eup %532  ;;  %546 = vrcp.f32 %v346_v27  ;;  %v352_v31 = vadd.f32 1.0, %v531_v28 }
 0x239   :  { %548 = vrcp.f32 %v347_v29  ;;  %v353_v32 = vadd.f32 1.0, %v533_v30 }
 0x23a   :  { %550 = vrcp.f32 %v352_v31 }
 0x23b   :  { %552 = vrcp.f32 %v353_v32 }
 0x23c   :  { %v535_v33 = vpop.eup %534 }
 0x23d   :  { %v537_v34 = vpop.eup %536  ;;  %v378_v35 = vmul.f32 %v535_v33, %v672_v36 }
 0x23e   :  { %v539_v37 = vpop.eup %538  ;;  %v379_v39 = vmul.f32 %v537_v34, %v674_v38 }
 0x23f   :  { %v541_v40 = vpop.eup %540  ;;  %v380_v42 = vmul.f32 %v539_v37, %v677_v41 }
 0x240   :  { %v543_v43 = vpop.eup %542  ;;  %v468_v45 = vpack.c.bf16 %v379_v39, %v378_v35  ;;  %v381_v46 = vmul.f32 %v541_v40, %v680_v44 }
 0x241   :  { %v545_v47 = vpop.eup %544  ;;  %v374_v49 = vmul.f32 %v543_v43, %v683_v48 }
 0x242   :  { %v547_v50 = vpop.eup %546  ;;  %418 = vst [vmem:[%s732_s5 + $0x10] sm:$0xff] %v468_v45  ;;  %v469_v51 = vpack.c.bf16 %v381_v46, %v380_v42  ;;  %v375_v36 = vmul.f32 %v545_v47, %v686_v52 }
 0x243   :  { %v549_v53 = vpop.eup %548  ;;  %v376_v38 = vmul.f32 %v547_v50, %v689_v56 }
 0x244   :  { %v551_v54 = vpop.eup %550  ;;  %419 = vst [vmem:[%s732_s5 + $0x18] sm:$0xff] %v469_v51  ;;  %v466_v41 = vpack.c.bf16 %v375_v36, %v374_v49  ;;  %v377_v44 = vmul.f32 %v549_v53, %v692_v60 }
 0x245   :  { %v553_v48 = vpop.eup %552  ;;  %v382_v55 = vmul.f32 %v551_v54, %v695_v0 }
 0x246   :  { %416 = vst [vmem:[%s732_s5] sm:$0xff] %v466_v41  ;;  %v467_v57 = vpack.c.bf16 %v377_v44, %v376_v38  ;;  %v383_v52 = vmul.f32 %v553_v48, %v698_v4 }
 0x248   :  { %417 = vst [vmem:[%s732_s5 + $0x8] sm:$0xff] %v467_v57  ;;  %v470_v56 = vpack.c.bf16 %v383_v52, %v382_v55 }
 0x24a   :  { %420 = vst [vmem:[%s732_s5 + $0x20] sm:$0x11] %v470_v56 }

// kernel: _lambda_.31
= control target key start
LH: loop header
LB: loop body
LE: loop exit
PB: predicated region body
PF: predicated region fallthrough
CT: control target
= control target key end

     0   :  { %vm277_vm0 = vcmask 519168   ;;  %vm282_vm1 = vcmask 516096   ;;  %s523_s1 = inlined_call_operand.vmem [shape: bf16[256,64], index: 1, kind: input, shape index: {}]   ;;  %s524_s0 = inlined_call_operand.vmem [shape: bf16[34,256], index: 0, kind: input, shape index: {}]   ;;  %s525_s3 = inlined_call_operand.vmem [shape: bf16[34,64], index: 3, kind: input, shape index: {}]   ;;  %s526_s2 = inlined_call_operand.vmem [shape: f32[1,64], index: 2, kind: input, shape index: {}]   ;;  %s527_s4 = inlined_call_operand.vmem [shape: bf16[34,64], index: 4, kind: output, shape index: {}]  }
   0x1   :  { %v380_v0 = vld [vmem:[%s523_s1 + $0x40] sm:$0xff]   ;;  %v382_v2 = vld [vmem:[%s523_s1 + $0x48] sm:$0xff]   ;;  %v384_v4 = vld [vmem:[%s523_s1 + $0x50] sm:$0xff]  }
   0x2   :  { %v381_v1 = vld [vmem:[%s523_s1] sm:$0xff]   ;;  %364 = vmatprep.subr.bf16.mxu1 %v380_v0  ;;  %330 = vmatprep.subr.bf16.mxu0 %v380_v0  ;;  %v383_v3 = vld [vmem:[%s523_s1 + $0x8] sm:$0xff]   ;;  %v385_v5 = vld [vmem:[%s523_s1 + $0x10] sm:$0xff]  }
   0x3   :  { %372 = vmatpush3.bf16.msra.mxu1 %v381_v1  ;;  %331 = vmatpush3.bf16.msra.mxu0 %v381_v1  ;;  %v386_v6 = vld [vmem:[%s523_s1 + $0x58] sm:$0xff]   ;;  %v388_v8 = vld [vmem:[%s523_s1 + $0x60] sm:$0xff]   ;;  %v390_v10 = vld [vmem:[%s523_s1 + $0x68] sm:$0xff]  }
   0x4   :  { %365 = vmatprep.subr.bf16.mxu1 %v382_v2  ;;  %332 = vmatprep.subr.bf16.mxu0 %v382_v2  ;;  %v387_v7 = vld [vmem:[%s523_s1 + $0x18] sm:$0xff]   ;;  %v389_v9 = vld [vmem:[%s523_s1 + $0x20] sm:$0xff]   ;;  %v391_v13 = vld [vmem:[%s523_s1 + $0x28] sm:$0xff]  }
   0x5   :  { %v398_v11 = vld [vmem:[%s524_s0 + $0x14] ss:$8 sps:$4 sm:$0xff]   ;;  %v401_v12 = vld [vmem:[%s524_s0 + $0x4] ss:$8 sps:$4 sm:$0xff]   ;;  %v396_v19 = vld [vmem:[%s524_s0 + $0x10] ss:$8 sps:$4 sm:$0xff]  }
   0x6   :  { %v392_v14 = vld [vmem:[%s523_s1 + $0x70] sm:$0xff]   ;;  %225 = vmatprep.mubr.bf16.mxu1 %v398_v11  ;;  %217 = vmatprep.mubr.bf16.mxu0 %v401_v12  ;;  %v394_v16 = vld [vmem:[%s523_s1 + $0x78] sm:$0xff]   ;;  %v22_v18 = vld [vmem:[%s524_s0 + $0x20] sm:$0x11] }
   0x7   :  { %373 = vmatpush3.bf16.msra.mxu1 %v383_v3  ;;  %333 = vmatpush3.bf16.msra.mxu0 %v383_v3  ;;  %v393_v15 = vld [vmem:[%s523_s1 + $0x30] sm:$0xff]   ;;  %v395_v17 = vld [vmem:[%s523_s1 + $0x38] sm:$0xff]   ;;  %v399_v20 = vld [vmem:[%s524_s0] ss:$8 sps:$4 sm:$0xff]   ;;  %v294_v21 = vcombine.high %v22_v18, %v22_v18  ;;  %v293_v22 = vcombine.low %v22_v18, %v22_v18 }
   0x8   :  { %366 = vmatprep.subr.bf16.mxu1 %v384_v4  ;;  %334 = vmatprep.subr.bf16.mxu0 %v384_v4  ;;  %v329_v23 = vld [vmem:[%s525_s3 + $0x8] sm:$0xff]   ;;  %v322_v24 = vld [vmem:[%s525_s3] sm:$0xff]   ;;  %v245_v48 = vld [vmem:[%s525_s3 + $0x10] sm:$0x1] }
   0x9   :  { %v288_v27 = vld [vmem:[%s526_s2] ss:$0 sm:$0xff]  ;;  %v327_v31 = vunpack.c.l.bf16 %v329_v23  ;;  %v323_v34 = vunpack.c.l.bf16 %v322_v24  ;;  %v328_v37 = vunpack.c.h.bf16 %v329_v23  ;;  %v324_v39 = vunpack.c.h.bf16 %v322_v24 }
   0xa   :  { %v250_v58 = vunpack.c.l.bf16 %v245_v48 }
   0xb   :  { %374 = vmatpush3.bf16.msra.mxu1 %v385_v5  ;;  %335 = vmatpush3.bf16.msra.mxu0 %v385_v5 }
   0xc   :  { %367 = vmatprep.subr.bf16.mxu1 %v386_v6  ;;  %336 = vmatprep.subr.bf16.mxu0 %v386_v6 }
   0xf   :  { %375 = vmatpush3.bf16.msra.mxu1 %v387_v7  ;;  %337 = vmatpush3.bf16.msra.mxu0 %v387_v7 }
  0x10   :  { %368 = vmatprep.subr.bf16.mxu1 %v388_v8  ;;  %338 = vmatprep.subr.bf16.mxu0 %v388_v8 }
  0x13   :  { %376 = vmatpush3.bf16.msra.mxu1 %v389_v9  ;;  %339 = vmatpush3.bf16.msra.mxu0 %v389_v9 }
  0x14   :  { %369 = vmatprep.subr.bf16.mxu1 %v390_v10  ;;  %340 = vmatprep.subr.bf16.mxu0 %v390_v10 }
  0x17   :  { %377 = vmatpush3.bf16.msra.mxu1 %v391_v13  ;;  %341 = vmatpush3.bf16.msra.mxu0 %v391_v13 }
  0x18   :  { %370 = vmatprep.subr.bf16.mxu1 %v392_v14  ;;  %342 = vmatprep.subr.bf16.mxu0 %v392_v14 }
  0x1b   :  { %378 = vmatpush3.bf16.msra.mxu1 %v393_v15  ;;  %343 = vmatpush3.bf16.msra.mxu0 %v393_v15 }
  0x1c   :  { %371 = vmatprep.subr.bf16.mxu1 %v394_v16  ;;  %344 = vmatprep.subr.bf16.mxu0 %v394_v16 }
  0x1f   :  { %379 = vmatpush3.bf16.msra.mxu1 %v395_v17  ;;  %345 = vmatpush3.bf16.msra.mxu0 %v395_v17 }
  0x22   :  { %226 = vmatmul.mubr.bf16.vlgmr.msra.gmra.mrb[0].mxu1 %v396_v19  ;;  %218 = vmatmul.mubr.bf16.vlgmr.msra.gmra.mrb[0].mxu0 %v399_v20 }
  0x23   :  { %233 = vmatprep.mubr.bf16.mxu1 %v294_v21 }
  0x2a   :  { %234 = vmatmul.mubr.bf16.gmra.mrb[4].mxu1 %v293_v22 }
  0xf5   :  { %v352_v25 = vpop.f32.mrb[0].mxu1  ;;  %v346_v26 = vpop.f32.mrb[0].mxu0 }
  0xf6   :  { %v353_v28 = vpop.f32.mrb[1].mxu1  ;;  %v347_v29 = vpop.f32.mrb[1].mxu0 }
  0xf7   :  { %v354_v30 = vadd.f32 %v353_v28, %v352_v25  ;;  %v355_v32 = vpop.f32.mrb[2].mxu1  ;;  %v348_v33 = vadd.f32 %v347_v29, %v346_v26  ;;  %v349_v35 = vpop.f32.mrb[2].mxu0 }
  0xf8   :  { %v356_v36 = vpop.f32.mrb[3].mxu1  ;;  %v350_v38 = vpop.f32.mrb[3].mxu0 }
  0xf9   :  { %v228_v40 = vadd.f32 %v354_v30, %v288_v27  ;;  %v357_v41 = vadd.f32 %v356_v36, %v355_v32  ;;  %v220_v42 = vadd.f32 %v348_v33, %v288_v27  ;;  %v351_v43 = vadd.f32 %v350_v38, %v349_v35 }
  0xfb   :  { %v253_v44 = vadd.f32 %v327_v31, %v228_v40  ;;  %v231_v45 = vadd.f32 %v357_v41, %v288_v27  ;;  %v251_v46 = vadd.f32 %v323_v34, %v220_v42  ;;  %v223_v47 = vadd.f32 %v351_v43, %v288_v27 }
  0xfd   :  { %v318_v49 = vpack.c.bf16 %v253_v44, %v253_v44  ;;  %v254_v50 = vadd.f32 %v328_v37, %v231_v45  ;;  %v316_v51 = vpack.c.bf16 %v251_v46, %v251_v46  ;;  %v252_v52 = vadd.f32 %v324_v39, %v223_v47  ;;  %v358_v53 = vpop.f32.mrb[4].mxu1 }
  0xfe   :  { %v359_v54 = vpop.f32.mrb[5].mxu1 }
  0xff   :  { %280 = vst.msk [vmem:[%s527_s4 + $0x8] sm:$0xf] %vm277_vm0, %v318_v49  ;;  %v319_v55 = vpack.c.bf16 %v254_v50, %v254_v50  ;;  %278 = vst.msk [vmem:[%s527_s4] sm:$0xf] %vm277_vm0, %v316_v51  ;;  %v317_v56 = vpack.c.bf16 %v252_v52, %v252_v52  ;;  %v360_v57 = vadd.f32 %v359_v54, %v358_v53  ;;  %v361_v59 = vpop.f32.mrb[6].mxu1 }
 0x100   :  { %v362_v60 = vpop.f32.mrb[7].mxu1 }
 0x101   :  { %281 = vst.msk [vmem:[%s527_s4 + $0xc] sm:$0xf] %vm277_vm0, %v319_v55  ;;  %279 = vst.msk [vmem:[%s527_s4 + $0x4] sm:$0xf] %vm277_vm0, %v317_v56  ;;  %v236_v61 = vadd.f32 %v360_v57, %v288_v27 }
 0x103   :  { %v255_v62 = vadd.f32 %v250_v58, %v236_v61 }
 0x105   :  { %v320_v63 = vpack.c.bf16 %v255_v62, %v255_v62 }
 0x107   :  { %283 = vst.msk [vmem:[%s527_s4 + $0x10] sm:$0x1] %vm282_vm1, %v320_v63 }

// kernel: _lambda_.29
= control target key start
LH: loop header
LB: loop body
LE: loop exit
PB: predicated region body
PF: predicated region fallthrough
CT: control target
= control target key end

     0   :  { %v262_v0 = vmov 0.0   ;;  %vm263_vm0 = vmmov 0   ;;  %vm75_vm1 = vcmask 523264   ;;  %vm177_vm2 = vcmask 519168   ;;  %s340_s1 = inlined_call_operand.vmem [shape: bf16[64,64], index: 1, kind: input, shape index: {}]   ;;  %s341_s0 = inlined_call_operand.vmem [shape: bf16[34,64], index: 0, kind: input, shape index: {}]   ;;  %s342_s3 = inlined_call_operand.vmem [shape: bf16[34,64], index: 3, kind: input, shape index: {}]   ;;  %s343_s2 = inlined_call_operand.vmem [shape: f32[1,64], index: 2, kind: input, shape index: {}]   ;;  %s344_s4 = inlined_call_operand.vmem [shape: bf16[34,64], index: 4, kind: output, shape index: {}]  }
   0x1   :  { %245 = vmatprep.subr.bf16.mxu1 %v262_v0  ;;  %v255_v1 = vld [vmem:[%s340_s1] sm:$0xff]   ;;  %225 = vmatprep.subr.bf16.mxu0 %v262_v0  ;;  %v256_v2 = vld [vmem:[%s340_s1 + $0x8] sm:$0xff]   ;;  %v257_v3 = vld [vmem:[%s340_s1 + $0x10] sm:$0xff]   ;;  %vm182_vm3 = vcmask 516096  }
   0x2   :  { %237 = vmatprep.mubr.msk.bf16.mxu1 %vm263_vm0, %v262_v0  ;;  %233 = vmatprep.mubr.msk.bf16.mxu0 %vm263_vm0, %v262_v0  ;;  %v258_v4 = vld [vmem:[%s340_s1 + $0x18] sm:$0xff]   ;;  %v259_v5 = vld [vmem:[%s341_s0 + $0x8] sm:$0xff]   ;;  %v260_v6 = vld [vmem:[%s341_s0] sm:$0xff]  }
   0x3   :  { %249 = vmatpush3.bf16.msra.mxu1 %v255_v1  ;;  %226 = vmatpush3.bf16.msra.mxu0 %v255_v1  ;;  %v261_v7 = vld [vmem:[%s341_s0 + $0x10] ss:$0 sps:$4 sm:$0x11]   ;;  %v217_v8 = vld [vmem:[%s342_s3 + $0x8] sm:$0xff]   ;;  %v210_v9 = vld [vmem:[%s342_s3] sm:$0xff]  }
   0x4   :  { %246 = vmatprep.subr.bf16.mxu1 %v262_v0  ;;  %227 = vmatprep.subr.bf16.mxu0 %v262_v0  ;;  %v188_v10 = vld [vmem:[%s343_s2] ss:$0 sm:$0xff]  ;;  %v215_v11 = vunpack.c.l.bf16 %v217_v8  ;;  %v211_v12 = vunpack.c.l.bf16 %v210_v9  ;;  %v216_v17 = vunpack.c.h.bf16 %v217_v8  ;;  %v212_v20 = vunpack.c.h.bf16 %v210_v9  ;;  %v145_v29 = vld [vmem:[%s342_s3 + $0x10] sm:$0x1] }
   0x5   :  { %v150_v36 = vunpack.c.l.bf16 %v145_v29 }
   0x7   :  { %250 = vmatpush3.bf16.msra.mxu1 %v256_v2  ;;  %228 = vmatpush3.bf16.msra.mxu0 %v256_v2 }
   0x8   :  { %247 = vmatprep.subr.bf16.mxu1 %v262_v0  ;;  %229 = vmatprep.subr.bf16.mxu0 %v262_v0 }
   0xb   :  { %251 = vmatpush3.bf16.msra.mxu1 %v257_v3  ;;  %230 = vmatpush3.bf16.msra.mxu0 %v257_v3 }
   0xc   :  { %248 = vmatprep.subr.bf16.mxu1 %v262_v0  ;;  %231 = vmatprep.subr.bf16.mxu0 %v262_v0 }
   0xf   :  { %252 = vmatpush3.bf16.msra.mxu1 %v258_v4  ;;  %232 = vmatpush3.bf16.msra.mxu0 %v258_v4 }
  0x12   :  { %238 = vmatmul.mubr.msk.bf16.vlgmr.msra.gmra.mrb[0].mxu1 %vm75_vm1, %v259_v5  ;;  %234 = vmatmul.mubr.msk.bf16.vlgmr.msra.gmra.mrb[0].mxu0 %vm75_vm1, %v260_v6 }
  0x13   :  { %241 = vmatprep.mubr.msk.bf16.mxu1 %vm263_vm0, %v262_v0 }
  0x1a   :  { %242 = vmatmul.mubr.msk.bf16.gmra.mrb[4].mxu1 %vm75_vm1, %v261_v7 }
  0xe5   :  { %v127_v13 = vpop.f32.mrb[0].mxu1  ;;  %v119_v14 = vpop.f32.mrb[0].mxu0 }
  0xe6   :  { %v128_v15 = vadd.f32 %v188_v10, %v127_v13  ;;  %v239_v16 = vpop.f32.mrb[1].mxu1  ;;  %v120_v18 = vadd.f32 %v188_v10, %v119_v14  ;;  %v235_v19 = vpop.f32.mrb[1].mxu0 }
  0xe7   :  { %v130_v21 = vpop.f32.mrb[2].mxu1  ;;  %v122_v22 = vpop.f32.mrb[2].mxu0 }
  0xe8   :  { %v153_v23 = vadd.f32 %v215_v11, %v128_v15  ;;  %v131_v24 = vadd.f32 %v188_v10, %v130_v21  ;;  %v151_v25 = vadd.f32 %v211_v12, %v120_v18  ;;  %v240_v26 = vpop.f32.mrb[3].mxu1  ;;  %v123_v27 = vadd.f32 %v188_v10, %v122_v22  ;;  %v236_v28 = vpop.f32.mrb[3].mxu0 }
  0xea   :  { %v206_v30 = vpack.c.bf16 %v153_v23, %v153_v23  ;;  %v154_v31 = vadd.f32 %v216_v17, %v131_v24  ;;  %v204_v32 = vpack.c.bf16 %v151_v25, %v151_v25  ;;  %v152_v33 = vadd.f32 %v212_v20, %v123_v27 }
  0xec   :  { %180 = vst.msk [vmem:[%s344_s4 + $0x8] sm:$0xf] %vm177_vm2, %v206_v30  ;;  %v207_v34 = vpack.c.bf16 %v154_v31, %v154_v31  ;;  %178 = vst.msk [vmem:[%s344_s4] sm:$0xf] %vm177_vm2, %v204_v32  ;;  %v205_v35 = vpack.c.bf16 %v152_v33, %v152_v33 }
  0xed   :  { %v135_v37 = vpop.f32.mrb[4].mxu1 }
  0xee   :  { %181 = vst.msk [vmem:[%s344_s4 + $0xc] sm:$0xf] %vm177_vm2, %v207_v34  ;;  %179 = vst.msk [vmem:[%s344_s4 + $0x4] sm:$0xf] %vm177_vm2, %v205_v35  ;;  %v136_v38 = vadd.f32 %v188_v10, %v135_v37  ;;  %v243_v39 = vpop.f32.mrb[5].mxu1 }
  0xef   :  { %v138_v40 = vpop.f32.mrb[6].mxu1 }
  0xf0   :  { %v155_v41 = vadd.f32 %v150_v36, %v136_v38  ;;  %v244_v42 = vpop.f32.mrb[7].mxu1 }
  0xf2   :  { %v208_v43 = vpack.c.bf16 %v155_v41, %v155_v41 }
  0xf4   :  { %183 = vst.msk [vmem:[%s344_s4 + $0x10] sm:$0x1] %vm182_vm3, %v208_v43 }

// kernel: _lambda_.37
= control target key start
LH: loop header
LB: loop body
LE: loop exit
PB: predicated region body
PF: predicated region fallthrough
CT: control target
= control target key end

     0   :  { %vm24_vm0 = vcmask 517120   ;;  %v173_v9 = vmov 0.0   ;;  %vm174_vm1 = vmmov 0   ;;  %vm56_vm2 = vcmask 516096   ;;  %s224_s0 = inlined_call_operand.vmem [shape: bf16[2,64], index: 0, kind: input, shape index: {}]   ;;  %s225_s1 = inlined_call_operand.vmem [shape: bf16[64,32], index: 1, kind: input, shape index: {}]   ;;  %s226_s2 = inlined_call_operand.vmem [shape: f32[1,64], index: 2, kind: input, shape index: {}]   ;;  %s227_s3 = inlined_call_operand.vmem [shape: f32[1,64], index: 3, kind: input, shape index: {}]   ;;  %s228_s4 = inlined_call_operand.vmem [shape: f32[2,32], index: 4, kind: output, shape index: {}]  }
   0x1   :  { %v22_v0 = vld [vmem:[%s224_s0] sm:$0x1]  ;;  %153 = vmatprep.subr.bf16.mxu0 %v173_v9  ;;  %v168_v10 = vld [vmem:[%s225_s1 + $0x8] sm:$0xff]   ;;  %v169_v11 = vld [vmem:[%s225_s1 + $0x10] sm:$0xff]   ;;  %161 = vmatprep.mubr.msk.bf16.mxu0 %vm174_vm1, %v173_v9  ;;  %vm91_vm3 = vcmask 523264   ;;  %vm135_vm4 = vcmask 254976  }
   0x2   :  { %v23_v1 = vunpack.c.l.bf16 %v22_v0  ;;  %v167_v8 = vld [vmem:[%s225_s1] sm:$0xff]   ;;  %v170_v12 = vld [vmem:[%s225_s1 + $0x18] sm:$0xff]  }
   0x3   :  { %154 = vmatpush3.bf16.msra.mxu0 %v167_v8  ;;  %v141_v17 = vld [vmem:[%s226_s2] ss:$0 sm:$0xff] }
   0x4   :  { %v25_v2 = vsel %vm24_vm0, %v23_v1, 0.0  ;;  %155 = vmatprep.subr.bf16.mxu0 %v173_v9  ;;  %v142_v19 = vld [vmem:[%s227_s3] ss:$0 sm:$0xff] }
   0x5   :  { %26 = vadd.xlane.f32.xlu0 %v25_v2 }
   0x7   :  { %156 = vmatpush3.bf16.msra.mxu0 %v168_v10 }
   0x8   :  { %157 = vmatprep.subr.bf16.mxu0 %v173_v9 }
   0xb   :  { %158 = vmatpush3.bf16.msra.mxu0 %v169_v11 }
   0xc   :  { %159 = vmatprep.subr.bf16.mxu0 %v173_v9 }
   0xf   :  { %160 = vmatpush3.bf16.msra.mxu0 %v170_v12 }
  0x92   :  { %v27_v3 = vpop.xlane.xlu0 %26 }
  0x93   :  { %v29_v4 = vmul.f32 0.015625, %v27_v3 }
  0x95   :  { %v30_v5 = vsub.f32 %v23_v1, %v29_v4 }
  0x97   :  { %v31_v6 = vmul.f32 %v30_v5, %v30_v5 }
  0x99   :  { %v32_v7 = vsel %vm24_vm0, %v31_v6, 0.0 }
  0x9a   :  { %33 = vadd.xlane.f32.xlu0 %v32_v7 }
 0x127   :  { %v34_v13 = vpop.xlane.xlu0 %33 }
 0x128   :  { %v35_v14 = vmul.f32 0.015625, %v34_v13 }
 0x12a   :  { %v36_v15 = vadd.f32 1e-05, %v35_v14 }
 0x12c   :  { %171 = vrsqrt.f32 %v36_v15 }
 0x136   :  { %v172_v16 = vpop.eup %171 }
 0x137   :  { %v38_v18 = vmul.f32 %v172_v16, %v30_v5 }
 0x139   :  { %v46_v20 = vmul.f32 %v141_v17, %v38_v18 }
 0x13b   :  { %v54_v21 = vadd.f32 %v142_v19, %v46_v20 }
 0x13d   :  { %v55_v22 = vpack.c.bf16 %v54_v21, %v54_v21 }
 0x13f   :  { %57 = vst.msk [vmem:[#allocation2] sm:$0x1] %vm56_vm2, %v55_v22 }
 0x146   :  { %v58_v23 = vld [vmem:[#allocation2] sm:$0x1] }
 0x147   :  { %162 = vmatmul.mubr.msk.bf16.vlgmr.msra.gmra.mrb[0].mxu0 %vm91_vm3, %v58_v23 }
 0x21a   :  { %v129_v24 = vpop.f32.mrb[0].mxu0 }
 0x21b   :  { %136 = vst.msk [vmem:[%s228_s4] sm:$0x3] %vm135_vm4, %v129_v24  ;;  %v163_v25 = vpop.f32.mrb[1].mxu0 }
 0x21c   :  { %v132_v26 = vpop.f32.mrb[2].mxu0 }
 0x21d   :  { %v164_v27 = vpop.f32.mrb[3].mxu0 }

// kernel: _lambda_.40
= control target key start
LH: loop header
LB: loop body
LE: loop exit
PB: predicated region body
PF: predicated region fallthrough
CT: control target
= control target key end

     0   :  { %v143_v0 = vmov 0.0   ;;  %vm144_vm0 = vmmov 0   ;;  %vm48_vm1 = vcmask 261120   ;;  %vm107_vm2 = vcmask 257024   ;;  %s191_s1 = inlined_call_operand.vmem [shape: bf16[32,32], index: 1, kind: input, shape index: {}]   ;;  %s192_s0 = inlined_call_operand.vmem [shape: bf16[16,32], index: 0, kind: input, shape index: {}]   ;;  %s193_s3 = inlined_call_operand.vmem [shape: bf16[16,32], index: 3, kind: input, shape index: {}]   ;;  %s194_s2 = inlined_call_operand.vmem [shape: f32[1,32], index: 2, kind: input, shape index: {}]   ;;  %s195_s4 = inlined_call_operand.vmem [shape: bf16[16,32], index: 4, kind: output, shape index: {}]  }
   0x1   :  { %130 = vmatprep.subr.bf16.mxu0 %v143_v0  ;;  %v140_v1 = vld [vmem:[%s191_s1] sm:$0xff]   ;;  %134 = vmatprep.mubr.msk.bf16.mxu0 %vm144_vm0, %v143_v0  ;;  %v141_v2 = vld [vmem:[%s191_s1 + $0x8] sm:$0xff]  }
   0x2   :  { %131 = vmatpush3.bf16.msra.mxu0 %v140_v1  ;;  %v142_v3 = vld [vmem:[%s192_s0] sm:$0xff]  }
   0x3   :  { %132 = vmatprep.subr.bf16.mxu0 %v143_v0  ;;  %v124_v4 = vld [vmem:[%s193_s3] sm:$0xff]  }
   0x4   :  { %v114_v5 = vld [vmem:[%s194_s2] ss:$0 sm:$0xff]  ;;  %v125_v6 = vunpack.c.l.bf16 %v124_v4  ;;  %v126_v10 = vunpack.c.h.bf16 %v124_v4 }
   0x6   :  { %133 = vmatpush3.bf16.msra.mxu0 %v141_v2 }
   0x9   :  { %135 = vmatmul.mubr.msk.bf16.vlgmr.msra.gmra.mrb[0].mxu0 %vm48_vm1, %v142_v3 }
  0xdc   :  { %v86_v7 = vpop.f32.mrb[0].mxu0 }
  0xdd   :  { %v87_v8 = vadd.f32 %v114_v5, %v86_v7  ;;  %v136_v9 = vpop.f32.mrb[1].mxu0 }
  0xde   :  { %v89_v11 = vpop.f32.mrb[2].mxu0 }
  0xdf   :  { %v97_v12 = vadd.f32 %v125_v6, %v87_v8  ;;  %v90_v13 = vadd.f32 %v114_v5, %v89_v11  ;;  %v137_v14 = vpop.f32.mrb[3].mxu0 }
  0xe1   :  { %v121_v15 = vpack.c.bf16 %v97_v12, %v97_v12  ;;  %v98_v16 = vadd.f32 %v126_v10, %v90_v13 }
  0xe3   :  { %108 = vst.msk [vmem:[%s195_s4] sm:$0xf] %vm107_vm2, %v121_v15  ;;  %v122_v17 = vpack.c.bf16 %v98_v16, %v98_v16 }
  0xe5   :  { %109 = vst.msk [vmem:[%s195_s4 + $0x4] sm:$0xf] %vm107_vm2, %v122_v17 }

// kernel: _lambda_.38
= control target key start
LH: loop header
LB: loop body
LE: loop exit
PB: predicated region body
PF: predicated region fallthrough
CT: control target
= control target key end

     0   :  { %vm29_vm0 = vcmask 261120   ;;  %v194_v16 = vmov 0.0   ;;  %vm195_vm1 = vmmov 0   ;;  %vm154_vm2 = vcmask 781312   ;;  %s256_s0 = inlined_call_operand.vmem [shape: bf16[16,32], index: 0, kind: input, shape index: {}]   ;;  %s257_s1 = inlined_call_operand.vmem [shape: bf16[32,96], index: 1, kind: input, shape index: {}]   ;;  %s258_s3 = inlined_call_operand.vmem [shape: f32[1,32], index: 3, kind: input, shape index: {}]   ;;  %s259_s4 = inlined_call_operand.vmem [shape: f32[1,32], index: 4, kind: input, shape index: {}]   ;;  %s260_s2 = inlined_call_operand.vmem [shape: f32[1,96], index: 2, kind: input, shape index: {}]   ;;  %s261_s5 = inlined_call_operand.vmem [shape: bf16[16,96], index: 5, kind: output, shape index: {}]  }
   0x1   :  { %v172_v0 = vld [vmem:[%s256_s0] sm:$0xff]   ;;  %178 = vmatprep.subr.bf16.mxu0 %v194_v16  ;;  %v189_v17 = vld [vmem:[%s257_s1 + $0x8] sm:$0xff]   ;;  %182 = vmatprep.mubr.msk.bf16.mxu0 %vm195_vm1, %v194_v16 }
   0x2   :  { %v173_v1 = vunpack.c.l.bf16 %v172_v0  ;;  %v174_v2 = vunpack.c.h.bf16 %v172_v0  ;;  %v188_v15 = vld [vmem:[%s257_s1] sm:$0xff]  }
   0x3   :  { %179 = vmatpush3.bf16.msra.mxu0 %v188_v15  ;;  %v161_v26 = vld [vmem:[%s258_s3] ss:$0 sm:$0xff] }
   0x4   :  { %v30_v3 = vsel %vm29_vm0, %v173_v1, 0.0  ;;  %v33_v4 = vsel %vm29_vm0, %v174_v2, 0.0  ;;  %180 = vmatprep.subr.bf16.mxu0 %v194_v16  ;;  %v162_v30 = vld [vmem:[%s259_s4] ss:$0 sm:$0xff] }
   0x5   :  { %31 = vadd.xlane.f32.xlu0 %v30_v3  ;;  %v163_v36 = vld [vmem:[%s260_s2] ss:$0 sm:$0xff] }
   0x7   :  { %181 = vmatpush3.bf16.msra.mxu0 %v189_v17 }
   0x9   :  { %34 = vadd.xlane.f32.xlu0 %v33_v4 }
  0x92   :  { %v32_v5 = vpop.xlane.xlu0 %31 }
  0x93   :  { %v37_v6 = vmul.f32 0.03125, %v32_v5 }
  0x95   :  { %v39_v7 = vsub.f32 %v173_v1, %v37_v6 }
  0x96   :  { %v35_v8 = vpop.xlane.xlu0 %34 }
  0x97   :  { %v38_v9 = vmul.f32 0.03125, %v35_v8  ;;  %v41_v10 = vmul.f32 %v39_v7, %v39_v7 }
  0x99   :  { %v40_v11 = vsub.f32 %v174_v2, %v38_v9  ;;  %v43_v12 = vsel %vm29_vm0, %v41_v10, 0.0 }
  0x9a   :  { %44 = vadd.xlane.f32.xlu1 %v43_v12 }
  0x9b   :  { %v42_v13 = vmul.f32 %v40_v11, %v40_v11 }
  0x9d   :  { %v46_v14 = vsel %vm29_vm0, %v42_v13, 0.0 }
  0x9e   :  { %47 = vadd.xlane.f32.xlu1 %v46_v14 }
 0x127   :  { %v45_v18 = vpop.xlane.xlu1 %44 }
 0x128   :  { %v49_v19 = vmul.f32 0.03125, %v45_v18 }
 0x12a   :  { %v51_v20 = vadd.f32 1e-05, %v49_v19 }
 0x12b   :  { %v48_v21 = vpop.xlane.xlu1 %47 }
 0x12c   :  { %190 = vrsqrt.f32 %v51_v20  ;;  %v50_v22 = vmul.f32 0.03125, %v48_v21 }
 0x12e   :  { %v52_v23 = vadd.f32 1e-05, %v50_v22 }
 0x130   :  { %192 = vrsqrt.f32 %v52_v23 }
 0x136   :  { %v191_v24 = vpop.eup %190 }
 0x137   :  { %v55_v25 = vmul.f32 %v191_v24, %v39_v7 }
 0x139   :  { %v64_v28 = vmul.f32 %v161_v26, %v55_v25 }
 0x13a   :  { %v193_v27 = vpop.eup %192 }
 0x13b   :  { %v56_v29 = vmul.f32 %v193_v27, %v40_v11  ;;  %v73_v32 = vadd.f32 %v162_v30, %v64_v28 }
 0x13d   :  { %v65_v31 = vmul.f32 %v161_v26, %v56_v29 }
 0x13f   :  { %v74_v33 = vadd.f32 %v162_v30, %v65_v31 }
 0x141   :  { %v75_v34 = vpack.c.bf16 %v74_v33, %v73_v32 }
 0x143   :  { %76 = vst.msk [vmem:[#allocation2] sm:$0xff] %vm29_vm0, %v75_v34 }
 0x14a   :  { %v77_v35 = vld [vmem:[#allocation2] sm:$0xff] }
 0x14b   :  { %183 = vmatmul.mubr.msk.bf16.vlgmr.msra.gmra.mrb[0].mxu0 %vm29_vm0, %v77_v35 }
 0x21e   :  { %v139_v37 = vpop.f32.mrb[0].mxu0 }
 0x21f   :  { %v140_v38 = vadd.f32 %v163_v36, %v139_v37  ;;  %v184_v39 = vpop.f32.mrb[1].mxu0 }
 0x220   :  { %v142_v40 = vpop.f32.mrb[2].mxu0 }
 0x221   :  { %v169_v41 = vpack.c.bf16 %v140_v38, %v140_v38  ;;  %v143_v42 = vadd.f32 %v163_v36, %v142_v40  ;;  %v185_v43 = vpop.f32.mrb[3].mxu0 }
 0x223   :  { %155 = vst.msk [vmem:[%s261_s5] sm:$0xf] %vm154_vm2, %v169_v41  ;;  %v170_v44 = vpack.c.bf16 %v143_v42, %v143_v42 }
 0x225   :  { %156 = vst.msk [vmem:[%s261_s5 + $0x4] sm:$0xf] %vm154_vm2, %v170_v44 }

// kernel: _lambda_.39
= control target key start
LH: loop header
LB: loop body
LE: loop exit
PB: predicated region body
PF: predicated region fallthrough
CT: control target
= control target key end

     0   :  { %s776_s12 = smov 0   ;;  %s778_s13 = smov 0   ;;  %s839_s0 = inlined_call_operand.vmem [shape: bf16[2,6,8,16], index: 0, kind: input, shape index: {}, may-alias: {0,1,2}]   ;;  %s840_s1 = inlined_call_operand.vmem [shape: bf16[2,6,8,16], index: 1, kind: input, shape index: {}, may-alias: {0,1,2}]   ;;  %s841_s2 = inlined_call_operand.vmem [shape: bf16[2,6,8,16], index: 2, kind: input, shape index: {}, may-alias: {0,1,2}]   ;;  %s842_s3 = inlined_call_operand.vmem [shape: bf16[2,8,32], index: 3, kind: output, shape index: {}]  }
   0x1   :  { %s780_s14 = smov 0  }
   0x2 LB: > { %s25_s15 = sadd.s32 1, %s747_s13  ;;  %p644_p0 = scmp.ge.s32.totalorder %s751_s14, 1  ;;  %s751_s14 = sphi %s780_s14, %s13_s14   ;;  %s747_s13 = sphi %s778_s13, %s844_s13   ;;  %s743_s12 = sphi %s776_s12, %s843_s12  }
   0x3   : > { %p27_p1 = scmp.ge.s32.totalorder %s25_s15, 2  ;;  %p200_p2 = scmp.lt.s32.totalorder %s751_s14, 3 }
   0x5   : > { %s846_s15 = smov (%p27_p1, %s25_s15), 0  ;;  %p201_p3 = pnand %p644_p0, %p200_p2 }
   0x6   : > { %p251_p4 = scmp.lt.s32.totalorder (!%p201_p3), %s743_s12, 1  ;;  %v753_v0 = vmov (!%p201_p3), 0.0   ;;  %vm754_vm0 = vmmov (!%p201_p3), 0   ;;  %vm301_vm1 = vcmask (!%p201_p3), 130048   ;;  %v394_v9 = vlaneseq (!%p201_p3)  ;;  %s755_s28 = smov (!%p201_p3), 16  }
   0x7   : > { %204 = sbr.rel (%p201_p3) target bundleno = 888 (0x378), region = 32  ;;  %673 = vmatprep.subr.bf16.mxu1 (!%p201_p3), %v753_v0  ;;  %667 = vmatprep.subr.bf16.mxu0 (!%p201_p3), %v753_v0  ;;  %vm401_vm3 = vcmask (!%p201_p3), 64512   ;;  %vm429_vm4 = vcmask (!%p201_p3), 1043456   ;;  %vm525_vm5 = vcmask (!%p201_p3), 257024  }
   0x8   : > { %675 = vmatprep.mubr.msk.bf16.mxu1 (!%p201_p3), %vm754_vm0, %v753_v0  ;;  %669 = vmatprep.mubr.msk.bf16.mxu0 (!%p201_p3), %vm754_vm0, %v753_v0  ;;  %v395_v10 = vshrl.u32 (!%p201_p3), %v394_v9, 7  ;;  %v397_v11 = vand.u32 (!%p201_p3), 127, %v394_v9 }
   0xa   : > { %vm398_vm2 = vcmp.gt.s32.totalorder (!%p201_p3), %v397_v11, %v395_v10 }
   0xe   : > { %s848_s12 = smov (!%p251_p4, %s743_s12), 1 }
   0xf   : > { %s799_s16 = smul.u32 24, %s848_s12  ;;  %s648_s29 = sshll.u32 %s848_s12, 2 }
  0x10   : > { %s290_s5 = scalar_lea.vmem %s842_s3, %s648_s29 }
  0x11   : > { %s656_s17 = sadd.s32 8, %s799_s16  ;;  %s258_s23 = scalar_lea.vmem %s839_s0, %s799_s16 }
  0x12   : > { %s269_s20 = scalar_lea.vmem %s840_s1, %s656_s17  ;;  %v294_v5 = vld [vmem:[%s258_s23 + $0x4] sm:$0xf]  ;;  %v293_v6 = vld [vmem:[%s258_s23] sm:$0xf]  ;;  %s658_s24 = sadd.s32 16, %s799_s16 }
  0x13   : > { %v298_v1 = vld [vmem:[%s269_s20 + $0x4] sm:$0xf]  ;;  %v297_v2 = vld [vmem:[%s269_s20] sm:$0xf]  ;;  %v296_v7 = vmul.bf16 1048592000, %v294_v5  ;;  %s281_s27 = scalar_lea.vmem %s841_s2, %s658_s24 }
  0x14   : > { %v352_v3 = vsel %vm301_vm1, %v298_v1, 0  ;;  %v306_v4 = vsel %vm301_vm1, %v297_v2, 0  ;;  %v295_v8 = vmul.bf16 1048592000, %v293_v6  ;;  %v300_v34 = vld [vmem:[%s281_s27 + $0x4] sm:$0xf] }
  0x15   : > { %674 = vmatpush3.bf16.xpose.msra.mxu1 %v352_v3  ;;  %668 = vmatpush3.bf16.xpose.msra.mxu0 %v306_v4  ;;  %v477_v35 = vsel %vm429_vm4, %v300_v34, 0  ;;  %v299_v36 = vld [vmem:[%s281_s27] sm:$0xf] }
  0x16   : > { %685 = vmatprep.subr.bf16.mxu1 %v753_v0  ;;  %679 = vmatprep.subr.bf16.mxu0 %v753_v0  ;;  %v431_v37 = vsel %vm429_vm4, %v299_v36, 0 }
  0x1c   : > { %676 = vmatmul.mubr.msk.bf16.vlgmr.msra.gmra.mrb[0].mxu1 %vm301_vm1, %v296_v7  ;;  %670 = vmatmul.mubr.msk.bf16.vlgmr.msra.gmra.mrb[0].mxu0 %vm301_vm1, %v295_v8 }
  0x1d   : > { %687 = vmatprep.mubr.msk.bf16.mxu1 %vm754_vm0, %v753_v0  ;;  %681 = vmatprep.mubr.msk.bf16.mxu0 %vm754_vm0, %v753_v0 }
  0x1e   : > { %686 = vmatpush3.bf16.msra.mxu1 %v477_v35  ;;  %680 = vmatpush3.bf16.msra.mxu0 %v431_v37 }
  0xef   : > { %v388_v12 = vpop.f32.mrb[0].mxu1  ;;  %v342_v13 = vpop.f32.mrb[0].mxu0 }
  0xf0   : > { %v400_v14 = vsel %vm398_vm2, -inf, %v388_v12  ;;  %v677_v15 = vpop.f32.mrb[1].mxu1  ;;  %v399_v16 = vsel %vm398_vm2, -inf, %v342_v13  ;;  %v671_v17 = vpop.f32.mrb[1].mxu0 }
  0xf1   : > { %v391_v18 = vpop.f32.mrb[2].mxu1  ;;  %v405_v19 = vsel %vm401_vm3, %v400_v14, -inf  ;;  %v345_v20 = vpop.f32.mrb[2].mxu0  ;;  %v402_v23 = vsel %vm401_vm3, %v399_v16, -inf }
  0xf2   : > { %406 = vmax.xlane.f32.xlu0 %v405_v19  ;;  %v678_v21 = vpop.f32.mrb[3].mxu1  ;;  %v672_v22 = vpop.f32.mrb[3].mxu0 }
  0xf6   : > { %403 = vmax.xlane.f32.xlu0 %v402_v23 }
 0x17f   : > { %v407_v24 = vpop.xlane.xlu0 %406 }
 0x180   : > { %v409_v25 = vsub.f32 %v400_v14, %v407_v24 }
 0x182   : > { %v412_v26 = vmul.f32 1.442695, %v409_v25 }
 0x183   : > { %v404_v27 = vpop.xlane.xlu0 %403 }
 0x184   : > { %721 = vpow2.f32 %v412_v26  ;;  %v408_v28 = vsub.f32 %v399_v16, %v404_v27 }
 0x186   : > { %v410_v29 = vmul.f32 1.442695, %v408_v28 }
 0x188   : > { %723 = vpow2.f32 %v410_v29 }
 0x18e   : > { %v722_v30 = vpop.eup %721 }
 0x18f   : > { %v417_v31 = vsel %vm401_vm3, %v722_v30, 0.0 }
 0x190   : > { %418 = vadd.xlane.f32.xlu1 %v417_v31 }
 0x192   : > { %v724_v32 = vpop.eup %723 }
 0x193   : > { %v414_v33 = vsel %vm401_vm3, %v724_v32, 0.0 }
 0x194   : > { %415 = vadd.xlane.f32.xlu1 %v414_v33 }
 0x21d   : > { %v419_v38 = vpop.xlane.xlu1 %418 }
 0x21e   : > { %725 = vrcp.f32 %v419_v38 }
 0x221   : > { %v416_v39 = vpop.xlane.xlu1 %415 }
 0x222   : > { %727 = vrcp.f32 %v416_v39 }
 0x228   : > { %v726_v40 = vpop.eup %725 }
 0x229   : > { %v423_v41 = vmul.f32 %v726_v40, %v722_v30 }
 0x22b   : > { %v425_v42 = vpack.c.bf16 %v423_v41, %v423_v41 }
 0x22c   : > { %v728_v43 = vpop.eup %727 }
 0x22d   : > { %v422_v44 = vmul.f32 %v728_v43, %v724_v32  ;;  %688 = vmatmul.mubr.msk.bf16.vlgmr.msra.gmra.mrb[4].mxu1 %vm401_vm3, %v425_v42 }
 0x22f   : > { %v424_v45 = vpack.c.bf16 %v422_v44, %v422_v44 }
 0x231   : > { %682 = vmatmul.mubr.msk.bf16.vlgmr.msra.gmra.mrb[4].mxu0 %vm401_vm3, %v424_v45 }
 0x300   : > { %v513_v46 = vpop.f32.mrb[4].mxu1 }
 0x301   : > { %v689_v47 = vpop.f32.mrb[5].mxu1  ;;  %520 = vrot.lane.b32.xlu0 %v513_v46, %s755_s28 }
 0x302   : > { %v516_v48 = vpop.f32.mrb[6].mxu1 }
 0x303   : > { %v690_v49 = vpop.f32.mrb[7].mxu1 }
 0x304   : > { %v467_v50 = vpop.f32.mrb[4].mxu0 }
 0x305   : > { %v683_v51 = vpop.f32.mrb[5].mxu0 }
 0x306   : > { %v470_v52 = vpop.f32.mrb[6].mxu0 }
 0x307   : > { %v684_v53 = vpop.f32.mrb[7].mxu0 }
 0x373   : > { %v521_v54 = vpop.permute.xlu0 %520 }
 0x374   : > { %v523_v55 = vsel %vm301_vm1, %v467_v50, %v521_v54 }
 0x375   : > { %v524_v56 = vpack.c.bf16 %v523_v55, %v523_v55 }
 0x377   : > { %526 = vst.msk [vmem:[%s290_s5] sm:$0xf] %vm525_vm5, %v524_v56 }
 0x378 PF: > { %s13_s14 = sadd.s32 1, %s751_s14   ;;  %s843_s12 = smov %s747_s13 }
 0x379   : > { %p10_p5 = scmp.ge.s32.totalorder %s13_s14, 4   ;;  %s844_s13 = smov %s846_s15 }
 0x37b   :  { %12 = sbr.rel (!%p10_p5) target bundleno = 2 (0x2), region = 68 }

// kernel: _lambda_.41
= control target key start
LH: loop header
LB: loop body
LE: loop exit
PB: predicated region body
PF: predicated region fallthrough
CT: control target
= control target key end

     0   :  { %vm29_vm0 = vcmask 261120   ;;  %v224_v16 = vmov 0.0   ;;  %vm225_vm1 = vmmov 0   ;;  %s283_s0 = inlined_call_operand.vmem [shape: bf16[16,32], index: 0, kind: input, shape index: {}]   ;;  %s284_s1 = inlined_call_operand.vmem [shape: bf16[32,128], index: 1, kind: input, shape index: {}]   ;;  %s285_s3 = inlined_call_operand.vmem [shape: f32[1,32], index: 3, kind: input, shape index: {}]   ;;  %s286_s4 = inlined_call_operand.vmem [shape: f32[1,32], index: 4, kind: input, shape index: {}]   ;;  %s287_s2 = inlined_call_operand.vmem [shape: f32[1,128], index: 2, kind: input, shape index: {}]   ;;  %s288_s5 = inlined_call_operand.vmem [shape: bf16[16,128], index: 5, kind: output, shape index: {}]  }
   0x1   :  { %v189_v0 = vld [vmem:[%s283_s0] sm:$0xff]   ;;  %200 = vmatprep.subr.bf16.mxu0 %v224_v16  ;;  %v211_v17 = vld [vmem:[%s284_s1 + $0x8] sm:$0xff]   ;;  %204 = vmatprep.mubr.msk.bf16.mxu0 %vm225_vm1, %v224_v16 }
   0x2   :  { %v190_v1 = vunpack.c.l.bf16 %v189_v0  ;;  %v191_v2 = vunpack.c.h.bf16 %v189_v0  ;;  %v210_v15 = vld [vmem:[%s284_s1] sm:$0xff]  }
   0x3   :  { %201 = vmatpush3.bf16.msra.mxu0 %v210_v15  ;;  %v176_v26 = vld [vmem:[%s285_s3] ss:$0 sm:$0xff] }
   0x4   :  { %v30_v3 = vsel %vm29_vm0, %v190_v1, 0.0  ;;  %v33_v4 = vsel %vm29_vm0, %v191_v2, 0.0  ;;  %202 = vmatprep.subr.bf16.mxu0 %v224_v16  ;;  %v177_v30 = vld [vmem:[%s286_s4] ss:$0 sm:$0xff] }
   0x5   :  { %31 = vadd.xlane.f32.xlu0 %v30_v3  ;;  %v178_v36 = vld [vmem:[%s287_s2] ss:$0 sm:$0xff] }
   0x7   :  { %203 = vmatpush3.bf16.msra.mxu0 %v211_v17 }
   0x9   :  { %34 = vadd.xlane.f32.xlu0 %v33_v4 }
  0x92   :  { %v32_v5 = vpop.xlane.xlu0 %31 }
  0x93   :  { %v37_v6 = vmul.f32 0.03125, %v32_v5 }
  0x95   :  { %v39_v7 = vsub.f32 %v190_v1, %v37_v6 }
  0x96   :  { %v35_v8 = vpop.xlane.xlu0 %34 }
  0x97   :  { %v38_v9 = vmul.f32 0.03125, %v35_v8  ;;  %v41_v10 = vmul.f32 %v39_v7, %v39_v7 }
  0x99   :  { %v40_v11 = vsub.f32 %v191_v2, %v38_v9  ;;  %v43_v12 = vsel %vm29_vm0, %v41_v10, 0.0 }
  0x9a   :  { %44 = vadd.xlane.f32.xlu1 %v43_v12 }
  0x9b   :  { %v42_v13 = vmul.f32 %v40_v11, %v40_v11 }
  0x9d   :  { %v46_v14 = vsel %vm29_vm0, %v42_v13, 0.0 }
  0x9e   :  { %47 = vadd.xlane.f32.xlu1 %v46_v14 }
 0x127   :  { %v45_v18 = vpop.xlane.xlu1 %44 }
 0x128   :  { %v49_v19 = vmul.f32 0.03125, %v45_v18 }
 0x12a   :  { %v51_v20 = vadd.f32 1e-05, %v49_v19 }
 0x12b   :  { %v48_v21 = vpop.xlane.xlu1 %47 }
 0x12c   :  { %212 = vrsqrt.f32 %v51_v20  ;;  %v50_v22 = vmul.f32 0.03125, %v48_v21 }
 0x12e   :  { %v52_v23 = vadd.f32 1e-05, %v50_v22 }
 0x130   :  { %214 = vrsqrt.f32 %v52_v23 }
 0x136   :  { %v213_v24 = vpop.eup %212 }
 0x137   :  { %v55_v25 = vmul.f32 %v213_v24, %v39_v7 }
 0x139   :  { %v64_v28 = vmul.f32 %v176_v26, %v55_v25 }
 0x13a   :  { %v215_v27 = vpop.eup %214 }
 0x13b   :  { %v56_v29 = vmul.f32 %v215_v27, %v40_v11  ;;  %v73_v32 = vadd.f32 %v177_v30, %v64_v28 }
 0x13d   :  { %v65_v31 = vmul.f32 %v176_v26, %v56_v29 }
 0x13f   :  { %v74_v33 = vadd.f32 %v177_v30, %v65_v31 }
 0x141   :  { %v75_v34 = vpack.c.bf16 %v74_v33, %v73_v32 }
 0x143   :  { %76 = vst.msk [vmem:[#allocation2] sm:$0xff] %vm29_vm0, %v75_v34 }
 0x14a   :  { %v77_v35 = vld [vmem:[#allocation2] sm:$0xff] }
 0x14b   :  { %205 = vmatmul.mubr.msk.bf16.vlgmr.msra.gmra.mrb[0].mxu0 %vm29_vm0, %v77_v35 }
 0x21e   :  { %v139_v37 = vpop.f32.mrb[0].mxu0 }
 0x21f   :  { %v140_v38 = vadd.f32 %v178_v36, %v139_v37  ;;  %v206_v39 = vpop.f32.mrb[1].mxu0 }
 0x220   :  { %v142_v40 = vpop.f32.mrb[2].mxu0 }
 0x221   :  { %v182_v41 = vmul.f32 -1.702, %v140_v38  ;;  %v143_v42 = vadd.f32 %v178_v36, %v142_v40  ;;  %v207_v43 = vpop.f32.mrb[3].mxu0 }
 0x223   :  { %v150_v44 = vmul.f32 1.442695, %v182_v41  ;;  %v183_v45 = vmul.f32 -1.702, %v143_v42 }
 0x225   :  { %216 = vpow2.f32 %v150_v44  ;;  %v152_v46 = vmul.f32 1.442695, %v183_v45 }
 0x227   :  { %218 = vpow2.f32 %v152_v46 }
 0x22f   :  { %v217_v47 = vpop.eup %216 }
 0x230   :  { %v154_v48 = vadd.f32 1.0, %v217_v47 }
 0x231   :  { %v219_v49 = vpop.eup %218 }
 0x232   :  { %220 = vrcp.f32 %v154_v48  ;;  %v155_v50 = vadd.f32 1.0, %v219_v49 }
 0x234   :  { %222 = vrcp.f32 %v155_v50 }
 0x23c   :  { %v221_v51 = vpop.eup %220 }
 0x23d   :  { %v160_v53 = vmul.f32 %v221_v51, %v140_v38 }
 0x23e   :  { %v223_v52 = vpop.eup %222 }
 0x23f   :  { %v161_v54 = vmul.f32 %v223_v52, %v143_v42 }
 0x241   :  { %v195_v55 = vpack.c.bf16 %v161_v54, %v160_v53 }
 0x243   :  { %196 = vst [vmem:[%s288_s5] sm:$0xff] %v195_v55  }

// kernel: _lambda_.42
= control target key start
LH: loop header
LB: loop body
LE: loop exit
PB: predicated region body
PF: predicated region fallthrough
CT: control target
= control target key end

     0   :  { %v217_v0 = vmov 0.0   ;;  %vm218_vm0 = vmmov 0   ;;  %vm152_vm1 = vcmask 257024   ;;  %s283_s1 = inlined_call_operand.vmem [shape: bf16[128,32], index: 1, kind: input, shape index: {}]   ;;  %s284_s0 = inlined_call_operand.vmem [shape: bf16[16,128], index: 0, kind: input, shape index: {}]   ;;  %s285_s3 = inlined_call_operand.vmem [shape: bf16[16,32], index: 3, kind: input, shape index: {}]   ;;  %s286_s2 = inlined_call_operand.vmem [shape: f32[1,32], index: 2, kind: input, shape index: {}]   ;;  %s287_s4 = inlined_call_operand.vmem [shape: bf16[16,32], index: 4, kind: output, shape index: {}]  }
   0x1   :  { %186 = vmatprep.subr.bf16.mxu0 %v217_v0  ;;  %v208_v1 = vld [vmem:[%s283_s1] sm:$0xff]   ;;  %202 = vmatprep.mubr.msk.bf16.mxu0 %vm218_vm0, %v217_v0  ;;  %v209_v2 = vld [vmem:[%s283_s1 + $0x8] sm:$0xff]   ;;  %v210_v3 = vld [vmem:[%s283_s1 + $0x10] sm:$0xff]  }
   0x2   :  { %187 = vmatpush3.bf16.msra.mxu0 %v208_v1  ;;  %v211_v4 = vld [vmem:[%s283_s1 + $0x18] sm:$0xff]   ;;  %v212_v5 = vld [vmem:[%s283_s1 + $0x20] sm:$0xff]   ;;  %v213_v6 = vld [vmem:[%s283_s1 + $0x28] sm:$0xff]  }
   0x3   :  { %188 = vmatprep.subr.bf16.mxu0 %v217_v0  ;;  %v214_v7 = vld [vmem:[%s283_s1 + $0x30] sm:$0xff]   ;;  %v215_v8 = vld [vmem:[%s283_s1 + $0x38] sm:$0xff]   ;;  %v216_v9 = vld [vmem:[%s284_s0] sm:$0xff]  }
   0x4   :  { %v174_v10 = vld [vmem:[%s285_s3] sm:$0xff]  }
   0x5   :  { %v159_v11 = vld [vmem:[%s286_s2] ss:$0 sm:$0xff]  ;;  %v175_v12 = vunpack.c.l.bf16 %v174_v10  ;;  %v176_v16 = vunpack.c.h.bf16 %v174_v10 }
   0x6   :  { %189 = vmatpush3.bf16.msra.mxu0 %v209_v2 }
   0x7   :  { %190 = vmatprep.subr.bf16.mxu0 %v217_v0 }
   0xa   :  { %191 = vmatpush3.bf16.msra.mxu0 %v210_v3 }
   0xb   :  { %192 = vmatprep.subr.bf16.mxu0 %v217_v0 }
   0xe   :  { %193 = vmatpush3.bf16.msra.mxu0 %v211_v4 }
   0xf   :  { %194 = vmatprep.subr.bf16.mxu0 %v217_v0 }
  0x12   :  { %195 = vmatpush3.bf16.msra.mxu0 %v212_v5 }
  0x13   :  { %196 = vmatprep.subr.bf16.mxu0 %v217_v0 }
  0x16   :  { %197 = vmatpush3.bf16.msra.mxu0 %v213_v6 }
  0x17   :  { %198 = vmatprep.subr.bf16.mxu0 %v217_v0 }
  0x1a   :  { %199 = vmatpush3.bf16.msra.mxu0 %v214_v7 }
  0x1b   :  { %200 = vmatprep.subr.bf16.mxu0 %v217_v0 }
  0x1e   :  { %201 = vmatpush3.bf16.msra.mxu0 %v215_v8 }
  0x21   :  { %203 = vmatmul.mubr.bf16.vlgmr.msra.gmra.mrb[0].mxu0 %v216_v9 }
  0xf4   :  { %v131_v13 = vpop.f32.mrb[0].mxu0 }
  0xf5   :  { %v132_v14 = vadd.f32 %v159_v11, %v131_v13  ;;  %v204_v15 = vpop.f32.mrb[1].mxu0 }
  0xf6   :  { %v134_v17 = vpop.f32.mrb[2].mxu0 }
  0xf7   :  { %v142_v18 = vadd.f32 %v175_v12, %v132_v14  ;;  %v135_v19 = vadd.f32 %v159_v11, %v134_v17  ;;  %v205_v20 = vpop.f32.mrb[3].mxu0 }
  0xf9   :  { %v171_v21 = vpack.c.bf16 %v142_v18, %v142_v18  ;;  %v143_v22 = vadd.f32 %v176_v16, %v135_v19 }
  0xfb   :  { %153 = vst.msk [vmem:[%s287_s4] sm:$0xf] %vm152_vm1, %v171_v21  ;;  %v172_v23 = vpack.c.bf16 %v143_v22, %v143_v22 }
  0xfd   :  { %154 = vst.msk [vmem:[%s287_s4 + $0x4] sm:$0xf] %vm152_vm1, %v172_v23 }

// kernel: _lambda_.49
= control target key start
LH: loop header
LB: loop body
LE: loop exit
PB: predicated region body
PF: predicated region fallthrough
CT: control target
= control target key end

     0   :  { %11 = vsyncpa [#allocation4], 0  ;;  %vm22_vm0 = vcmask 254976   ;;  %s279_s0 = inlined_call_operand.vmem [shape: f32[2,32], index: 0, kind: input, shape index: {}]   ;;  %s280_s1 = inlined_call_operand.vmem [shape: f32[2,32], index: 1, kind: input, shape index: {}]   ;;  %s281_s2 = inlined_call_operand.<no memory space> [shape: f32[1,1], index: 2, kind: input, shape index: {}]   ;;  %s282_s3 = inlined_call_operand.hbm [shape: f32[2,2], index: 3, kind: output, shape index: {0}]   ;;  %s283_s4 = inlined_call_operand.hbm [shape: f32[2,32], index: 4, kind: output, shape index: {1}]  }
   0x1   :  { %v20_v0 = vld [vmem:[%s280_s1] sm:$0x3] }
   0x2   :  { %v19_v1 = vld [vmem:[%s279_s0] sm:$0x3]  ;;  %v28_v2 = vmul.f32 %v20_v0, %v20_v0 }
   0x3   :  { %v21_v3 = vmul.f32 %v19_v1, %v19_v1 }
   0x4   :  { %12 = vsyncpa [#allocation6], 0  ;;  %v29_v4 = vsel %vm22_vm0, %v28_v2, 0.0  ;;  %v214_v6 = vmov 0.0   ;;  %vm215_vm1 = vmmov 0   ;;  %vm35_vm2 = vcmask 261120  }
   0x5   :  { %30 = vadd.xlane.f32.xlu0 %v29_v4  ;;  %v23_v5 = vsel %vm22_vm0, %v21_v3, 0.0  ;;  %153 = vmatprep.subr.mxu0 %v214_v6  ;;  %s216_s0 = smov [#allocation5]  }
   0x6   :  { %155 = vmatprep.mubr.msk.f32.mxu0 %vm215_vm1, %v214_v6  ;;  %s137_s1 = sshll.u32 %s216_s0, 4  ;;  %s138_s1 = int_to_ptr.vmem [resolvable:$true] %s137_s1 }
   0x7   :  { %s166_s19 = scalar_lea.vmem %s138_s1, 32  ;;  %p171_p1 = scmp.lt.s32.totalorder %s138_s1, %s138_s1 }
   0x8   :  { %p167_p0 = scmp.ne.s32.totalorder %s138_s1, %s166_s19  ;;  %p172_p2 = scmp.lt.s32.totalorder %s166_s19, %s166_s19 }
   0x9   :  { %24 = vadd.xlane.f32.xlu0 %v23_v5 }
   0xa   :  { %p173_p3 = por %p172_p2, %p171_p1 }
   0xc   :  { %p174_p4 = pnand %p173_p3, %p167_p0 }
  0x92   :  { %v31_v7 = vpop.xlane.xlu0 %30 }
  0x93   :  { %162 = vrsqrt.f32 %v31_v7 }
  0x96   :  { %v25_v8 = vpop.xlane.xlu0 %24 }
  0x97   :  { %164 = vrsqrt.f32 %v25_v8 }
  0x9d   :  { %v163_v9 = vpop.eup %162 }
  0x9e   :  { %v33_v10 = vmul.f32 %v163_v9, %v20_v0 }
  0xa0   :  { %154 = vmatpush3.xpose.msk.msra.mxu0 %vm35_vm2, %v33_v10 }
  0xa1   :  { %v165_v11 = vpop.eup %164 }
  0xa2   :  { %v27_v12 = vmul.f32 %v165_v11, %v19_v1 }
  0xa4   :  { %156 = vmatmul.mubr.msk.f32.vlgmr.msra.gmra.mrb[0].mxu0 %vm35_vm2, %v27_v12  ;;  %120 = vst.msk [vmem:[#allocation5] sm:$0x3] %vm22_vm0, %v27_v12 }
  0xa5   :  { %177 = shalt.err (!%p174_p4)
}
  0xa6   :  { %s178_s22 = scalar_lea.hbm %s283_s4, 32 }
  0xa7   :  { %p179_p5 = scmp.ne.s32.totalorder %s283_s4, %s178_s22  ;;  %p182_p6 = scmp.lt.u32.totalorder %s178_s22, %s283_s4 }
  0xa9   :  { %p184_p7 = pnand %p182_p6, %p179_p5 }
  0xab   :  { %187 = shalt.err (!%p184_p7)
}
  0xac   :  { %140 = dma.vmem_to_hbm [thread:$0]  %s138_s1, 32, %s283_s4, [#allocation6]   ;;  %v112_v13 = vstv %s281_s2  ;;  %vm114_vm3 = vcmask 9216  }
  0xad   :  { %s217_s5 = smov [#allocation3]  }
  0xae   :  { %s127_s6 = sshll.u32 %s217_s5, 4  ;;  %s128_s6 = int_to_ptr.vmem [resolvable:$true] %s127_s6 }
  0xaf   :  { %s188_s7 = scalar_lea.vmem %s128_s6, 32  ;;  %p193_p9 = scmp.lt.s32.totalorder %s128_s6, %s128_s6 }
  0xb0   :  { %p189_p8 = scmp.ne.s32.totalorder %s128_s6, %s188_s7  ;;  %p194_p10 = scmp.lt.s32.totalorder %s188_s7, %s188_s7 }
  0xb2   :  { %p195_p11 = por %p194_p10, %p193_p9 }
  0xb4   :  { %p196_p12 = pnand %p195_p11, %p189_p8 }
 0x177   :  { %v108_v14 = vpop.f32.mrb[0].mxu0 }
 0x178   :  { %v113_v15 = vmul.f32 %v112_v13, %v108_v14  ;;  %v157_v16 = vpop.f32.mrb[1].mxu0 }
 0x17a   :  { %115 = vst.msk [vmem:[#allocation3] sm:$0x3] %vm114_vm3, %v113_v15 }
 0x17b   :  { %199 = shalt.err (!%p196_p12)
}
 0x17c   :  { %s200_s9 = scalar_lea.hbm %s282_s3, 32 }
 0x17d   :  { %p201_p13 = scmp.ne.s32.totalorder %s282_s3, %s200_s9  ;;  %p204_p0 = scmp.lt.u32.totalorder %s200_s9, %s282_s3 }
 0x17f   :  { %p206_p1 = pnand %p204_p0, %p201_p13 }
 0x181   :  { %209 = shalt.err (!%p206_p1)
}
 0x182   :  { %130 = dma.vmem_to_hbm [thread:$0]  %s128_s6, 32, %s282_s3, [#allocation4]  }
 0x183   :  { %210 = dma.done.wait [#allocation4], 32  }
 0x184   :  { %211 = vsyncadd [#allocation4], 4294967264 }
 0x185   :  { %212 = dma.done.wait [#allocation6], 32  }
 0x186   :  { %213 = vsyncadd [#allocation6], 4294967264 }
 0x187   :  { %147 = vsyncpa [#allocation4], 1 }
 0x188   :  { %148 = vsyncpa [#allocation6], 1 }

// kernel: _lambda_.48
= control target key start
LH: loop header
LB: loop body
LE: loop exit
PB: predicated region body
PF: predicated region fallthrough
CT: control target
= control target key end

     0   :  { %vm24_vm0 = vcmask 254976   ;;  %v147_v9 = vmov 0.0   ;;  %vm148_vm1 = vmmov 0   ;;  %vm56_vm2 = vcmask 253952   ;;  %s195_s0 = inlined_call_operand.vmem [shape: bf16[2,32], index: 0, kind: input, shape index: {}]   ;;  %s196_s1 = inlined_call_operand.vmem [shape: bf16[32,32], index: 1, kind: input, shape index: {}]   ;;  %s197_s2 = inlined_call_operand.vmem [shape: f32[1,32], index: 2, kind: input, shape index: {}]   ;;  %s198_s3 = inlined_call_operand.vmem [shape: f32[1,32], index: 3, kind: input, shape index: {}]   ;;  %s199_s4 = inlined_call_operand.vmem [shape: f32[2,32], index: 4, kind: output, shape index: {}]  }
   0x1   :  { %v22_v0 = vld [vmem:[%s195_s0] sm:$0x1]  ;;  %133 = vmatprep.subr.bf16.mxu0 %v147_v9  ;;  %v144_v10 = vld [vmem:[%s196_s1 + $0x8] sm:$0xff]   ;;  %137 = vmatprep.mubr.msk.bf16.mxu0 %vm148_vm1, %v147_v9  ;;  %vm75_vm3 = vcmask 261120  }
   0x2   :  { %v23_v1 = vunpack.c.l.bf16 %v22_v0  ;;  %v143_v8 = vld [vmem:[%s196_s1] sm:$0xff]  }
   0x3   :  { %134 = vmatpush3.bf16.msra.mxu0 %v143_v8  ;;  %v125_v15 = vld [vmem:[%s197_s2] ss:$0 sm:$0xff] }
   0x4   :  { %v25_v2 = vsel %vm24_vm0, %v23_v1, 0.0  ;;  %135 = vmatprep.subr.bf16.mxu0 %v147_v9  ;;  %v126_v17 = vld [vmem:[%s198_s3] ss:$0 sm:$0xff] }
   0x5   :  { %26 = vadd.xlane.f32.xlu0 %v25_v2 }
   0x7   :  { %136 = vmatpush3.bf16.msra.mxu0 %v144_v10 }
  0x92   :  { %v27_v3 = vpop.xlane.xlu0 %26 }
  0x93   :  { %v29_v4 = vmul.f32 0.03125, %v27_v3 }
  0x95   :  { %v30_v5 = vsub.f32 %v23_v1, %v29_v4 }
  0x97   :  { %v31_v6 = vmul.f32 %v30_v5, %v30_v5 }
  0x99   :  { %v32_v7 = vsel %vm24_vm0, %v31_v6, 0.0 }
  0x9a   :  { %33 = vadd.xlane.f32.xlu0 %v32_v7 }
 0x127   :  { %v34_v11 = vpop.xlane.xlu0 %33 }
 0x128   :  { %v35_v12 = vmul.f32 0.03125, %v34_v11 }
 0x12a   :  { %v36_v13 = vadd.f32 1e-05, %v35_v12 }
 0x12c   :  { %145 = vrsqrt.f32 %v36_v13 }
 0x136   :  { %v146_v14 = vpop.eup %145 }
 0x137   :  { %v38_v16 = vmul.f32 %v146_v14, %v30_v5 }
 0x139   :  { %v46_v18 = vmul.f32 %v125_v15, %v38_v16 }
 0x13b   :  { %v54_v19 = vadd.f32 %v126_v17, %v46_v18 }
 0x13d   :  { %v55_v20 = vpack.c.bf16 %v54_v19, %v54_v19 }
 0x13f   :  { %57 = vst.msk [vmem:[#allocation2] sm:$0x1] %vm56_vm2, %v55_v20 }
 0x146   :  { %v58_v21 = vld [vmem:[#allocation2] sm:$0x1] }
 0x147   :  { %138 = vmatmul.mubr.msk.bf16.vlgmr.msra.gmra.mrb[0].mxu0 %vm75_vm3, %v58_v21 }
 0x21a   :  { %v113_v22 = vpop.f32.mrb[0].mxu0 }
 0x21b   :  { %120 = vst.msk [vmem:[%s199_s4] sm:$0x3] %vm24_vm0, %v113_v22  ;;  %v139_v23 = vpop.f32.mrb[1].mxu0 }
 0x21c   :  { %v116_v24 = vpop.f32.mrb[2].mxu0 }
 0x21d   :  { %v140_v25 = vpop.f32.mrb[3].mxu0 }

</bundles_post_ra>
